<compile_context>
chip_gen: v7x
topology: tpu7x:2x2x1
jax: 0.10.0
libtpu: 0.0.40
codegen_flags: <defaults>
</compile_context>

<pallas_src>
import jax
import jax.numpy as jnp
from jax import lax
from jax.experimental import pallas as pl
from jax.experimental.pallas import tpu as pltpu


def _num_convs(in_channels):
    """Mirror of CFGM_v1.__init__: smallest i with 2**i >= in_channels."""
    for i in range(10000):
        if 2 ** i >= in_channels:
            return i
    return 0


def _round_up(v, m):
    return ((v + m - 1) // m) * m


def make_cfgm_kernel(C, Np, OFF, NW, Wp, num_conv):
    """Build the fused multi-stage kernel body (all sizes are Python consts)."""

    def kernel(x_ref, w_ref, b_ref, a_ref, m_ref, o_ref, cur_ref):
        # cur_ref: (C, NW) running activation — the flattened padded spatial
        # grid lives at lanes [OFF, OFF+Np); OFF-lane margins on both sides
        # make every 3x3 tap a static, in-bounds lane-offset slice.
        # Zero only the margins; the interior slot is fully overwritten below.
        cur_ref[:, :OFF] = jnp.zeros((C, OFF), jnp.float32)
        cur_ref[:, OFF + Np:NW] = jnp.zeros((C, NW - OFF - Np), jnp.float32)
        cur_ref[:, OFF:OFF + Np] = x_ref[0]

        mask = m_ref[...]                       # (1, Np): 1.0 at real pixels

        for i in range(num_conv):
            acc1 = None
            acc2 = None
            for dy in range(3):
                for dx in range(3):
                    t = dy * 3 + dx
                    s = (dy - 1) * Wp + (dx - 1)
                    # Shifted tap, shared by both depthwise-conv branches.
                    v = cur_ref[:, OFF + s:OFF + s + Np]          # (C, Np)
                    w1 = w_ref[t, :, 2 * i:2 * i + 1]             # (C, 1)
                    w2 = w_ref[t, :, 2 * i + 1:2 * i + 2]         # (C, 1)
                    if acc1 is None:    # init with first tap (no zeros + add)
                        acc1 = v * w1
                        acc2 = v * w2
                    else:
                        acc1 = acc1 + v * w1
                        acc2 = acc2 + v * w2
            z1 = acc1 + b_ref[:, 2 * i:2 * i + 1]
            z2 = acc2 + b_ref[:, 2 * i + 1:2 * i + 2]
            # Per-channel PReLU.
            p1 = jnp.where(z1 >= 0, z1, a_ref[:, 2 * i:2 * i + 1] * z1)
            p2 = jnp.where(z2 >= 0, z2, a_ref[:, 2 * i + 1:2 * i + 2] * z2)
            # Re-zero the pad border / lane tail so the next stage's shifted
            # reads see proper zero padding.
            cur_ref[:, OFF:OFF + Np] = (p1 + p2) * mask

        # Residual add; wrapper crops the 1px border.
        o_ref[0] = cur_ref[:, OFF:OFF + Np] + x_ref[0]

    return kernel


def cfgm_v1_forward(x, weights, biases, alphas):
    """CFGM_v1 forward.

    x:       (B, C, H, W) f32
    weights: (2*num_conv, C, 3, 3)  depthwise 3x3 taps (Conv2d groups=C)
    biases:  (2*num_conv, C)
    alphas:  (2*num_conv, C)        per-channel PReLU slopes
    """
    B, C, H, W = x.shape
    nc2 = weights.shape[0]
    num_conv = nc2 // 2
    assert nc2 == 2 * _num_convs(C)
    assert weights.shape == (nc2, C, 3, 3)
    assert biases.shape == (nc2, C)
    assert alphas.shape == (nc2, C)

    pad = 1
    Hp, Wp = H + 2 * pad, W + 2 * pad
    L = Hp * Wp                          # flattened padded spatial length
    Np = _round_up(L, 128)               # lane-dense working length
    OFF = _round_up(Wp + 1, 128)         # shift margin (>= max |tap shift|)
    NW = Np + 2 * OFF                    # scratch width

    # TODO(synk): for large H*W the (C, Np) image should be strip-tiled (row
    # strips with a 1-row halo) to fit v7x's 64 MiB VMEM; this version keeps
    # one whole image per grid step. bf16 activations on v6e/v7x also skipped.

    x32 = x.astype(jnp.float32)
    xp = jnp.pad(x32, ((0, 0), (0, 0), (pad, pad), (pad, pad)))
    xf = jnp.pad(xp.reshape(B, C, L), ((0, 0), (0, 0), (0, Np - L)))

    # Interior mask over the flattened padded grid (1 = real pixel).
    idx = jnp.arange(Np)
    yy, xx = idx // Wp, idx % Wp
    mask = ((idx < L) & (yy >= 1) & (yy <= H) & (xx >= 1) & (xx <= W))
    mask = mask.astype(jnp.float32).reshape(1, Np)

    # Raw parameter packing (a few KB) — broadcast happens inside the kernel.
    w_pack = jnp.transpose(weights.astype(jnp.float32).reshape(nc2, C, 9),
                           (2, 1, 0))                          # (9, C, nc2)
    b_pack = jnp.transpose(biases.astype(jnp.float32), (1, 0))  # (C, nc2)
    a_pack = jnp.transpose(alphas.astype(jnp.float32), (1, 0))  # (C, nc2)

    kernel = make_cfgm_kernel(C, Np, OFF, NW, Wp, num_conv)

    out_flat = pl.pallas_call(
        kernel,
        out_shape=jax.ShapeDtypeStruct((B, C, Np), jnp.float32),
        grid_spec=pltpu.PrefetchScalarGridSpec(
            num_scalar_prefetch=0,
            grid=(B,),
            in_specs=[
                pl.BlockSpec((1, C, Np), lambda b: (b, 0, 0)),    # x (flat)
                pl.BlockSpec((9, C, nc2), lambda b: (0, 0, 0)),   # weights
                pl.BlockSpec((C, nc2), lambda b: (0, 0)),         # biases
                pl.BlockSpec((C, nc2), lambda b: (0, 0)),         # prelu alphas
                pl.BlockSpec((1, Np), lambda b: (0, 0)),          # interior mask
            ],
            out_specs=pl.BlockSpec((1, C, Np), lambda b: (b, 0, 0)),
            scratch_shapes=[pltpu.VMEM((C, NW), jnp.float32)],
        ),
        compiler_params=pltpu.CompilerParams(
            dimension_semantics=("parallel",),
        ),
    )(xf, w_pack, b_pack, a_pack, mask)

    # Un-flatten and crop the 1-pixel border (wrapper-side layout plumbing).
    out = out_flat[:, :, :L].reshape(B, C, Hp, Wp)[:, :, pad:pad + H,
                                                   pad:pad + W]
    return out


def ref_forward(x, weights, biases, alphas):
    """Pure-JAX reference of CFGM_v1.forward."""
    B, C, H, W = x.shape
    num_conv = weights.shape[0] // 2

    def dwconv(inp, w, b):
        out = lax.conv_general_dilated(
            inp, w[:, None, :, :], window_strides=(1, 1),
            padding=[(1, 1), (1, 1)],
            dimension_numbers=('NCHW', 'OIHW', 'NCHW'),
            feature_group_count=C,
            precision=lax.Precision.HIGHEST)
        return out + b[None, :, None, None]

    def prelu(v, a):
        return jnp.where(v >= 0, v, a[None, :, None, None] * v)

    out = x
    for i in range(num_conv):
        p1 = prelu(dwconv(out, weights[2 * i], biases[2 * i]), alphas[2 * i])
        p2 = prelu(dwconv(out, weights[2 * i + 1], biases[2 * i + 1]),
                   alphas[2 * i + 1])
        out = p1 + p2
    return out + x


if __name__ == "__main__":
    B, C, H, W = 2, 8, 16, 16
    num_conv = _num_convs(C)          # 3
    nc2 = 2 * num_conv                # 6 depthwise conv + PReLU pairs

    key = jax.random.PRNGKey(0)
    kx, kw, kb, ka = jax.random.split(key, 4)
    x = jax.random.normal(kx, (B, C, H, W), jnp.float32)
    weights = 0.2 * jax.random.normal(kw, (nc2, C, 3, 3), jnp.float32)
    biases = 0.1 * jax.random.normal(kb, (nc2, C), jnp.float32)
    alphas = 0.05 + 0.02 * jax.random.normal(ka, (nc2, C), jnp.float32)

    out = jax.block_until_ready(cfgm_v1_forward(x, weights, biases, alphas))
    ref = jax.block_until_ready(ref_forward(x, weights, biases, alphas))

    assert out.shape == ref.shape == (B, C, H, W)
    max_err = float(jnp.max(jnp.abs(out - ref)))
    if max_err < 5e-4:
        print("KERNEL_OK")
    else:
        raise SystemExit(f"mismatch vs reference: max_err={max_err}")
</pallas_src>

<mosaic_0001>
module attributes {stable_mosaic.version = 11 : i64} {
  func.func @kernel(%arg0: i32, %arg1: memref<1x8x384xf32, #tpu.memory_space<vmem>>, %arg2: memref<9x8x6xf32, #tpu.memory_space<vmem>>, %arg3: memref<8x6xf32, #tpu.memory_space<vmem>>, %arg4: memref<8x6xf32, #tpu.memory_space<vmem>>, %arg5: memref<1x384xf32, #tpu.memory_space<vmem>>, %arg6: memref<1x8x384xf32, #tpu.memory_space<vmem>>, %arg7: memref<8x640xf32, #tpu.memory_space<vmem>>) attributes {dimension_semantics = [#tpu.dimension_semantics<parallel>], iteration_bounds = array<i64: 2>, scalar_prefetch = 0 : i64, scratch_operands = 1 : i64, tpu.core_type = #tpu.core_type<tc>, window_params = [{transform_indices = @transform_0, window_bounds = array<i64: 1, 8, 384>}, {pipeline_mode = #tpu.pipeline_mode<synchronous>, transform_indices = @transform_1, window_bounds = array<i64: 9, 8, 6>}, {pipeline_mode = #tpu.pipeline_mode<synchronous>, transform_indices = @transform_2, window_bounds = array<i64: 8, 6>}, {pipeline_mode = #tpu.pipeline_mode<synchronous>, transform_indices = @transform_3, window_bounds = array<i64: 8, 6>}, {pipeline_mode = #tpu.pipeline_mode<synchronous>, transform_indices = @transform_4, window_bounds = array<i64: 1, 384>}, {transform_indices = @transform_5, window_bounds = array<i64: 1, 8, 384>}]} {
    %cst = arith.constant 0.000000e+00 : f32
    %0 = vector.broadcast %cst : f32 to vector<8x128xf32>
    %c0 = arith.constant 0 : index
    %c0_0 = arith.constant 0 : index
    %1 = vector.load %arg7[%c0, %c0_0] : memref<8x640xf32, #tpu.memory_space<vmem>>, vector<8x128xf32>
    tpu.vector_store %arg7[%c0, %c0_0], %0 {strides = array<i32>} : memref<8x640xf32, #tpu.memory_space<vmem>>, vector<8x128xf32>,
    %cst_1 = arith.constant 0.000000e+00 : f32
    %2 = vector.broadcast %cst_1 : f32 to vector<8x128xf32>
    %c0_2 = arith.constant 0 : index
    %c512 = arith.constant 512 : index
    %3 = vector.load %arg7[%c0_2, %c512] : memref<8x640xf32, #tpu.memory_space<vmem>>, vector<8x128xf32>
    tpu.vector_store %arg7[%c0_2, %c512], %2 {strides = array<i32>} : memref<8x640xf32, #tpu.memory_space<vmem>>, vector<8x128xf32>,
    %c0_3 = arith.constant 0 : index
    %c0_4 = arith.constant 0 : index
    %c0_5 = arith.constant 0 : index
    %4 = vector.load %arg1[%c0_3, %c0_4, %c0_5] : memref<1x8x384xf32, #tpu.memory_space<vmem>>, vector<1x8x384xf32>
    %5 = vector.shape_cast %4 : vector<1x8x384xf32> to vector<8x384xf32>
    %c0_6 = arith.constant 0 : index
    %c128 = arith.constant 128 : index
    %6 = vector.load %arg7[%c0_6, %c128] : memref<8x640xf32, #tpu.memory_space<vmem>>, vector<8x384xf32>
    tpu.vector_store %arg7[%c0_6, %c128], %5 {strides = array<i32>} : memref<8x640xf32, #tpu.memory_space<vmem>>, vector<8x384xf32>,
    %c0_7 = arith.constant 0 : index
    %c0_8 = arith.constant 0 : index
    %7 = vector.load %arg5[%c0_7, %c0_8] : memref<1x384xf32, #tpu.memory_space<vmem>>, vector<1x384xf32>
    %c0_9 = arith.constant 0 : index
    %c109 = arith.constant 109 : index
    %8 = vector.load %arg7[%c0_9, %c109] : memref<8x640xf32, #tpu.memory_space<vmem>>, vector<8x384xf32>
    %c0_10 = arith.constant 0 : index
    %c0_11 = arith.constant 0 : index
    %c0_12 = arith.constant 0 : index
    %9 = vector.load %arg2[%c0_10, %c0_11, %c0_12] : memref<9x8x6xf32, #tpu.memory_space<vmem>>, vector<1x8x1xf32>
    %10 = vector.shape_cast %9 : vector<1x8x1xf32> to vector<8x1xf32>
    %c0_13 = arith.constant 0 : index
    %c0_14 = arith.constant 0 : index
    %c1 = arith.constant 1 : index
    %11 = vector.load %arg2[%c0_13, %c0_14, %c1] : memref<9x8x6xf32, #tpu.memory_space<vmem>>, vector<1x8x1xf32>
    %12 = vector.shape_cast %11 : vector<1x8x1xf32> to vector<8x1xf32>
    %13 = vector.broadcast %10 : vector<8x1xf32> to vector<8x384xf32>
    %14 = arith.mulf %8, %13 : vector<8x384xf32>
    %15 = vector.broadcast %12 : vector<8x1xf32> to vector<8x384xf32>
    %16 = arith.mulf %8, %15 : vector<8x384xf32>
    %c0_15 = arith.constant 0 : index
    %c110 = arith.constant 110 : index
    %17 = vector.load %arg7[%c0_15, %c110] : memref<8x640xf32, #tpu.memory_space<vmem>>, vector<8x384xf32>
    %c1_16 = arith.constant 1 : index
    %c0_17 = arith.constant 0 : index
    %c0_18 = arith.constant 0 : index
    %18 = vector.load %arg2[%c1_16, %c0_17, %c0_18] : memref<9x8x6xf32, #tpu.memory_space<vmem>>, vector<1x8x1xf32>
    %19 = vector.shape_cast %18 : vector<1x8x1xf32> to vector<8x1xf32>
    %c1_19 = arith.constant 1 : index
    %c0_20 = arith.constant 0 : index
    %c1_21 = arith.constant 1 : index
    %20 = vector.load %arg2[%c1_19, %c0_20, %c1_21] : memref<9x8x6xf32, #tpu.memory_space<vmem>>, vector<1x8x1xf32>
    %21 = vector.shape_cast %20 : vector<1x8x1xf32> to vector<8x1xf32>
    %22 = vector.broadcast %19 : vector<8x1xf32> to vector<8x384xf32>
    %23 = arith.mulf %17, %22 : vector<8x384xf32>
    %24 = arith.addf %14, %23 : vector<8x384xf32>
    %25 = vector.broadcast %21 : vector<8x1xf32> to vector<8x384xf32>
    %26 = arith.mulf %17, %25 : vector<8x384xf32>
    %27 = arith.addf %16, %26 : vector<8x384xf32>
    %c0_22 = arith.constant 0 : index
    %c111 = arith.constant 111 : index
    %28 = vector.load %arg7[%c0_22, %c111] : memref<8x640xf32, #tpu.memory_space<vmem>>, vector<8x384xf32>
    %c2 = arith.constant 2 : index
    %c0_23 = arith.constant 0 : index
    %c0_24 = arith.constant 0 : index
    %29 = vector.load %arg2[%c2, %c0_23, %c0_24] : memref<9x8x6xf32, #tpu.memory_space<vmem>>, vector<1x8x1xf32>
    %30 = vector.shape_cast %29 : vector<1x8x1xf32> to vector<8x1xf32>
    %c2_25 = arith.constant 2 : index
    %c0_26 = arith.constant 0 : index
    %c1_27 = arith.constant 1 : index
    %31 = vector.load %arg2[%c2_25, %c0_26, %c1_27] : memref<9x8x6xf32, #tpu.memory_space<vmem>>, vector<1x8x1xf32>
    %32 = vector.shape_cast %31 : vector<1x8x1xf32> to vector<8x1xf32>
    %33 = vector.broadcast %30 : vector<8x1xf32> to vector<8x384xf32>
    %34 = arith.mulf %28, %33 : vector<8x384xf32>
    %35 = arith.addf %24, %34 : vector<8x384xf32>
    %36 = vector.broadcast %32 : vector<8x1xf32> to vector<8x384xf32>
    %37 = arith.mulf %28, %36 : vector<8x384xf32>
    %38 = arith.addf %27, %37 : vector<8x384xf32>
    %c0_28 = arith.constant 0 : index
    %c127 = arith.constant 127 : index
    %39 = vector.load %arg7[%c0_28, %c127] : memref<8x640xf32, #tpu.memory_space<vmem>>, vector<8x384xf32>
    %c3 = arith.constant 3 : index
    %c0_29 = arith.constant 0 : index
    %c0_30 = arith.constant 0 : index
    %40 = vector.load %arg2[%c3, %c0_29, %c0_30] : memref<9x8x6xf32, #tpu.memory_space<vmem>>, vector<1x8x1xf32>
    %41 = vector.shape_cast %40 : vector<1x8x1xf32> to vector<8x1xf32>
    %c3_31 = arith.constant 3 : index
    %c0_32 = arith.constant 0 : index
    %c1_33 = arith.constant 1 : index
    %42 = vector.load %arg2[%c3_31, %c0_32, %c1_33] : memref<9x8x6xf32, #tpu.memory_space<vmem>>, vector<1x8x1xf32>
    %43 = vector.shape_cast %42 : vector<1x8x1xf32> to vector<8x1xf32>
    %44 = vector.broadcast %41 : vector<8x1xf32> to vector<8x384xf32>
    %45 = arith.mulf %39, %44 : vector<8x384xf32>
    %46 = arith.addf %35, %45 : vector<8x384xf32>
    %47 = vector.broadcast %43 : vector<8x1xf32> to vector<8x384xf32>
    %48 = arith.mulf %39, %47 : vector<8x384xf32>
    %49 = arith.addf %38, %48 : vector<8x384xf32>
    %c0_34 = arith.constant 0 : index
    %c128_35 = arith.constant 128 : index
    %50 = vector.load %arg7[%c0_34, %c128_35] : memref<8x640xf32, #tpu.memory_space<vmem>>, vector<8x384xf32>
    %c4 = arith.constant 4 : index
    %c0_36 = arith.constant 0 : index
    %c0_37 = arith.constant 0 : index
    %51 = vector.load %arg2[%c4, %c0_36, %c0_37] : memref<9x8x6xf32, #tpu.memory_space<vmem>>, vector<1x8x1xf32>
    %52 = vector.shape_cast %51 : vector<1x8x1xf32> to vector<8x1xf32>
    %c4_38 = arith.constant 4 : index
    %c0_39 = arith.constant 0 : index
    %c1_40 = arith.constant 1 : index
    %53 = vector.load %arg2[%c4_38, %c0_39, %c1_40] : memref<9x8x6xf32, #tpu.memory_space<vmem>>, vector<1x8x1xf32>
    %54 = vector.shape_cast %53 : vector<1x8x1xf32> to vector<8x1xf32>
    %55 = vector.broadcast %52 : vector<8x1xf32> to vector<8x384xf32>
    %56 = arith.mulf %50, %55 : vector<8x384xf32>
    %57 = arith.addf %46, %56 : vector<8x384xf32>
    %58 = vector.broadcast %54 : vector<8x1xf32> to vector<8x384xf32>
    %59 = arith.mulf %50, %58 : vector<8x384xf32>
    %60 = arith.addf %49, %59 : vector<8x384xf32>
    %c0_41 = arith.constant 0 : index
    %c129 = arith.constant 129 : index
    %61 = vector.load %arg7[%c0_41, %c129] : memref<8x640xf32, #tpu.memory_space<vmem>>, vector<8x384xf32>
    %c5 = arith.constant 5 : index
    %c0_42 = arith.constant 0 : index
    %c0_43 = arith.constant 0 : index
    %62 = vector.load %arg2[%c5, %c0_42, %c0_43] : memref<9x8x6xf32, #tpu.memory_space<vmem>>, vector<1x8x1xf32>
    %63 = vector.shape_cast %62 : vector<1x8x1xf32> to vector<8x1xf32>
    %c5_44 = arith.constant 5 : index
    %c0_45 = arith.constant 0 : index
    %c1_46 = arith.constant 1 : index
    %64 = vector.load %arg2[%c5_44, %c0_45, %c1_46] : memref<9x8x6xf32, #tpu.memory_space<vmem>>, vector<1x8x1xf32>
    %65 = vector.shape_cast %64 : vector<1x8x1xf32> to vector<8x1xf32>
    %66 = vector.broadcast %63 : vector<8x1xf32> to vector<8x384xf32>
    %67 = arith.mulf %61, %66 : vector<8x384xf32>
    %68 = arith.addf %57, %67 : vector<8x384xf32>
    %69 = vector.broadcast %65 : vector<8x1xf32> to vector<8x384xf32>
    %70 = arith.mulf %61, %69 : vector<8x384xf32>
    %71 = arith.addf %60, %70 : vector<8x384xf32>
    %c0_47 = arith.constant 0 : index
    %c145 = arith.constant 145 : index
    %72 = vector.load %arg7[%c0_47, %c145] : memref<8x640xf32, #tpu.memory_space<vmem>>, vector<8x384xf32>
    %c6 = arith.constant 6 : index
    %c0_48 = arith.constant 0 : index
    %c0_49 = arith.constant 0 : index
    %73 = vector.load %arg2[%c6, %c0_48, %c0_49] : memref<9x8x6xf32, #tpu.memory_space<vmem>>, vector<1x8x1xf32>
    %74 = vector.shape_cast %73 : vector<1x8x1xf32> to vector<8x1xf32>
    %c6_50 = arith.constant 6 : index
    %c0_51 = arith.constant 0 : index
    %c1_52 = arith.constant 1 : index
    %75 = vector.load %arg2[%c6_50, %c0_51, %c1_52] : memref<9x8x6xf32, #tpu.memory_space<vmem>>, vector<1x8x1xf32>
    %76 = vector.shape_cast %75 : vector<1x8x1xf32> to vector<8x1xf32>
    %77 = vector.broadcast %74 : vector<8x1xf32> to vector<8x384xf32>
    %78 = arith.mulf %72, %77 : vector<8x384xf32>
    %79 = arith.addf %68, %78 : vector<8x384xf32>
    %80 = vector.broadcast %76 : vector<8x1xf32> to vector<8x384xf32>
    %81 = arith.mulf %72, %80 : vector<8x384xf32>
    %82 = arith.addf %71, %81 : vector<8x384xf32>
    %c0_53 = arith.constant 0 : index
    %c146 = arith.constant 146 : index
    %83 = vector.load %arg7[%c0_53, %c146] : memref<8x640xf32, #tpu.memory_space<vmem>>, vector<8x384xf32>
    %c7 = arith.constant 7 : index
    %c0_54 = arith.constant 0 : index
    %c0_55 = arith.constant 0 : index
    %84 = vector.load %arg2[%c7, %c0_54, %c0_55] : memref<9x8x6xf32, #tpu.memory_space<vmem>>, vector<1x8x1xf32>
    %85 = vector.shape_cast %84 : vector<1x8x1xf32> to vector<8x1xf32>
    %c7_56 = arith.constant 7 : index
    %c0_57 = arith.constant 0 : index
    %c1_58 = arith.constant 1 : index
    %86 = vector.load %arg2[%c7_56, %c0_57, %c1_58] : memref<9x8x6xf32, #tpu.memory_space<vmem>>, vector<1x8x1xf32>
    %87 = vector.shape_cast %86 : vector<1x8x1xf32> to vector<8x1xf32>
    %88 = vector.broadcast %85 : vector<8x1xf32> to vector<8x384xf32>
    %89 = arith.mulf %83, %88 : vector<8x384xf32>
    %90 = arith.addf %79, %89 : vector<8x384xf32>
    %91 = vector.broadcast %87 : vector<8x1xf32> to vector<8x384xf32>
    %92 = arith.mulf %83, %91 : vector<8x384xf32>
    %93 = arith.addf %82, %92 : vector<8x384xf32>
    %c0_59 = arith.constant 0 : index
    %c147 = arith.constant 147 : index
    %94 = vector.load %arg7[%c0_59, %c147] : memref<8x640xf32, #tpu.memory_space<vmem>>, vector<8x384xf32>
    %c8 = arith.constant 8 : index
    %c0_60 = arith.constant 0 : index
    %c0_61 = arith.constant 0 : index
    %95 = vector.load %arg2[%c8, %c0_60, %c0_61] : memref<9x8x6xf32, #tpu.memory_space<vmem>>, vector<1x8x1xf32>
    %96 = vector.shape_cast %95 : vector<1x8x1xf32> to vector<8x1xf32>
    %c8_62 = arith.constant 8 : index
    %c0_63 = arith.constant 0 : index
    %c1_64 = arith.constant 1 : index
    %97 = vector.load %arg2[%c8_62, %c0_63, %c1_64] : memref<9x8x6xf32, #tpu.memory_space<vmem>>, vector<1x8x1xf32>
    %98 = vector.shape_cast %97 : vector<1x8x1xf32> to vector<8x1xf32>
    %99 = vector.broadcast %96 : vector<8x1xf32> to vector<8x384xf32>
    %100 = arith.mulf %94, %99 : vector<8x384xf32>
    %101 = arith.addf %90, %100 : vector<8x384xf32>
    %102 = vector.broadcast %98 : vector<8x1xf32> to vector<8x384xf32>
    %103 = arith.mulf %94, %102 : vector<8x384xf32>
    %104 = arith.addf %93, %103 : vector<8x384xf32>
    %c0_65 = arith.constant 0 : index
    %c0_66 = arith.constant 0 : index
    %105 = vector.load %arg3[%c0_65, %c0_66] : memref<8x6xf32, #tpu.memory_space<vmem>>, vector<8x1xf32>
    %106 = vector.broadcast %105 : vector<8x1xf32> to vector<8x384xf32>
    %107 = arith.addf %101, %106 : vector<8x384xf32>
    %c0_67 = arith.constant 0 : index
    %c1_68 = arith.constant 1 : index
    %108 = vector.load %arg3[%c0_67, %c1_68] : memref<8x6xf32, #tpu.memory_space<vmem>>, vector<8x1xf32>
    %109 = vector.broadcast %108 : vector<8x1xf32> to vector<8x384xf32>
    %110 = arith.addf %104, %109 : vector<8x384xf32>
    %cst_69 = arith.constant 0.000000e+00 : f32
    %111 = vector.broadcast %cst_69 : f32 to vector<8x384xf32>
    %112 = arith.cmpf oge, %107, %111 : vector<8x384xf32>
    %c0_70 = arith.constant 0 : index
    %c0_71 = arith.constant 0 : index
    %113 = vector.load %arg4[%c0_70, %c0_71] : memref<8x6xf32, #tpu.memory_space<vmem>>, vector<8x1xf32>
    %114 = vector.broadcast %113 : vector<8x1xf32> to vector<8x384xf32>
    %115 = arith.mulf %114, %107 : vector<8x384xf32>
    %116 = arith.select %112, %107, %115 : vector<8x384xi1>, vector<8x384xf32>
    %cst_72 = arith.constant 0.000000e+00 : f32
    %117 = vector.broadcast %cst_72 : f32 to vector<8x384xf32>
    %118 = arith.cmpf oge, %110, %117 : vector<8x384xf32>
    %c0_73 = arith.constant 0 : index
    %c1_74 = arith.constant 1 : index
    %119 = vector.load %arg4[%c0_73, %c1_74] : memref<8x6xf32, #tpu.memory_space<vmem>>, vector<8x1xf32>
    %120 = vector.broadcast %119 : vector<8x1xf32> to vector<8x384xf32>
    %121 = arith.mulf %120, %110 : vector<8x384xf32>
    %122 = arith.select %118, %110, %121 : vector<8x384xi1>, vector<8x384xf32>
    %123 = arith.addf %116, %122 : vector<8x384xf32>
    %124 = vector.broadcast %7 : vector<1x384xf32> to vector<8x384xf32>
    %125 = arith.mulf %123, %124 : vector<8x384xf32>
    %c0_75 = arith.constant 0 : index
    %c128_76 = arith.constant 128 : index
    %126 = vector.load %arg7[%c0_75, %c128_76] : memref<8x640xf32, #tpu.memory_space<vmem>>, vector<8x384xf32>
    tpu.vector_store %arg7[%c0_75, %c128_76], %125 {strides = array<i32>} : memref<8x640xf32, #tpu.memory_space<vmem>>, vector<8x384xf32>,
    %c0_77 = arith.constant 0 : index
    %c109_78 = arith.constant 109 : index
    %127 = vector.load %arg7[%c0_77, %c109_78] : memref<8x640xf32, #tpu.memory_space<vmem>>, vector<8x384xf32>
    %c0_79 = arith.constant 0 : index
    %c0_80 = arith.constant 0 : index
    %c2_81 = arith.constant 2 : index
    %128 = vector.load %arg2[%c0_79, %c0_80, %c2_81] : memref<9x8x6xf32, #tpu.memory_space<vmem>>, vector<1x8x1xf32>
    %129 = vector.shape_cast %128 : vector<1x8x1xf32> to vector<8x1xf32>
    %c0_82 = arith.constant 0 : index
    %c0_83 = arith.constant 0 : index
    %c3_84 = arith.constant 3 : index
    %130 = vector.load %arg2[%c0_82, %c0_83, %c3_84] : memref<9x8x6xf32, #tpu.memory_space<vmem>>, vector<1x8x1xf32>
    %131 = vector.shape_cast %130 : vector<1x8x1xf32> to vector<8x1xf32>
    %132 = vector.broadcast %129 : vector<8x1xf32> to vector<8x384xf32>
    %133 = arith.mulf %127, %132 : vector<8x384xf32>
    %134 = vector.broadcast %131 : vector<8x1xf32> to vector<8x384xf32>
    %135 = arith.mulf %127, %134 : vector<8x384xf32>
    %c0_85 = arith.constant 0 : index
    %c110_86 = arith.constant 110 : index
    %136 = vector.load %arg7[%c0_85, %c110_86] : memref<8x640xf32, #tpu.memory_space<vmem>>, vector<8x384xf32>
    %c1_87 = arith.constant 1 : index
    %c0_88 = arith.constant 0 : index
    %c2_89 = arith.constant 2 : index
    %137 = vector.load %arg2[%c1_87, %c0_88, %c2_89] : memref<9x8x6xf32, #tpu.memory_space<vmem>>, vector<1x8x1xf32>
    %138 = vector.shape_cast %137 : vector<1x8x1xf32> to vector<8x1xf32>
    %c1_90 = arith.constant 1 : index
    %c0_91 = arith.constant 0 : index
    %c3_92 = arith.constant 3 : index
    %139 = vector.load %arg2[%c1_90, %c0_91, %c3_92] : memref<9x8x6xf32, #tpu.memory_space<vmem>>, vector<1x8x1xf32>
    %140 = vector.shape_cast %139 : vector<1x8x1xf32> to vector<8x1xf32>
    %141 = vector.broadcast %138 : vector<8x1xf32> to vector<8x384xf32>
    %142 = arith.mulf %136, %141 : vector<8x384xf32>
    %143 = arith.addf %133, %142 : vector<8x384xf32>
    %144 = vector.broadcast %140 : vector<8x1xf32> to vector<8x384xf32>
    %145 = arith.mulf %136, %144 : vector<8x384xf32>
    %146 = arith.addf %135, %145 : vector<8x384xf32>
    %c0_93 = arith.constant 0 : index
    %c111_94 = arith.constant 111 : index
    %147 = vector.load %arg7[%c0_93, %c111_94] : memref<8x640xf32, #tpu.memory_space<vmem>>, vector<8x384xf32>
    %c2_95 = arith.constant 2 : index
    %c0_96 = arith.constant 0 : index
    %c2_97 = arith.constant 2 : index
    %148 = vector.load %arg2[%c2_95, %c0_96, %c2_97] : memref<9x8x6xf32, #tpu.memory_space<vmem>>, vector<1x8x1xf32>
    %149 = vector.shape_cast %148 : vector<1x8x1xf32> to vector<8x1xf32>
    %c2_98 = arith.constant 2 : index
    %c0_99 = arith.constant 0 : index
    %c3_100 = arith.constant 3 : index
    %150 = vector.load %arg2[%c2_98, %c0_99, %c3_100] : memref<9x8x6xf32, #tpu.memory_space<vmem>>, vector<1x8x1xf32>
    %151 = vector.shape_cast %150 : vector<1x8x1xf32> to vector<8x1xf32>
    %152 = vector.broadcast %149 : vector<8x1xf32> to vector<8x384xf32>
    %153 = arith.mulf %147, %152 : vector<8x384xf32>
    %154 = arith.addf %143, %153 : vector<8x384xf32>
    %155 = vector.broadcast %151 : vector<8x1xf32> to vector<8x384xf32>
    %156 = arith.mulf %147, %155 : vector<8x384xf32>
    %157 = arith.addf %146, %156 : vector<8x384xf32>
    %c0_101 = arith.constant 0 : index
    %c127_102 = arith.constant 127 : index
    %158 = vector.load %arg7[%c0_101, %c127_102] : memref<8x640xf32, #tpu.memory_space<vmem>>, vector<8x384xf32>
    %c3_103 = arith.constant 3 : index
    %c0_104 = arith.constant 0 : index
    %c2_105 = arith.constant 2 : index
    %159 = vector.load %arg2[%c3_103, %c0_104, %c2_105] : memref<9x8x6xf32, #tpu.memory_space<vmem>>, vector<1x8x1xf32>
    %160 = vector.shape_cast %159 : vector<1x8x1xf32> to vector<8x1xf32>
    %c3_106 = arith.constant 3 : index
    %c0_107 = arith.constant 0 : index
    %c3_108 = arith.constant 3 : index
    %161 = vector.load %arg2[%c3_106, %c0_107, %c3_108] : memref<9x8x6xf32, #tpu.memory_space<vmem>>, vector<1x8x1xf32>
    %162 = vector.shape_cast %161 : vector<1x8x1xf32> to vector<8x1xf32>
    %163 = vector.broadcast %160 : vector<8x1xf32> to vector<8x384xf32>
    %164 = arith.mulf %158, %163 : vector<8x384xf32>
    %165 = arith.addf %154, %164 : vector<8x384xf32>
    %166 = vector.broadcast %162 : vector<8x1xf32> to vector<8x384xf32>
    %167 = arith.mulf %158, %166 : vector<8x384xf32>
    %168 = arith.addf %157, %167 : vector<8x384xf32>
    %c0_109 = arith.constant 0 : index
    %c128_110 = arith.constant 128 : index
    %169 = vector.load %arg7[%c0_109, %c128_110] : memref<8x640xf32, #tpu.memory_space<vmem>>, vector<8x384xf32>
    %c4_111 = arith.constant 4 : index
    %c0_112 = arith.constant 0 : index
    %c2_113 = arith.constant 2 : index
    %170 = vector.load %arg2[%c4_111, %c0_112, %c2_113] : memref<9x8x6xf32, #tpu.memory_space<vmem>>, vector<1x8x1xf32>
    %171 = vector.shape_cast %170 : vector<1x8x1xf32> to vector<8x1xf32>
    %c4_114 = arith.constant 4 : index
    %c0_115 = arith.constant 0 : index
    %c3_116 = arith.constant 3 : index
    %172 = vector.load %arg2[%c4_114, %c0_115, %c3_116] : memref<9x8x6xf32, #tpu.memory_space<vmem>>, vector<1x8x1xf32>
    %173 = vector.shape_cast %172 : vector<1x8x1xf32> to vector<8x1xf32>
    %174 = vector.broadcast %171 : vector<8x1xf32> to vector<8x384xf32>
    %175 = arith.mulf %169, %174 : vector<8x384xf32>
    %176 = arith.addf %165, %175 : vector<8x384xf32>
    %177 = vector.broadcast %173 : vector<8x1xf32> to vector<8x384xf32>
    %178 = arith.mulf %169, %177 : vector<8x384xf32>
    %179 = arith.addf %168, %178 : vector<8x384xf32>
    %c0_117 = arith.constant 0 : index
    %c129_118 = arith.constant 129 : index
    %180 = vector.load %arg7[%c0_117, %c129_118] : memref<8x640xf32, #tpu.memory_space<vmem>>, vector<8x384xf32>
    %c5_119 = arith.constant 5 : index
    %c0_120 = arith.constant 0 : index
    %c2_121 = arith.constant 2 : index
    %181 = vector.load %arg2[%c5_119, %c0_120, %c2_121] : memref<9x8x6xf32, #tpu.memory_space<vmem>>, vector<1x8x1xf32>
    %182 = vector.shape_cast %181 : vector<1x8x1xf32> to vector<8x1xf32>
    %c5_122 = arith.constant 5 : index
    %c0_123 = arith.constant 0 : index
    %c3_124 = arith.constant 3 : index
    %183 = vector.load %arg2[%c5_122, %c0_123, %c3_124] : memref<9x8x6xf32, #tpu.memory_space<vmem>>, vector<1x8x1xf32>
    %184 = vector.shape_cast %183 : vector<1x8x1xf32> to vector<8x1xf32>
    %185 = vector.broadcast %182 : vector<8x1xf32> to vector<8x384xf32>
    %186 = arith.mulf %180, %185 : vector<8x384xf32>
    %187 = arith.addf %176, %186 : vector<8x384xf32>
    %188 = vector.broadcast %184 : vector<8x1xf32> to vector<8x384xf32>
    %189 = arith.mulf %180, %188 : vector<8x384xf32>
    %190 = arith.addf %179, %189 : vector<8x384xf32>
    %c0_125 = arith.constant 0 : index
    %c145_126 = arith.constant 145 : index
    %191 = vector.load %arg7[%c0_125, %c145_126] : memref<8x640xf32, #tpu.memory_space<vmem>>, vector<8x384xf32>
    %c6_127 = arith.constant 6 : index
    %c0_128 = arith.constant 0 : index
    %c2_129 = arith.constant 2 : index
    %192 = vector.load %arg2[%c6_127, %c0_128, %c2_129] : memref<9x8x6xf32, #tpu.memory_space<vmem>>, vector<1x8x1xf32>
    %193 = vector.shape_cast %192 : vector<1x8x1xf32> to vector<8x1xf32>
    %c6_130 = arith.constant 6 : index
    %c0_131 = arith.constant 0 : index
    %c3_132 = arith.constant 3 : index
    %194 = vector.load %arg2[%c6_130, %c0_131, %c3_132] : memref<9x8x6xf32, #tpu.memory_space<vmem>>, vector<1x8x1xf32>
    %195 = vector.shape_cast %194 : vector<1x8x1xf32> to vector<8x1xf32>
    %196 = vector.broadcast %193 : vector<8x1xf32> to vector<8x384xf32>
    %197 = arith.mulf %191, %196 : vector<8x384xf32>
    %198 = arith.addf %187, %197 : vector<8x384xf32>
    %199 = vector.broadcast %195 : vector<8x1xf32> to vector<8x384xf32>
    %200 = arith.mulf %191, %199 : vector<8x384xf32>
    %201 = arith.addf %190, %200 : vector<8x384xf32>
    %c0_133 = arith.constant 0 : index
    %c146_134 = arith.constant 146 : index
    %202 = vector.load %arg7[%c0_133, %c146_134] : memref<8x640xf32, #tpu.memory_space<vmem>>, vector<8x384xf32>
    %c7_135 = arith.constant 7 : index
    %c0_136 = arith.constant 0 : index
    %c2_137 = arith.constant 2 : index
    %203 = vector.load %arg2[%c7_135, %c0_136, %c2_137] : memref<9x8x6xf32, #tpu.memory_space<vmem>>, vector<1x8x1xf32>
    %204 = vector.shape_cast %203 : vector<1x8x1xf32> to vector<8x1xf32>
    %c7_138 = arith.constant 7 : index
    %c0_139 = arith.constant 0 : index
    %c3_140 = arith.constant 3 : index
    %205 = vector.load %arg2[%c7_138, %c0_139, %c3_140] : memref<9x8x6xf32, #tpu.memory_space<vmem>>, vector<1x8x1xf32>
    %206 = vector.shape_cast %205 : vector<1x8x1xf32> to vector<8x1xf32>
    %207 = vector.broadcast %204 : vector<8x1xf32> to vector<8x384xf32>
    %208 = arith.mulf %202, %207 : vector<8x384xf32>
    %209 = arith.addf %198, %208 : vector<8x384xf32>
    %210 = vector.broadcast %206 : vector<8x1xf32> to vector<8x384xf32>
    %211 = arith.mulf %202, %210 : vector<8x384xf32>
    %212 = arith.addf %201, %211 : vector<8x384xf32>
    %c0_141 = arith.constant 0 : index
    %c147_142 = arith.constant 147 : index
    %213 = vector.load %arg7[%c0_141, %c147_142] : memref<8x640xf32, #tpu.memory_space<vmem>>, vector<8x384xf32>
    %c8_143 = arith.constant 8 : index
    %c0_144 = arith.constant 0 : index
    %c2_145 = arith.constant 2 : index
    %214 = vector.load %arg2[%c8_143, %c0_144, %c2_145] : memref<9x8x6xf32, #tpu.memory_space<vmem>>, vector<1x8x1xf32>
    %215 = vector.shape_cast %214 : vector<1x8x1xf32> to vector<8x1xf32>
    %c8_146 = arith.constant 8 : index
    %c0_147 = arith.constant 0 : index
    %c3_148 = arith.constant 3 : index
    %216 = vector.load %arg2[%c8_146, %c0_147, %c3_148] : memref<9x8x6xf32, #tpu.memory_space<vmem>>, vector<1x8x1xf32>
    %217 = vector.shape_cast %216 : vector<1x8x1xf32> to vector<8x1xf32>
    %218 = vector.broadcast %215 : vector<8x1xf32> to vector<8x384xf32>
    %219 = arith.mulf %213, %218 : vector<8x384xf32>
    %220 = arith.addf %209, %219 : vector<8x384xf32>
    %221 = vector.broadcast %217 : vector<8x1xf32> to vector<8x384xf32>
    %222 = arith.mulf %213, %221 : vector<8x384xf32>
    %223 = arith.addf %212, %222 : vector<8x384xf32>
    %c0_149 = arith.constant 0 : index
    %c2_150 = arith.constant 2 : index
    %224 = vector.load %arg3[%c0_149, %c2_150] : memref<8x6xf32, #tpu.memory_space<vmem>>, vector<8x1xf32>
    %225 = vector.broadcast %224 : vector<8x1xf32> to vector<8x384xf32>
    %226 = arith.addf %220, %225 : vector<8x384xf32>
    %c0_151 = arith.constant 0 : index
    %c3_152 = arith.constant 3 : index
    %227 = vector.load %arg3[%c0_151, %c3_152] : memref<8x6xf32, #tpu.memory_space<vmem>>, vector<8x1xf32>
    %228 = vector.broadcast %227 : vector<8x1xf32> to vector<8x384xf32>
    %229 = arith.addf %223, %228 : vector<8x384xf32>
    %cst_153 = arith.constant 0.000000e+00 : f32
    %230 = vector.broadcast %cst_153 : f32 to vector<8x384xf32>
    %231 = arith.cmpf oge, %226, %230 : vector<8x384xf32>
    %c0_154 = arith.constant 0 : index
    %c2_155 = arith.constant 2 : index
    %232 = vector.load %arg4[%c0_154, %c2_155] : memref<8x6xf32, #tpu.memory_space<vmem>>, vector<8x1xf32>
    %233 = vector.broadcast %232 : vector<8x1xf32> to vector<8x384xf32>
    %234 = arith.mulf %233, %226 : vector<8x384xf32>
    %235 = arith.select %231, %226, %234 : vector<8x384xi1>, vector<8x384xf32>
    %cst_156 = arith.constant 0.000000e+00 : f32
    %236 = vector.broadcast %cst_156 : f32 to vector<8x384xf32>
    %237 = arith.cmpf oge, %229, %236 : vector<8x384xf32>
    %c0_157 = arith.constant 0 : index
    %c3_158 = arith.constant 3 : index
    %238 = vector.load %arg4[%c0_157, %c3_158] : memref<8x6xf32, #tpu.memory_space<vmem>>, vector<8x1xf32>
    %239 = vector.broadcast %238 : vector<8x1xf32> to vector<8x384xf32>
    %240 = arith.mulf %239, %229 : vector<8x384xf32>
    %241 = arith.select %237, %229, %240 : vector<8x384xi1>, vector<8x384xf32>
    %242 = arith.addf %235, %241 : vector<8x384xf32>
    %243 = vector.broadcast %7 : vector<1x384xf32> to vector<8x384xf32>
    %244 = arith.mulf %242, %243 : vector<8x384xf32>
    %c0_159 = arith.constant 0 : index
    %c128_160 = arith.constant 128 : index
    %245 = vector.load %arg7[%c0_159, %c128_160] : memref<8x640xf32, #tpu.memory_space<vmem>>, vector<8x384xf32>
    tpu.vector_store %arg7[%c0_159, %c128_160], %244 {strides = array<i32>} : memref<8x640xf32, #tpu.memory_space<vmem>>, vector<8x384xf32>,
    %c0_161 = arith.constant 0 : index
    %c109_162 = arith.constant 109 : index
    %246 = vector.load %arg7[%c0_161, %c109_162] : memref<8x640xf32, #tpu.memory_space<vmem>>, vector<8x384xf32>
    %c0_163 = arith.constant 0 : index
    %c0_164 = arith.constant 0 : index
    %c4_165 = arith.constant 4 : index
    %247 = vector.load %arg2[%c0_163, %c0_164, %c4_165] : memref<9x8x6xf32, #tpu.memory_space<vmem>>, vector<1x8x1xf32>
    %248 = vector.shape_cast %247 : vector<1x8x1xf32> to vector<8x1xf32>
    %c0_166 = arith.constant 0 : index
    %c0_167 = arith.constant 0 : index
    %c5_168 = arith.constant 5 : index
    %249 = vector.load %arg2[%c0_166, %c0_167, %c5_168] : memref<9x8x6xf32, #tpu.memory_space<vmem>>, vector<1x8x1xf32>
    %250 = vector.shape_cast %249 : vector<1x8x1xf32> to vector<8x1xf32>
    %251 = vector.broadcast %248 : vector<8x1xf32> to vector<8x384xf32>
    %252 = arith.mulf %246, %251 : vector<8x384xf32>
    %253 = vector.broadcast %250 : vector<8x1xf32> to vector<8x384xf32>
    %254 = arith.mulf %246, %253 : vector<8x384xf32>
    %c0_169 = arith.constant 0 : index
    %c110_170 = arith.constant 110 : index
    %255 = vector.load %arg7[%c0_169, %c110_170] : memref<8x640xf32, #tpu.memory_space<vmem>>, vector<8x384xf32>
    %c1_171 = arith.constant 1 : index
    %c0_172 = arith.constant 0 : index
    %c4_173 = arith.constant 4 : index
    %256 = vector.load %arg2[%c1_171, %c0_172, %c4_173] : memref<9x8x6xf32, #tpu.memory_space<vmem>>, vector<1x8x1xf32>
    %257 = vector.shape_cast %256 : vector<1x8x1xf32> to vector<8x1xf32>
    %c1_174 = arith.constant 1 : index
    %c0_175 = arith.constant 0 : index
    %c5_176 = arith.constant 5 : index
    %258 = vector.load %arg2[%c1_174, %c0_175, %c5_176] : memref<9x8x6xf32, #tpu.memory_space<vmem>>, vector<1x8x1xf32>
    %259 = vector.shape_cast %258 : vector<1x8x1xf32> to vector<8x1xf32>
    %260 = vector.broadcast %257 : vector<8x1xf32> to vector<8x384xf32>
    %261 = arith.mulf %255, %260 : vector<8x384xf32>
    %262 = arith.addf %252, %261 : vector<8x384xf32>
    %263 = vector.broadcast %259 : vector<8x1xf32> to vector<8x384xf32>
    %264 = arith.mulf %255, %263 : vector<8x384xf32>
    %265 = arith.addf %254, %264 : vector<8x384xf32>
    %c0_177 = arith.constant 0 : index
    %c111_178 = arith.constant 111 : index
    %266 = vector.load %arg7[%c0_177, %c111_178] : memref<8x640xf32, #tpu.memory_space<vmem>>, vector<8x384xf32>
    %c2_179 = arith.constant 2 : index
    %c0_180 = arith.constant 0 : index
    %c4_181 = arith.constant 4 : index
    %267 = vector.load %arg2[%c2_179, %c0_180, %c4_181] : memref<9x8x6xf32, #tpu.memory_space<vmem>>, vector<1x8x1xf32>
    %268 = vector.shape_cast %267 : vector<1x8x1xf32> to vector<8x1xf32>
    %c2_182 = arith.constant 2 : index
    %c0_183 = arith.constant 0 : index
    %c5_184 = arith.constant 5 : index
    %269 = vector.load %arg2[%c2_182, %c0_183, %c5_184] : memref<9x8x6xf32, #tpu.memory_space<vmem>>, vector<1x8x1xf32>
    %270 = vector.shape_cast %269 : vector<1x8x1xf32> to vector<8x1xf32>
    %271 = vector.broadcast %268 : vector<8x1xf32> to vector<8x384xf32>
    %272 = arith.mulf %266, %271 : vector<8x384xf32>
    %273 = arith.addf %262, %272 : vector<8x384xf32>
    %274 = vector.broadcast %270 : vector<8x1xf32> to vector<8x384xf32>
    %275 = arith.mulf %266, %274 : vector<8x384xf32>
    %276 = arith.addf %265, %275 : vector<8x384xf32>
    %c0_185 = arith.constant 0 : index
    %c127_186 = arith.constant 127 : index
    %277 = vector.load %arg7[%c0_185, %c127_186] : memref<8x640xf32, #tpu.memory_space<vmem>>, vector<8x384xf32>
    %c3_187 = arith.constant 3 : index
    %c0_188 = arith.constant 0 : index
    %c4_189 = arith.constant 4 : index
    %278 = vector.load %arg2[%c3_187, %c0_188, %c4_189] : memref<9x8x6xf32, #tpu.memory_space<vmem>>, vector<1x8x1xf32>
    %279 = vector.shape_cast %278 : vector<1x8x1xf32> to vector<8x1xf32>
    %c3_190 = arith.constant 3 : index
    %c0_191 = arith.constant 0 : index
    %c5_192 = arith.constant 5 : index
    %280 = vector.load %arg2[%c3_190, %c0_191, %c5_192] : memref<9x8x6xf32, #tpu.memory_space<vmem>>, vector<1x8x1xf32>
    %281 = vector.shape_cast %280 : vector<1x8x1xf32> to vector<8x1xf32>
    %282 = vector.broadcast %279 : vector<8x1xf32> to vector<8x384xf32>
    %283 = arith.mulf %277, %282 : vector<8x384xf32>
    %284 = arith.addf %273, %283 : vector<8x384xf32>
    %285 = vector.broadcast %281 : vector<8x1xf32> to vector<8x384xf32>
    %286 = arith.mulf %277, %285 : vector<8x384xf32>
    %287 = arith.addf %276, %286 : vector<8x384xf32>
    %c0_193 = arith.constant 0 : index
    %c128_194 = arith.constant 128 : index
    %288 = vector.load %arg7[%c0_193, %c128_194] : memref<8x640xf32, #tpu.memory_space<vmem>>, vector<8x384xf32>
    %c4_195 = arith.constant 4 : index
    %c0_196 = arith.constant 0 : index
    %c4_197 = arith.constant 4 : index
    %289 = vector.load %arg2[%c4_195, %c0_196, %c4_197] : memref<9x8x6xf32, #tpu.memory_space<vmem>>, vector<1x8x1xf32>
    %290 = vector.shape_cast %289 : vector<1x8x1xf32> to vector<8x1xf32>
    %c4_198 = arith.constant 4 : index
    %c0_199 = arith.constant 0 : index
    %c5_200 = arith.constant 5 : index
    %291 = vector.load %arg2[%c4_198, %c0_199, %c5_200] : memref<9x8x6xf32, #tpu.memory_space<vmem>>, vector<1x8x1xf32>
    %292 = vector.shape_cast %291 : vector<1x8x1xf32> to vector<8x1xf32>
    %293 = vector.broadcast %290 : vector<8x1xf32> to vector<8x384xf32>
    %294 = arith.mulf %288, %293 : vector<8x384xf32>
    %295 = arith.addf %284, %294 : vector<8x384xf32>
    %296 = vector.broadcast %292 : vector<8x1xf32> to vector<8x384xf32>
    %297 = arith.mulf %288, %296 : vector<8x384xf32>
    %298 = arith.addf %287, %297 : vector<8x384xf32>
    %c0_201 = arith.constant 0 : index
    %c129_202 = arith.constant 129 : index
    %299 = vector.load %arg7[%c0_201, %c129_202] : memref<8x640xf32, #tpu.memory_space<vmem>>, vector<8x384xf32>
    %c5_203 = arith.constant 5 : index
    %c0_204 = arith.constant 0 : index
    %c4_205 = arith.constant 4 : index
    %300 = vector.load %arg2[%c5_203, %c0_204, %c4_205] : memref<9x8x6xf32, #tpu.memory_space<vmem>>, vector<1x8x1xf32>
    %301 = vector.shape_cast %300 : vector<1x8x1xf32> to vector<8x1xf32>
    %c5_206 = arith.constant 5 : index
    %c0_207 = arith.constant 0 : index
    %c5_208 = arith.constant 5 : index
    %302 = vector.load %arg2[%c5_206, %c0_207, %c5_208] : memref<9x8x6xf32, #tpu.memory_space<vmem>>, vector<1x8x1xf32>
    %303 = vector.shape_cast %302 : vector<1x8x1xf32> to vector<8x1xf32>
    %304 = vector.broadcast %301 : vector<8x1xf32> to vector<8x384xf32>
    %305 = arith.mulf %299, %304 : vector<8x384xf32>
    %306 = arith.addf %295, %305 : vector<8x384xf32>
    %307 = vector.broadcast %303 : vector<8x1xf32> to vector<8x384xf32>
    %308 = arith.mulf %299, %307 : vector<8x384xf32>
    %309 = arith.addf %298, %308 : vector<8x384xf32>
    %c0_209 = arith.constant 0 : index
    %c145_210 = arith.constant 145 : index
    %310 = vector.load %arg7[%c0_209, %c145_210] : memref<8x640xf32, #tpu.memory_space<vmem>>, vector<8x384xf32>
    %c6_211 = arith.constant 6 : index
    %c0_212 = arith.constant 0 : index
    %c4_213 = arith.constant 4 : index
    %311 = vector.load %arg2[%c6_211, %c0_212, %c4_213] : memref<9x8x6xf32, #tpu.memory_space<vmem>>, vector<1x8x1xf32>
    %312 = vector.shape_cast %311 : vector<1x8x1xf32> to vector<8x1xf32>
    %c6_214 = arith.constant 6 : index
    %c0_215 = arith.constant 0 : index
    %c5_216 = arith.constant 5 : index
    %313 = vector.load %arg2[%c6_214, %c0_215, %c5_216] : memref<9x8x6xf32, #tpu.memory_space<vmem>>, vector<1x8x1xf32>
    %314 = vector.shape_cast %313 : vector<1x8x1xf32> to vector<8x1xf32>
    %315 = vector.broadcast %312 : vector<8x1xf32> to vector<8x384xf32>
    %316 = arith.mulf %310, %315 : vector<8x384xf32>
    %317 = arith.addf %306, %316 : vector<8x384xf32>
    %318 = vector.broadcast %314 : vector<8x1xf32> to vector<8x384xf32>
    %319 = arith.mulf %310, %318 : vector<8x384xf32>
    %320 = arith.addf %309, %319 : vector<8x384xf32>
    %c0_217 = arith.constant 0 : index
    %c146_218 = arith.constant 146 : index
    %321 = vector.load %arg7[%c0_217, %c146_218] : memref<8x640xf32, #tpu.memory_space<vmem>>, vector<8x384xf32>
    %c7_219 = arith.constant 7 : index
    %c0_220 = arith.constant 0 : index
    %c4_221 = arith.constant 4 : index
    %322 = vector.load %arg2[%c7_219, %c0_220, %c4_221] : memref<9x8x6xf32, #tpu.memory_space<vmem>>, vector<1x8x1xf32>
    %323 = vector.shape_cast %322 : vector<1x8x1xf32> to vector<8x1xf32>
    %c7_222 = arith.constant 7 : index
    %c0_223 = arith.constant 0 : index
    %c5_224 = arith.constant 5 : index
    %324 = vector.load %arg2[%c7_222, %c0_223, %c5_224] : memref<9x8x6xf32, #tpu.memory_space<vmem>>, vector<1x8x1xf32>
    %325 = vector.shape_cast %324 : vector<1x8x1xf32> to vector<8x1xf32>
    %326 = vector.broadcast %323 : vector<8x1xf32> to vector<8x384xf32>
    %327 = arith.mulf %321, %326 : vector<8x384xf32>
    %328 = arith.addf %317, %327 : vector<8x384xf32>
    %329 = vector.broadcast %325 : vector<8x1xf32> to vector<8x384xf32>
    %330 = arith.mulf %321, %329 : vector<8x384xf32>
    %331 = arith.addf %320, %330 : vector<8x384xf32>
    %c0_225 = arith.constant 0 : index
    %c147_226 = arith.constant 147 : index
    %332 = vector.load %arg7[%c0_225, %c147_226] : memref<8x640xf32, #tpu.memory_space<vmem>>, vector<8x384xf32>
    %c8_227 = arith.constant 8 : index
    %c0_228 = arith.constant 0 : index
    %c4_229 = arith.constant 4 : index
    %333 = vector.load %arg2[%c8_227, %c0_228, %c4_229] : memref<9x8x6xf32, #tpu.memory_space<vmem>>, vector<1x8x1xf32>
    %334 = vector.shape_cast %333 : vector<1x8x1xf32> to vector<8x1xf32>
    %c8_230 = arith.constant 8 : index
    %c0_231 = arith.constant 0 : index
    %c5_232 = arith.constant 5 : index
    %335 = vector.load %arg2[%c8_230, %c0_231, %c5_232] : memref<9x8x6xf32, #tpu.memory_space<vmem>>, vector<1x8x1xf32>
    %336 = vector.shape_cast %335 : vector<1x8x1xf32> to vector<8x1xf32>
    %337 = vector.broadcast %334 : vector<8x1xf32> to vector<8x384xf32>
    %338 = arith.mulf %332, %337 : vector<8x384xf32>
    %339 = arith.addf %328, %338 : vector<8x384xf32>
    %340 = vector.broadcast %336 : vector<8x1xf32> to vector<8x384xf32>
    %341 = arith.mulf %332, %340 : vector<8x384xf32>
    %342 = arith.addf %331, %341 : vector<8x384xf32>
    %c0_233 = arith.constant 0 : index
    %c4_234 = arith.constant 4 : index
    %343 = vector.load %arg3[%c0_233, %c4_234] : memref<8x6xf32, #tpu.memory_space<vmem>>, vector<8x1xf32>
    %344 = vector.broadcast %343 : vector<8x1xf32> to vector<8x384xf32>
    %345 = arith.addf %339, %344 : vector<8x384xf32>
    %c0_235 = arith.constant 0 : index
    %c5_236 = arith.constant 5 : index
    %346 = vector.load %arg3[%c0_235, %c5_236] : memref<8x6xf32, #tpu.memory_space<vmem>>, vector<8x1xf32>
    %347 = vector.broadcast %346 : vector<8x1xf32> to vector<8x384xf32>
    %348 = arith.addf %342, %347 : vector<8x384xf32>
    %cst_237 = arith.constant 0.000000e+00 : f32
    %349 = vector.broadcast %cst_237 : f32 to vector<8x384xf32>
    %350 = arith.cmpf oge, %345, %349 : vector<8x384xf32>
    %c0_238 = arith.constant 0 : index
    %c4_239 = arith.constant 4 : index
    %351 = vector.load %arg4[%c0_238, %c4_239] : memref<8x6xf32, #tpu.memory_space<vmem>>, vector<8x1xf32>
    %352 = vector.broadcast %351 : vector<8x1xf32> to vector<8x384xf32>
    %353 = arith.mulf %352, %345 : vector<8x384xf32>
    %354 = arith.select %350, %345, %353 : vector<8x384xi1>, vector<8x384xf32>
    %cst_240 = arith.constant 0.000000e+00 : f32
    %355 = vector.broadcast %cst_240 : f32 to vector<8x384xf32>
    %356 = arith.cmpf oge, %348, %355 : vector<8x384xf32>
    %c0_241 = arith.constant 0 : index
    %c5_242 = arith.constant 5 : index
    %357 = vector.load %arg4[%c0_241, %c5_242] : memref<8x6xf32, #tpu.memory_space<vmem>>, vector<8x1xf32>
    %358 = vector.broadcast %357 : vector<8x1xf32> to vector<8x384xf32>
    %359 = arith.mulf %358, %348 : vector<8x384xf32>
    %360 = arith.select %356, %348, %359 : vector<8x384xi1>, vector<8x384xf32>
    %361 = arith.addf %354, %360 : vector<8x384xf32>
    %362 = vector.broadcast %7 : vector<1x384xf32> to vector<8x384xf32>
    %363 = arith.mulf %361, %362 : vector<8x384xf32>
    %c0_243 = arith.constant 0 : index
    %c128_244 = arith.constant 128 : index
    %364 = vector.load %arg7[%c0_243, %c128_244] : memref<8x640xf32, #tpu.memory_space<vmem>>, vector<8x384xf32>
    tpu.vector_store %arg7[%c0_243, %c128_244], %363 {strides = array<i32>} : memref<8x640xf32, #tpu.memory_space<vmem>>, vector<8x384xf32>,
    %c0_245 = arith.constant 0 : index
    %c128_246 = arith.constant 128 : index
    %365 = vector.load %arg7[%c0_245, %c128_246] : memref<8x640xf32, #tpu.memory_space<vmem>>, vector<8x384xf32>
    %c0_247 = arith.constant 0 : index
    %c0_248 = arith.constant 0 : index
    %c0_249 = arith.constant 0 : index
    %366 = vector.load %arg1[%c0_247, %c0_248, %c0_249] : memref<1x8x384xf32, #tpu.memory_space<vmem>>, vector<1x8x384xf32>
    %367 = vector.shape_cast %366 : vector<1x8x384xf32> to vector<8x384xf32>
    %368 = arith.addf %365, %367 : vector<8x384xf32>
    %c0_250 = arith.constant 0 : index
    %c0_251 = arith.constant 0 : index
    %c0_252 = arith.constant 0 : index
    %369 = vector.load %arg6[%c0_250, %c0_251, %c0_252] : memref<1x8x384xf32, #tpu.memory_space<vmem>>, vector<1x8x384xf32>
    %370 = vector.shape_cast %369 : vector<1x8x384xf32> to vector<8x384xf32>
    %371 = vector.shape_cast %368 : vector<8x384xf32> to vector<1x8x384xf32>
    tpu.vector_store %arg6[%c0_250, %c0_251, %c0_252], %371 {strides = array<i32>} : memref<1x8x384xf32, #tpu.memory_space<vmem>>, vector<1x8x384xf32>,
    return
  }
  func.func @transform_0(%arg0: i32) -> (i32, i32, i32) {
    %c0_i32 = arith.constant 0 : i32
    %c0_i32_0 = arith.constant 0 : i32
    %c0_i32_1 = arith.constant 0 : i32
    return %arg0, %c0_i32, %c0_i32_0 : i32, i32, i32
  }
  func.func @transform_1(%arg0: i32) -> (i32, i32, i32) {
    %c0_i32 = arith.constant 0 : i32
    %c0_i32_0 = arith.constant 0 : i32
    %c0_i32_1 = arith.constant 0 : i32
    %c0_i32_2 = arith.constant 0 : i32
    return %c0_i32, %c0_i32_0, %c0_i32_1 : i32, i32, i32
  }
  func.func @transform_2(%arg0: i32) -> (i32, i32) {
    %c0_i32 = arith.constant 0 : i32
    %c0_i32_0 = arith.constant 0 : i32
    %c0_i32_1 = arith.constant 0 : i32
    return %c0_i32, %c0_i32_0 : i32, i32
  }
  func.func @transform_3(%arg0: i32) -> (i32, i32) {
    %c0_i32 = arith.constant 0 : i32
    %c0_i32_0 = arith.constant 0 : i32
    %c0_i32_1 = arith.constant 0 : i32
    return %c0_i32, %c0_i32_0 : i32, i32
  }
  func.func @transform_4(%arg0: i32) -> (i32, i32) {
    %c0_i32 = arith.constant 0 : i32
    %c0_i32_0 = arith.constant 0 : i32
    %c0_i32_1 = arith.constant 0 : i32
    return %c0_i32, %c0_i32_0 : i32, i32
  }
  func.func @transform_5(%arg0: i32) -> (i32, i32, i32) {
    %c0_i32 = arith.constant 0 : i32
    %c0_i32_0 = arith.constant 0 : i32
    %c0_i32_1 = arith.constant 0 : i32
    return %arg0, %c0_i32, %c0_i32_0 : i32, i32, i32
  }
}

</mosaic_0001>

<bundles_post_ra>
// kernel: tpu_custom_call.1
= control target key start
LH: loop header
LB: loop body
LE: loop exit
PB: predicated region body
PF: predicated region fallthrough
CT: control target
= control target key end

     0   :  { %10 = vsyncpa [#allocation4], 0  ;;  %s4038_s0 = inlined_call_operand.vmem [shape: f32[2,8,384], index: 0, kind: input, shape index: {}]   ;;  %s4039_s1 = inlined_call_operand.vmem [shape: f32[9,8,6], index: 1, kind: input, shape index: {}]   ;;  %s4040_s2 = inlined_call_operand.vmem [shape: f32[8,6], index: 2, kind: input, shape index: {}]   ;;  %s4041_s3 = inlined_call_operand.vmem [shape: f32[8,6], index: 3, kind: input, shape index: {}]   ;;  %s4042_s4 = inlined_call_operand.vmem [shape: f32[1,384], index: 4, kind: input, shape index: {}]   ;;  %s4043_s5 = inlined_call_operand.hbm [shape: f32[2,8,384], index: 5, kind: output, shape index: {}]  }
   0x1   :  { %12 = vsyncpa [#allocation4 + $0x1], 0  ;;  %s2417_s18 = smov 0   ;;  %s2419_s19 = smov 0  }
   0x2   :  { %s2421_s20 = smov 0   ;;  %s2423_s21 = smov 0  }
   0x3 LB: > { %s2438_s22 = sadd.s32 4294967295, %s2369_s21   ;;  %s2187_s23 = sadd.s32 4294967294, %s2369_s21   ;;  %s2369_s21 = sphi %s2423_s21, %s4223_s21   ;;  %s2365_s20 = sphi %s2421_s20, %s4222_s20   ;;  %s2361_s19 = sphi %s2419_s19, %s4221_s19   ;;  %s2357_s18 = sphi %s2417_s18, %s4220_s18  }
   0x4   : > { %s2442_s24 = sadd.s32 1, %s2369_s21   ;;  %s135_s25 = sadd.s32 1, %s2365_s20 }
   0x5   : > { %s132_s26 = ssub.s32 %s2369_s21, %s2442_s24  ;;  %p145_p0 = scmp.ne.s32.totalorder %s2365_s20, %s2361_s19 }
   0x6   : > { %p133_p1 = scmp.eq.s32.totalorder %s132_s26, 0  ;;  %p146_p2 = scmp.eq.s32.totalorder %s2438_s22, 1 }
   0x7   : > { %p151_p3 = scmp.ne.s32.totalorder %s2361_s19, %s2357_s18  ;;  %p152_p4 = scmp.eq.s32.totalorder %s2187_s23, 1 }
   0x8   : > { %s2453_s27 = scalar_select %p133_p1, %s2365_s20, %s135_s25  }
   0x9   : > { %p2455_p5 = por %p146_p2, %p145_p0  ;;  %p2459_p6 = por %p152_p4, %p151_p3 }
   0xa   : > { %p2190_p7 = scmp.ge.s32.totalorder %s2369_s21, 1  ;;  %p190_p8 = scmp.lt.s32.totalorder %s2369_s21, 3 }
   0xc   : > { %p191_p9 = pnand %p2190_p7, %p190_p8 }
   0xe   : > { %194 = sbr.rel (%p191_p9) target bundleno = 1886 (0x75e), region = 40 }
  0x15   : > { %v2468_v0 = vld [vmem:[%s4039_s1 + $0x8] sm:$0xff]  ;;  %v2473_v1 = vld [vmem:[%s4039_s1] sm:$0xff]  ;;  %v2371_v2 = vmov 0   ;;  %v2482_v3 = vld [vmem:[%s4039_s1 + $0x10] sm:$0xff]  ;;  %v2372_v4 = vmov 1   ;;  %p218_p10 = scmp.lt.s32.totalorder %s2438_s22, 1 }
  0x16   : > { %2278 = vset.pattern.permute.xlu1 %v2371_v2  ;;  %2276 = vset.pattern.permute.xlu0 %v2371_v2  ;;  %v2490_v5 = vld [vmem:[%s4039_s1 + $0x18] sm:$0xff]  ;;  %v2497_v6 = vld [vmem:[%s4039_s1 + $0x20] sm:$0xff]  ;;  %v2507_v7 = vld [vmem:[%s4039_s1 + $0x28] sm:$0xff]  ;;  %s2373_s10 = smov 127   ;;  %s2374_s11 = smov 126   ;;  %vm277_vm0 = vcmask 1039360  }
  0x17   : > { %258 = vperm.xlu1 %2278, %v2468_v0   ;;  %239 = vperm.xlu0 %2276, %v2473_v1   ;;  %4107 = vst [vmem:[#allocation6_spill] sm:$0xff] %v2507_v7  ;;  %v2514_v8 = vld [vmem:[%s4039_s1 + $0x30] sm:$0xff]  ;;  %v2521_v9 = vld [vmem:[%s4039_s1 + $0x38] sm:$0xff]  ;;  %s219_s30 = scalar_select %p218_p10, %s2438_s22, 1  ;;  %vm343_vm1 = vcmask 1031168   ;;  %vm409_vm2 = vcmask 900096  }
  0x18   : > { %4108 = vst [vmem:[#allocation7_spill] sm:$0xff] %v2514_v8  ;;  %4109 = vst [vmem:[#allocation8_spill] sm:$0xff] %v2521_v9  ;;  %s2375_s12 = smov 110   ;;  %s2376_s13 = smov 109   ;;  %vm471_vm3 = vcmask 891904   ;;  %vm535_vm4 = vcmask 883712  }
  0x19   : > { %s2220_s6 = smul.u32 24, %s219_s30  ;;  %s2377_s14 = smov 108   ;;  %vm601_vm5 = vcmask 752640   ;;  %vm667_vm6 = vcmask 744448   ;;  %vm733_vm7 = vcmask 736256  }
  0x1a   : > { %s2378_s15 = smov 92   ;;  %s2379_s16 = smov 91  }
  0x1b   : > { %324 = vperm.xlu1 %2278, %v2482_v3   ;;  %2277 = vset.pattern.permute.xlu0 %v2372_v4  ;;  %s2531_s9 = scalar_lea.vmem %s4038_s0, %s2220_s6  ;;  %s2380_s25 = smov 90  }
  0x1c   : > { %247 = vperm.xlu0 %2277, %v2473_v1   ;;  %v2534_v10 = vld [vmem:[%s2531_s9 + $0x8] sm:$0xff]  ;;  %v2540_v15 = vld [vmem:[%s2531_s9] sm:$0xff]  ;;  %v2548_v18 = vld [vmem:[%s2531_s9 + $0x10] sm:$0xff]  ;;  %s2383_s23 = smov 19  }
  0x1d   : > { %4110 = vst [vmem:[#allocation9_spill] sm:$0xff] %v2540_v15  ;;  %4111 = vst [vmem:[#allocation10_spill] sm:$0xff] %v2548_v18 }
  0x1f   : > { %390 = vperm.xlu1 %2278, %v2490_v5  }
  0x20   : > { %290 = vperm.xlu0 %2277, %v2468_v0  }
  0x23   : > { %456 = vperm.xlu1 %2278, %v2497_v6  }
  0x24   : > { %356 = vperm.xlu0 %2277, %v2482_v3  }
  0x27   : > { %2279 = vset.pattern.permute.xlu1 %v2372_v4 }
  0x28   : > { %422 = vperm.xlu0 %2277, %v2490_v5   ;;  %483 = vperm.xlu1 %2279, %v2497_v6  }
  0x2c   : > { %548 = vperm.xlu0 %2277, %v2507_v7   ;;  %2280 = vset.pattern.permute.xlu1 %v2371_v2 }
  0x2d   : > { %516 = vperm.xlu1 %2280, %v2507_v7  }
  0x30   : > { %614 = vperm.xlu0 %2277, %v2514_v8  }
  0x31   : > { %582 = vperm.xlu1 %2280, %v2514_v8  }
  0x34   : > { %680 = vperm.xlu0 %2277, %v2521_v9  }
  0x35   : > { %648 = vperm.xlu1 %2280, %v2521_v9  }
  0x96   : > { %v259_v11 = vpop.permute.xlu1 %258  ;;  %v2536_v12 = vpop.permute.xlu0 %239 }
  0x97   : > { %v261_v13 = vmul.f32 0.0, %v259_v11  ;;  %v263_v14 = vmul.f32 %v259_v11, %v2534_v10  ;;  %v262_v17 = vmul.f32 %v259_v11, %v2540_v15  ;;  %v264_v20 = vmul.f32 %v259_v11, %v2548_v18 }
  0x99   : > { %269 = vrot.lane.b32.xlu1 %v261_v13, %s2373_s10  ;;  %273 = vrot.lane.b32.xlu0 %v263_v14, %s2373_s10 }
  0x9a   : > { %v325_v24 = vpop.permute.xlu1 %324 }
  0x9b   : > { %v2544_v16 = vpop.permute.xlu0 %247  ;;  %v327_v26 = vmul.f32 0.0, %v325_v24  ;;  %v328_v27 = vmul.f32 %v325_v24, %v2540_v15  ;;  %v329_v28 = vmul.f32 %v325_v24, %v2534_v10  ;;  %v330_v30 = vmul.f32 %v325_v24, %v2548_v18 }
  0x9d   : > { %271 = vrot.lane.b32.xlu1 %v262_v17, %s2373_s10 }
  0x9e   : > { %v391_v34 = vpop.permute.xlu1 %390 }
  0x9f   : > { %v291_v19 = vpop.permute.xlu0 %290  ;;  %v393_v36 = vmul.f32 0.0, %v391_v34  ;;  %v394_v37 = vmul.f32 %v391_v34, %v2540_v15  ;;  %v395_v38 = vmul.f32 %v391_v34, %v2534_v10  ;;  %v396_v40 = vmul.f32 %v391_v34, %v2548_v18 }
  0xa0   : > { %v294_v21 = vmul.f32 %v291_v19, %v2540_v15  ;;  %v293_v22 = vmul.f32 0.0, %v291_v19  ;;  %v296_v23 = vmul.f32 %v291_v19, %v2548_v18  ;;  %v295_v25 = vmul.f32 %v291_v19, %v2534_v10 }
  0xa1   : > { %275 = vrot.lane.b32.xlu1 %v264_v20, %s2373_s10 }
  0xa2   : > { %303 = vrot.lane.b32.xlu0 %v294_v21, %s2373_s10  ;;  %v457_v44 = vpop.permute.xlu1 %456 }
  0xa3   : > { %v357_v29 = vpop.permute.xlu0 %356  ;;  %v459_v46 = vmul.f32 %v457_v44, %v2540_v15  ;;  %v460_v48 = vmul.f32 %v457_v44, %v2534_v10  ;;  %v461_v49 = vmul.f32 %v457_v44, %v2548_v18 }
  0xa4   : > { %v360_v31 = vmul.f32 %v357_v29, %v2540_v15  ;;  %v359_v32 = vmul.f32 0.0, %v357_v29  ;;  %v362_v33 = vmul.f32 %v357_v29, %v2548_v18  ;;  %v361_v35 = vmul.f32 %v357_v29, %v2534_v10 }
  0xa5   : > { %301 = vrot.lane.b32.xlu1 %v293_v22, %s2373_s10 }
  0xa6   : > { %307 = vrot.lane.b32.xlu0 %v296_v23, %s2373_s10 }
  0xa7   : > { %v423_v39 = vpop.permute.xlu0 %422  ;;  %v484_v47 = vpop.permute.xlu1 %483 }
  0xa8   : > { %v426_v41 = vmul.f32 %v423_v39, %v2540_v15  ;;  %v425_v42 = vmul.f32 0.0, %v423_v39  ;;  %v428_v43 = vmul.f32 %v423_v39, %v2548_v18  ;;  %v427_v45 = vmul.f32 %v423_v39, %v2534_v10 }
  0xa9   : > { %305 = vrot.lane.b32.xlu1 %v295_v25, %s2373_s10  ;;  %v487_v50 = vmul.f32 %v484_v47, %v2534_v10  ;;  %v486_v52 = vmul.f32 %v484_v47, %v2540_v15  ;;  %v488_v54 = vmul.f32 %v484_v47, %v2548_v18 }
  0xaa   : > { %335 = vrot.lane.b32.xlu0 %v327_v26, %s2374_s11 }
  0xab   : > { %v549_v56 = vpop.permute.xlu0 %548 }
  0xac   : > { %v517_v51 = vpop.permute.xlu1 %516  ;;  %v551_v58 = vmul.f32 %v549_v56, %v2540_v15  ;;  %v553_v60 = vmul.f32 %v549_v56, %v2548_v18  ;;  %v552_v61 = vmul.f32 %v549_v56, %v2534_v10  ;;  %v554_v11 = vmul.f32 0.0, %v549_v56 }
  0xad   : > { %337 = vrot.lane.b32.xlu1 %v328_v27, %s2374_s11  ;;  %v520_v53 = vmul.f32 %v517_v51, %v2534_v10  ;;  %v522_v55 = vmul.f32 0.0, %v517_v51  ;;  %v519_v57 = vmul.f32 %v517_v51, %v2540_v15  ;;  %v521_v59 = vmul.f32 %v517_v51, %v2548_v18 }
  0xae   : > { %339 = vrot.lane.b32.xlu0 %v329_v28, %s2374_s11 }
  0xaf   : > { %v615_v14 = vpop.permute.xlu0 %614 }
  0xb0   : > { %v583_v62 = vpop.permute.xlu1 %582  ;;  %v617_v19 = vmul.f32 %v615_v14, %v2540_v15  ;;  %v619_v21 = vmul.f32 %v615_v14, %v2548_v18  ;;  %v618_v23 = vmul.f32 %v615_v14, %v2534_v10  ;;  %v620_v25 = vmul.f32 0.0, %v615_v14 }
  0xb1   : > { %341 = vrot.lane.b32.xlu1 %v330_v30, %s2374_s11  ;;  %v586_v63 = vmul.f32 %v583_v62, %v2534_v10  ;;  %v588_v13 = vmul.f32 0.0, %v583_v62  ;;  %v585_v17 = vmul.f32 %v583_v62, %v2540_v15  ;;  %v587_v20 = vmul.f32 %v583_v62, %v2548_v18 }
  0xb2   : > { %369 = vrot.lane.b32.xlu0 %v360_v31, %s2374_s11  ;;  %v833_v14 = vlaneseq }
  0xb3   : > { %v681_v27 = vpop.permute.xlu0 %680 }
  0xb4   : > { %v649_v22 = vpop.permute.xlu1 %648  ;;  %v683_v29 = vmul.f32 %v681_v27, %v2540_v15  ;;  %v685_v31 = vmul.f32 %v681_v27, %v2548_v18  ;;  %v686_v34 = vmul.f32 0.0, %v681_v27 }
  0xb5   : > { %367 = vrot.lane.b32.xlu1 %v359_v32, %s2374_s11  ;;  %v652_v24 = vmul.f32 %v649_v22, %v2534_v10  ;;  %v654_v26 = vmul.f32 0.0, %v649_v22  ;;  %v651_v28 = vmul.f32 %v649_v22, %v2540_v15  ;;  %v653_v30 = vmul.f32 %v649_v22, %v2548_v18 }
  0xb6   : > { %373 = vrot.lane.b32.xlu0 %v362_v33, %s2374_s11  ;;  %v684_v32 = vmul.f32 %v681_v27, %v2534_v10  ;;  %v2644_v33 = vld [vmem:[%s4039_s1 + $0x40] sm:$0xff] }
  0xb7   : > { %4112 = vst [vmem:[#allocation11_spill] sm:$0xff] %v2644_v33  ;;  %v2731_v27 = vld [vmem:[%s4041_s3] sm:$0xff] }
  0xb8   : > { %4123 = vst [vmem:[#allocation22_spill] sm:$0xff] %v2731_v27 }
  0xb9   : > { %371 = vrot.lane.b32.xlu1 %v361_v35, %s2374_s11 }
  0xba   : > { %401 = vrot.lane.b32.xlu0 %v393_v36, %s2375_s12 }
  0xbd   : > { %403 = vrot.lane.b32.xlu1 %v394_v37, %s2375_s12 }
  0xbe   : > { %405 = vrot.lane.b32.xlu0 %v395_v38, %s2375_s12 }
  0xc1   : > { %407 = vrot.lane.b32.xlu1 %v396_v40, %s2375_s12 }
  0xc2   : > { %435 = vrot.lane.b32.xlu0 %v426_v41, %s2375_s12 }
  0xc5   : > { %433 = vrot.lane.b32.xlu1 %v425_v42, %s2375_s12 }
  0xc6   : > { %439 = vrot.lane.b32.xlu0 %v428_v43, %s2375_s12 }
  0xc9   : > { %437 = vrot.lane.b32.xlu1 %v427_v45, %s2375_s12 }
  0xca   : > { %465 = vrot.lane.b32.xlu0 %v459_v46, %s2376_s13 }
  0xcd   : > { %467 = vrot.lane.b32.xlu1 %v460_v48, %s2376_s13 }
  0xce   : > { %469 = vrot.lane.b32.xlu0 %v461_v49, %s2376_s13 }
  0xd1   : > { %494 = vrot.lane.b32.xlu1 %v487_v50, %s2376_s13 }
  0xd2   : > { %492 = vrot.lane.b32.xlu0 %v486_v52, %s2376_s13 }
  0xd5   : > { %529 = vrot.lane.b32.xlu1 %v520_v53, %s2377_s14 }
  0xd6   : > { %496 = vrot.lane.b32.xlu0 %v488_v54, %s2376_s13 }
  0xd9   : > { %533 = vrot.lane.b32.xlu1 %v522_v55, %s2377_s14 }
  0xda   : > { %527 = vrot.lane.b32.xlu0 %v519_v57, %s2377_s14 }
  0xdd   : > { %559 = vrot.lane.b32.xlu1 %v551_v58, %s2377_s14 }
  0xde   : > { %531 = vrot.lane.b32.xlu0 %v521_v59, %s2377_s14 }
  0xe1   : > { %563 = vrot.lane.b32.xlu1 %v553_v60, %s2377_s14 }
  0xe2   : > { %561 = vrot.lane.b32.xlu0 %v552_v61, %s2377_s14 }
  0xe5   : > { %595 = vrot.lane.b32.xlu1 %v586_v63, %s2378_s15 }
  0xe6   : > { %565 = vrot.lane.b32.xlu0 %v554_v11, %s2377_s14 }
  0xe9   : > { %599 = vrot.lane.b32.xlu1 %v588_v13, %s2378_s15 }
  0xea   : > { %593 = vrot.lane.b32.xlu0 %v585_v17, %s2378_s15 }
  0xed   : > { %625 = vrot.lane.b32.xlu1 %v617_v19, %s2378_s15 }
  0xee   : > { %597 = vrot.lane.b32.xlu0 %v587_v20, %s2378_s15  ;;  %v834_v20 = vshrl.u32 %v833_v14, 7 }
  0xf1   : > { %629 = vrot.lane.b32.xlu1 %v619_v21, %s2378_s15 }
  0xf2   : > { %627 = vrot.lane.b32.xlu0 %v618_v23, %s2378_s15  ;;  %v2722_v23 = vld [vmem:[%s4040_s2] sm:$0xff] }
  0xf3   : > { %4121 = vst [vmem:[#allocation20_spill] sm:$0xff] %v2722_v23 }
  0xf5   : > { %661 = vrot.lane.b32.xlu1 %v652_v24, %s2379_s16  ;;  %v835_v24 = vsub.s32 0, %v834_v20 }
  0xf6   : > { %631 = vrot.lane.b32.xlu0 %v620_v25, %s2378_s15 }
  0xf9   : > { %665 = vrot.lane.b32.xlu1 %v654_v26, %s2379_s16 }
  0xfa   : > { %659 = vrot.lane.b32.xlu0 %v651_v28, %s2379_s16  ;;  %v231_v28 = vld [vmem:[%s4042_s4] sm:$0x7] }
  0xfd   : > { %691 = vrot.lane.b32.xlu1 %v683_v29, %s2379_s16  ;;  %v836_v29 = vrot.slane %v231_v28, %v835_v24 }
  0xfe   : > { %663 = vrot.lane.b32.xlu0 %v653_v30, %s2379_s16  ;;  %v843_v30 = vsub.s32 2, %v834_v20 }
 0x101   : > { %695 = vrot.lane.b32.xlu1 %v685_v31, %s2379_s16 }
 0x102   : > { %693 = vrot.lane.b32.xlu0 %v684_v32, %s2379_s16  ;;  %v839_v32 = vsub.s32 1, %v834_v20 }
 0x105   : > { %714 = vperm.xlu1 %2280, %v2644_v33  }
 0x106   : > { %697 = vrot.lane.b32.xlu0 %v686_v34, %s2379_s16  ;;  %v844_v34 = vrot.slane %v231_v28, %v843_v30 }
 0x109   : > { %2281 = vset.pattern.permute.xlu1 %v2372_v4 }
 0x10a   : > { %746 = vperm.xlu1 %2281, %v2644_v33  }
 0x10b   : > { %v2650_v35 = vpop.permute.xlu1 %269  ;;  %v2716_v21 = vpop.permute.xlu0 %273 }
 0x10e   : > { %2282 = vset.pattern.permute.xlu1 %v2371_v2 }
 0x10f   : > { %v2653_v36 = vpop.permute.xlu1 %271 }
 0x113   : > { %v2655_v37 = vpop.permute.xlu1 %275 }
 0x114   : > { %v2726_v25 = vpop.permute.xlu0 %303 }
 0x115   : > { %4122 = vst [vmem:[#allocation21_spill] sm:$0xff] %v2726_v25 }
 0x117   : > { %v2657_v38 = vpop.permute.xlu1 %301 }
 0x118   : > { %v2738_v31 = vpop.permute.xlu0 %307 }
 0x11b   : > { %v2659_v39 = vpop.permute.xlu1 %305 }
 0x11c   : > { %4113 = vst [vmem:[#allocation12_spill] sm:$0xff] %v2659_v39 }
 0x11f   : > { %v2661_v40 = vpop.permute.xlu1 %337 }
 0x120   : > { %4114 = vst [vmem:[#allocation13_spill] sm:$0xff] %v2661_v40 }
 0x123   : > { %v2663_v41 = vpop.permute.xlu1 %341 }
 0x127   : > { %v2665_v42 = vpop.permute.xlu1 %367 }
 0x12b   : > { %v2667_v4 = vpop.permute.xlu1 %371 }
 0x12f   : > { %v2669_v43 = vpop.permute.xlu1 %403 }
 0x133   : > { %v2671_v44 = vpop.permute.xlu1 %407 }
 0x137   : > { %v2673_v2 = vpop.permute.xlu1 %433 }
 0x13b   : > { %v2675_v45 = vpop.permute.xlu1 %437 }
 0x13f   : > { %v2677_v46 = vpop.permute.xlu1 %467 }
 0x143   : > { %v2679_v47 = vpop.permute.xlu1 %494 }
 0x147   : > { %v2681_v48 = vpop.permute.xlu1 %529 }
 0x14b   : > { %v2683_v49 = vpop.permute.xlu1 %533 }
 0x14c   : > { %4115 = vst [vmem:[#allocation14_spill] sm:$0xff] %v2683_v49 }
 0x14f   : > { %v2685_v50 = vpop.permute.xlu1 %559 }
 0x153   : > { %v2687_v51 = vpop.permute.xlu1 %563 }
 0x157   : > { %v2689_v52 = vpop.permute.xlu1 %595 }
 0x158   : > { %4116 = vst [vmem:[#allocation15_spill] sm:$0xff] %v2689_v52 }
 0x15b   : > { %v2691_v53 = vpop.permute.xlu1 %599 }
 0x15c   : > { %4117 = vst [vmem:[#allocation16_spill] sm:$0xff] %v2691_v53 }
 0x15f   : > { %v2693_v54 = vpop.permute.xlu1 %625 }
 0x163   : > { %v2695_v55 = vpop.permute.xlu1 %629 }
 0x167   : > { %v2697_v56 = vpop.permute.xlu1 %661 }
 0x168   : > { %4118 = vst [vmem:[#allocation17_spill] sm:$0xff] %v2697_v56 }
 0x16b   : > { %v2699_v57 = vpop.permute.xlu1 %665 }
 0x16c   : > { %4119 = vst [vmem:[#allocation18_spill] sm:$0xff] %v2699_v57 }
 0x16f   : > { %v2701_v58 = vpop.permute.xlu1 %691 }
 0x170   : > { %4120 = vst [vmem:[#allocation19_spill] sm:$0xff] %v2701_v58 }
 0x173   : > { %v2703_v59 = vpop.permute.xlu1 %695 }
 0x184   : > { %v715_v60 = vpop.permute.xlu1 %714 }
 0x185   : > { %v719_v61 = vmul.f32 %v715_v60, %v2548_v18  ;;  %v717_v62 = vmul.f32 %v715_v60, %v2540_v15  ;;  %v718_v11 = vmul.f32 %v715_v60, %v2534_v10  ;;  %v720_v17 = vmul.f32 0.0, %v715_v60 }
 0x186   : > { %v4044_v60 = vmov 3  }
 0x187   : > { %729 = vrot.lane.b32.xlu1 %v719_v61, %s2380_s25  ;;  %725 = vrot.lane.b32.xlu0 %v717_v62, %s2380_s25  ;;  %v840_v61 = vrot.slane %v231_v28, %v839_v32  ;;  %v2745_v62 = vpop.permute.xlu0 %335 }
 0x189   : > { %v747_v63 = vpop.permute.xlu1 %746 }
 0x18a   : > { %v749_v13 = vmul.f32 %v747_v63, %v2540_v15  ;;  %v751_v19 = vmul.f32 %v747_v63, %v2548_v18  ;;  %v750_v22 = vmul.f32 %v747_v63, %v2534_v10  ;;  %v752_v26 = vmul.f32 0.0, %v747_v63 }
 0x18b   : > { %727 = vrot.lane.b32.xlu0 %v718_v11, %s2380_s25  ;;  %v2750_v63 = vpop.permute.xlu0 %339  ;;  %v4046_v11 = vmov 2  }
 0x18c   : > { %757 = vrot.lane.b32.xlu1 %v749_v13, %s2380_s25 }
 0x18f   : > { %731 = vrot.lane.b32.xlu0 %v720_v17, %s2380_s25  ;;  %v2754_v13 = vpop.permute.xlu0 %369 }
 0x190   : > { %761 = vrot.lane.b32.xlu1 %v751_v19, %s2380_s25  ;;  %4124 = vst [vmem:[#allocation23_spill] sm:$0xff] %v2754_v13 }
 0x193   : > { %759 = vrot.lane.b32.xlu0 %v750_v22, %s2380_s25  ;;  %v2756_v14 = vpop.permute.xlu0 %373 }
 0x194   : > { %779 = vperm.xlu1 %2282, %v2722_v23  }
 0x197   : > { %763 = vrot.lane.b32.xlu0 %v752_v26, %s2380_s25  ;;  %v402_v17 = vpop.permute.xlu0 %401 }
 0x198   : > { %801 = vperm.xlu1 %2282, %v2731_v27  }
 0x19b   : > { %787 = vperm.xlu0 %2277, %v2722_v23   ;;  %v2758_v19 = vpop.permute.xlu0 %405 }
 0x19c   : > { %845 = vrot.lane.b32.xlu1 %v836_v29, %s2376_s13 }
 0x19d   : > { %2283 = vset.pattern.permute.xlu1 %v4044_v60 }
 0x19f   : > { %817 = vperm.xlu0 %2277, %v2731_v27   ;;  %v2760_v20 = vpop.permute.xlu0 %435 }
 0x1a0   : > { %849 = vrot.lane.b32.xlu1 %v844_v34, %s2376_s13  ;;  %4125 = vst [vmem:[#allocation24_spill] sm:$0xff] %v2760_v20 }
 0x1a3   : > { %847 = vrot.lane.b32.xlu0 %v840_v61, %s2376_s13  ;;  %v2762_v22 = vpop.permute.xlu0 %439 }
 0x1a4   : > { %898 = vperm.xlu1 %2283, %v2473_v1   ;;  %2285 = vset.pattern.permute.xlu0 %v4044_v60 }
 0x1a7   : > { %v2764_v24 = vpop.permute.xlu0 %465 }
 0x1a8   : > { %2284 = vset.pattern.permute.xlu1 %v4046_v11 }
 0x1a9   : > { %908 = vperm.xlu1 %2284, %v2468_v0  }
 0x1ab   : > { %v2766_v26 = vpop.permute.xlu0 %469 }
 0x1af   : > { %v2768_v28 = vpop.permute.xlu0 %492 }
 0x1b3   : > { %v2770_v29 = vpop.permute.xlu0 %496 }
 0x1b7   : > { %v2772_v30 = vpop.permute.xlu0 %527 }
 0x1bb   : > { %v2774_v32 = vpop.permute.xlu0 %531 }
 0x1bf   : > { %v2776_v34 = vpop.permute.xlu0 %561 }
 0x1c3   : > { %v2778_v61 = vpop.permute.xlu0 %565 }
 0x1c4   : > { %4126 = vst [vmem:[#allocation25_spill] sm:$0xff] %v2778_v61 }
 0x1c7   : > { %v2780_v60 = vpop.permute.xlu0 %593 }
 0x1c8   : > { %4127 = vst [vmem:[#allocation26_spill] sm:$0xff] %v2780_v60 }
 0x1cb   : > { %v2784_v27 = vpop.permute.xlu0 %597 }
 0x1cf   : > { %v2788_v53 = vpop.permute.xlu0 %627 }
 0x1d3   : > { %v2792_v15 = vpop.permute.xlu0 %631 }
 0x1d4   : > { %4131 = vst [vmem:[#allocation30_spill] sm:$0xff] %v2792_v15 }
 0x1d7   : > { %v2798_v7 = vpop.permute.xlu0 %659 }
 0x1d8   : > { %4134 = vst [vmem:[#allocation33_spill] sm:$0xff] %v2798_v7 }
 0x1db   : > { %v2802_v9 = vpop.permute.xlu0 %663 }
 0x1df   : > { %v2808_v56 = vpop.permute.xlu0 %693 }
 0x1e0   : > { %4138 = vst [vmem:[#allocation37_spill] sm:$0xff] %v2808_v56 }
 0x1f9   : > { %v2782_v11 = vpop.permute.xlu1 %729 }
 0x1fa   : > { %4128 = vst [vmem:[#allocation27_spill] sm:$0xff] %v2782_v11 }
 0x1fe   : > { %v2786_v57 = vpop.permute.xlu1 %757 }
 0x1ff   : > { %4129 = vst [vmem:[#allocation28_spill] sm:$0xff] %v2786_v57 }
 0x202   : > { %v2790_v49 = vpop.permute.xlu1 %761 }
 0x203   : > { %4130 = vst [vmem:[#allocation29_spill] sm:$0xff] %v2790_v49  ;;  %v2813_v49 = vpop.permute.xlu0 %697 }
 0x204   : > { %4140 = vst [vmem:[#allocation39_spill] sm:$0xff] %v2813_v49 }
 0x213   : > { %v2794_v18 = vpop.permute.xlu1 %779 }
 0x214   : > { %4132 = vst [vmem:[#allocation31_spill] sm:$0xff] %v2794_v18  ;;  %v4143_v18 = vmov 3  }
 0x217   : > { %v2796_v33 = vpop.permute.xlu1 %801 }
 0x218   : > { %4133 = vst [vmem:[#allocation32_spill] sm:$0xff] %v2796_v33  ;;  %v2816_v33 = vpop.permute.xlu0 %725 }
 0x21b   : > { %v2800_v61 = vpop.permute.xlu1 %845 }
 0x21c   : > { %4135 = vst [vmem:[#allocation34_spill] sm:$0xff] %v2800_v61  ;;  %v4141_v61 = vmov 2  }
 0x21f   : > { %v2804_v23 = vpop.permute.xlu1 %849 }
 0x220   : > { %4136 = vst [vmem:[#allocation35_spill] sm:$0xff] %v2804_v23  ;;  %v2821_v23 = vpop.permute.xlu0 %727 }
 0x223   : > { %v2806_v11 = vpop.permute.xlu1 %898 }
 0x224   : > { %4137 = vst [vmem:[#allocation36_spill] sm:$0xff] %v2806_v11  ;;  %v2824_v11 = vpop.permute.xlu0 %731 }
 0x225   : > { %4142 = vst [vmem:[#allocation40_spill] sm:$0xff] %v2824_v11 }
 0x228   : > { %v2810_v8 = vpop.permute.xlu1 %908  ;;  %v2838_v11 = vpop.permute.xlu0 %759 }
 0x229   : > { %4139 = vst [vmem:[#allocation38_spill] sm:$0xff] %v2810_v8  ;;  %v911_v15 = vmul.f32 0.0, %v2810_v8  ;;  %v375_v8 = vsel %vm343_vm1, %v2665_v42, %v2754_v13  ;;  %4144 = vst [vmem:[#allocation41_spill] sm:$0xff] %v2838_v11  ;;  %v441_v42 = vsel %vm409_vm2, %v2673_v2, %v2760_v20 }
 0x22b   : > { %919 = vrot.lane.b32.xlu0 %v911_v15, %s2373_s10  ;;  %v309_v15 = vsel %vm277_vm0, %v2657_v38, %v2726_v25  ;;  %v311_v38 = vsel %vm277_vm0, %v2659_v39, %v2738_v31  ;;  %v244_v39 = vmul.f32 %v2536_v12, %v2534_v10 }
 0x22f   : > { %939 = vperm.xlu0 %2285, %v2468_v0   ;;  %v250_v0 = vmul.f32 0.0, %v2544_v16 }
 0x231   : > { %v316_v49 = vadd.f32 %v309_v15, %v250_v0  ;;  %v280_v15 = vsel %vm277_vm0, %v2716_v21, %v2655_v37  ;;  %v252_v0 = vmul.f32 %v2544_v16, %v2534_v10  ;;  %v443_v10 = vsel %vm409_vm2, %v2675_v45, %v2762_v22 }
 0x233   : > { %2286 = vset.pattern.permute.xlu0 %v4141_v61  ;;  %v382_v25 = vadd.f32 %v375_v8, %v316_v49  ;;  %v318_v2 = vadd.f32 %v311_v38, %v252_v0  ;;  %v287_v8 = vadd.f32 %v280_v15, %v244_v39  ;;  %v2871_v49 = vpop.permute.xlu0 %763  ;;  %v499_v39 = vsel %vm471_vm3, %v2679_v47, %v2770_v29 }
 0x234   : > { %890 = vperm.xlu0 %2286, %v2473_v1   ;;  %v278_v1 = vsel %vm277_vm0, %v2650_v35, %v2653_v36  ;;  %v344_v35 = vsel %vm343_vm1, %v2745_v62, %v2661_v40  ;;  %v377_v62 = vsel %vm343_vm1, %v2667_v4, %v2756_v14  ;;  %v410_v40 = vsel %vm409_vm2, %v402_v17, %v2669_v43 }
 0x235   : > { %v448_v20 = vadd.f32 %v441_v42, %v382_v25  ;;  %v384_v17 = vadd.f32 %v377_v62, %v318_v2 }
 0x237   : > { %v504_v25 = vadd.f32 %v2768_v28, %v448_v20  ;;  %v450_v42 = vadd.f32 %v443_v10, %v384_v17  ;;  %v568_v20 = vsel %vm535_vm4, %v2776_v34, %v2687_v51  ;;  %v2889_v62 = vpop.permute.xlu0 %787  ;;  %v634_v17 = vsel %vm601_vm5, %v2788_v53, %v2695_v55 }
 0x238   : > { %972 = vperm.xlu0 %2286, %v2482_v3  }
 0x239   : > { %v506_v2 = vadd.f32 %v499_v39, %v450_v42  ;;  %v603_v39 = vsel %vm601_vm5, %v2689_v52, %v2784_v27  ;;  %v700_v42 = vsel %vm667_vm6, %v2808_v56, %v2703_v59  ;;  %v4149_v56 = vld [vmem:[#allocation31_spill] sm:$0xff]  ;;  %v4150_v52 = vld [vmem:[#allocation20_spill] sm:$0xff] }
 0x23c   : > { %2287 = vset.pattern.permute.xlu0 %v4143_v18 }
 0x23d   : > { %1003 = vperm.xlu0 %2287, %v2482_v3   ;;  %v242_v3 = vmul.f32 0.0, %v2536_v12 }
 0x23f   : > { %v285_v13 = vadd.f32 %v278_v1, %v242_v3  ;;  %v346_v3 = vsel %vm343_vm1, %v2750_v63, %v2663_v41 }
 0x241   : > { %2288 = vset.pattern.permute.xlu0 %v4141_v61  ;;  %v351_v1 = vadd.f32 %v344_v35, %v285_v13  ;;  %v412_v13 = vsel %vm409_vm2, %v2758_v19, %v2671_v44  ;;  %v353_v35 = vadd.f32 %v346_v3, %v287_v8  ;;  %v537_v3 = vsel %vm535_vm4, %v2681_v48, %v2774_v32 }
 0x242   : > { %1036 = vperm.xlu0 %2288, %v2490_v5  }
 0x243   : > { %v417_v38 = vadd.f32 %v410_v40, %v351_v1  ;;  %v574_v40 = vadd.f32 %v2685_v50, %v504_v25  ;;  %v419_v0 = vadd.f32 %v412_v13, %v353_v35 }
 0x245   : > { %v478_v15 = vadd.f32 %v2764_v24, %v417_v38  ;;  %v640_v8 = vadd.f32 %v2693_v54, %v574_v40  ;;  %v576_v38 = vadd.f32 %v568_v20, %v506_v2  ;;  %v4146_v20 = vld [vmem:[#allocation17_spill] sm:$0xff] }
 0x246   : > { %2289 = vset.pattern.permute.xlu0 %v4143_v18  ;;  %v669_v2 = vsel %vm667_vm6, %v4146_v20, %v2802_v9 }
 0x247   : > { %1067 = vperm.xlu0 %2289, %v2490_v5   ;;  %v473_v5 = vsel %vm471_vm3, %v2677_v46, %v2766_v26  ;;  %v543_v1 = vadd.f32 %v2772_v30, %v478_v15  ;;  %v706_v25 = vadd.f32 %v2701_v58, %v640_v8  ;;  %v642_v15 = vadd.f32 %v634_v17, %v576_v38  ;;  %v2918_v8 = vpop.permute.xlu0 %817 }
 0x248   : > { %v480_v10 = vadd.f32 %v473_v5, %v419_v0  ;;  %v4145_v0 = vld [vmem:[#allocation7_spill] sm:$0xff] }
 0x249   : > { %v609_v13 = vadd.f32 %v2780_v60, %v543_v1  ;;  %v772_v40 = vadd.f32 %v2786_v57, %v706_v25  ;;  %v4147_v1 = vld [vmem:[#allocation29_spill] sm:$0xff]  ;;  %v708_v58 = vadd.f32 %v700_v42, %v642_v15 }
 0x24a   : > { %v545_v35 = vadd.f32 %v537_v3, %v480_v10  ;;  %v766_v3 = vsel %vm733_vm7, %v2838_v11, %v4147_v1  ;;  %v4151_v1 = vld [vmem:[#allocation32_spill] sm:$0xff] }
 0x24b   : > { %2290 = vset.pattern.permute.xlu0 %v4141_v61  ;;  %v675_v5 = vadd.f32 %v2798_v7, %v609_v13  ;;  %v790_v38 = vadd.f32 %v2889_v62, %v772_v40  ;;  %v4148_v13 = vld [vmem:[#allocation27_spill] sm:$0xff]  ;;  %v774_v7 = vadd.f32 %v766_v3, %v708_v58  ;;  %v2935_v3 = vpop.permute.xlu0 %847 }
 0x24c   : > { %1100 = vperm.xlu0 %2290, %v2497_v6   ;;  %v611_v10 = vadd.f32 %v603_v39, %v545_v35  ;;  %v735_v25 = vsel %vm733_vm7, %v2821_v23, %v4148_v13 }
 0x24d   : > { %v741_v17 = vadd.f32 %v2816_v33, %v675_v5  ;;  %v820_v60 = vmul.f32 %v2918_v8, %v790_v38  ;;  %v792_v39 = vadd.f32 %v2889_v62, %v774_v7  ;;  %vm812_vm8 = vcmp.ge.f32.partialorder %v790_v38, 0.0  ;;  %v4152_v7 = vld [vmem:[#allocation8_spill] sm:$0xff] }
 0x24e   : > { %v677_v57 = vadd.f32 %v669_v2, %v611_v10 }
 0x24f   : > { %v782_v20 = vadd.f32 %v4149_v56, %v741_v17  ;;  %v822_v15 = vmul.f32 %v2918_v8, %v792_v39  ;;  %v824_v5 = vsel %vm812_vm8, %v790_v38, %v820_v60  ;;  %vm814_vm10 = vcmp.ge.f32.partialorder %v792_v39, 0.0  ;;  %v4153_v17 = vld [vmem:[#allocation34_spill] sm:$0xff] }
 0x250   : > { %1222 = vperm.xlu0 %2290, %v4145_v0   ;;  %v743_v11 = vadd.f32 %v735_v25, %v677_v57  ;;  %vm873_vm8 = vcmask 154624  }
 0x251   : > { %v804_v35 = vmul.f32 %v4151_v1, %v782_v20  ;;  %vm794_vm9 = vcmp.ge.f32.partialorder %v782_v20, 0.0  ;;  %v826_v2 = vsel %vm814_vm10, %v792_v39, %v822_v15 }
 0x252   : > { %v784_v42 = vadd.f32 %v4149_v56, %v743_v11 }
 0x253   : > { %v808_v40 = vsel %vm794_vm9, %v782_v20, %v804_v35 }
 0x254   : > { %1414 = vperm.xlu0 %2290, %v4150_v52   ;;  %v806_v58 = vmul.f32 %v4151_v1, %v784_v42  ;;  %v828_v57 = vadd.f32 %v824_v5, %v808_v40  ;;  %vm796_vm11 = vcmp.ge.f32.partialorder %v784_v42, 0.0  ;;  %v4154_v52 = vld [vmem:[#allocation35_spill] sm:$0xff] }
 0x256   : > { %v810_v11 = vsel %vm796_vm11, %v784_v42, %v806_v58  ;;  %v857_v25 = vmul.f32 %v4153_v17, %v828_v57 }
 0x257   : > { %v830_v10 = vadd.f32 %v826_v2, %v810_v11 }
 0x258   : > { %2294 = vset.pattern.permute.xlu0 %v4143_v18 }
 0x259   : > { %1126 = vperm.xlu0 %2294, %v2497_v6   ;;  %v2942_v6 = vsel %vm471_vm3, %v2935_v3, %v4154_v52 }
 0x25a   : > { %4155 = vst [vmem:[#allocation7_spill] sm:$0xff] %v2942_v6  ;;  %v859_v60 = vmul.f32 %v2942_v6, %v830_v10  ;;  %v4158_v10 = vld [vmem:[#allocation6_spill] sm:$0xff]  ;;  %v4166_v6 = vld [vmem:[#allocation21_spill] sm:$0xff] }
 0x25d   : > { %1317 = vperm.xlu0 %2294, %v4152_v7  }
 0x261   : > { %865 = vrot.lane.b32.xlu0 %v857_v25, %s2383_s23  ;;  %v4159_v25 = vld [vmem:[#allocation11_spill] sm:$0xff] }
 0x265   : > { %869 = vrot.lane.b32.xlu0 %v859_v60, %s2383_s23 }
 0x29d   : > { %v2947_v20 = vpop.permute.xlu0 %919 }
 0x29e   : > { %4156 = vst [vmem:[#allocation27_spill] sm:$0xff] %v2947_v20  ;;  %v4167_v20 = vld [vmem:[#allocation9_spill] sm:$0xff] }
 0x2ae   : > { %v2949_v38 = vpop.permute.xlu0 %939 }
 0x2af   : > { %v942_v35 = vmul.f32 0.0, %v2949_v38 }
 0x2b1   : > { %950 = vrot.lane.b32.xlu1 %v942_v35, %s2373_s10 }
 0x2b3   : > { %v2953_v39 = vpop.permute.xlu0 %890 }
 0x2b4   : > { %4157 = vst [vmem:[#allocation31_spill] sm:$0xff] %v2953_v39 }
 0x2b7   : > { %v2955_v42 = vpop.permute.xlu0 %972 }
 0x2b8   : > { %v975_v15 = vmul.f32 0.0, %v2955_v42 }
 0x2ba   : > { %983 = vrot.lane.b32.xlu1 %v975_v15, %s2374_s11 }
 0x2bc   : > { %v2959_v5 = vpop.permute.xlu0 %1003 }
 0x2bd   : > { %v1006_v58 = vmul.f32 0.0, %v2959_v5 }
 0x2bf   : > { %1014 = vrot.lane.b32.xlu1 %v1006_v58, %s2374_s11 }
 0x2c1   : > { %v2963_v40 = vpop.permute.xlu0 %1036 }
 0x2c2   : > { %v1039_v57 = vmul.f32 0.0, %v2963_v40 }
 0x2c4   : > { %1047 = vrot.lane.b32.xlu1 %v1039_v57, %s2375_s12  ;;  %v4164_v57 = vld [vmem:[#allocation10_spill] sm:$0xff] }
 0x2c6   : > { %v2967_v2 = vpop.permute.xlu0 %1067 }
 0x2c7   : > { %v1070_v11 = vmul.f32 0.0, %v2967_v2 }
 0x2c9   : > { %1078 = vrot.lane.b32.xlu1 %v1070_v11, %s2375_s12 }
 0x2cb   : > { %v2990_v11 = vpop.permute.xlu0 %1100 }
 0x2cd   : > { %1158 = vperm.xlu1 %2284, %v4158_v10  }
 0x2d1   : > { %2291 = vset.pattern.permute.xlu1 %v4143_v18 }
 0x2d2   : > { %1189 = vperm.xlu1 %2291, %v4158_v10   ;;  %v279_v10 = vsel %vm277_vm0, %v2653_v36, %v2716_v21  ;;  %v4169_v36 = vld [vmem:[#allocation23_spill] sm:$0xff] }
 0x2d3   : > { %v376_v21 = vsel %vm343_vm1, %v4169_v36, %v2667_v4 }
 0x2d6   : > { %1253 = vperm.xlu1 %2291, %v4145_v0   ;;  %v253_v0 = vmul.f32 %v2544_v16, %v4164_v57 }
 0x2da   : > { %2292 = vset.pattern.permute.xlu1 %v4141_v61 }
 0x2db   : > { %1286 = vperm.xlu1 %2292, %v4152_v7   ;;  %v245_v7 = vmul.f32 %v2536_v12, %v4164_v57 }
 0x2df   : > { %1350 = vperm.xlu1 %2292, %v4159_v25  }
 0x2e3   : > { %2293 = vset.pattern.permute.xlu1 %v4143_v18  ;;  %v319_v18 = vadd.f32 %v2738_v31, %v253_v0  ;;  %v4168_v31 = vld [vmem:[#allocation13_spill] sm:$0xff] }
 0x2e4   : > { %1381 = vperm.xlu1 %2293, %v4159_v25   ;;  %v4165_v25 = vld [vmem:[#allocation12_spill] sm:$0xff]  ;;  %v345_v0 = vsel %vm343_vm1, %v4168_v31, %v2750_v63 }
 0x2e5   : > { %v385_v57 = vadd.f32 %v2756_v14, %v319_v18 }
 0x323   : > { %v2980_v60 = vpop.permute.xlu1 %950 }
 0x324   : > { %4160 = vst [vmem:[#allocation32_spill] sm:$0xff] %v2980_v60  ;;  %v251_v60 = vmul.f32 %v2544_v16, %v4167_v20  ;;  %v4170_v16 = vld [vmem:[#allocation24_spill] sm:$0xff] }
 0x325   : > { %v442_v14 = vsel %vm409_vm2, %v4170_v16, %v2675_v45  ;;  %v498_v45 = vsel %vm471_vm3, %v2768_v28, %v2679_v47  ;;  %v472_v47 = vsel %vm471_vm3, %v2764_v24, %v2677_v46  ;;  %v4174_v28 = vld [vmem:[#allocation16_spill] sm:$0xff]  ;;  %v536_v46 = vsel %vm535_vm4, %v2772_v30, %v2681_v48  ;;  %v4176_v24 = vld [vmem:[#allocation18_spill] sm:$0xff]  ;;  %v4178_v48 = vld [vmem:[#allocation15_spill] sm:$0xff] }
 0x326   : > { %v4179_v30 = vld [vmem:[#allocation26_spill] sm:$0xff] }
 0x32c   : > { %v2982_v35 = vpop.permute.xlu1 %983 }
 0x32d   : > { %4161 = vst [vmem:[#allocation8_spill] sm:$0xff] %v2982_v35  ;;  %v310_v35 = vsel %vm277_vm0, %v4166_v6, %v4165_v25 }
 0x32e   : > { %v317_v25 = vadd.f32 %v310_v35, %v251_v60  ;;  %v4173_v35 = vld [vmem:[#allocation30_spill] sm:$0xff] }
 0x330   : > { %v383_v4 = vadd.f32 %v376_v21, %v317_v25 }
 0x331   : > { %v2984_v15 = vpop.permute.xlu1 %1014 }
 0x332   : > { %4162 = vst [vmem:[#allocation6_spill] sm:$0xff] %v2984_v15  ;;  %v288_v15 = vadd.f32 %v2655_v37, %v245_v7  ;;  %v451_v37 = vadd.f32 %v2762_v22, %v385_v57  ;;  %v3023_v7 = vpop.permute.xlu0 %1222  ;;  %v4172_v22 = vld [vmem:[#allocation14_spill] sm:$0xff] }
 0x334   : > { %v507_v60 = vadd.f32 %v2770_v29, %v451_v37 }
 0x336   : > { %v2986_v58 = vpop.permute.xlu1 %1047 }
 0x337   : > { %4163 = vst [vmem:[#allocation11_spill] sm:$0xff] %v2986_v58  ;;  %v243_v58 = vmul.f32 %v2536_v12, %v4167_v20  ;;  %v354_v12 = vadd.f32 %v2663_v41, %v288_v15  ;;  %v4171_v20 = vld [vmem:[#allocation25_spill] sm:$0xff]  ;;  %v411_v41 = vsel %vm409_vm2, %v2669_v43, %v2758_v19  ;;  %v635_v15 = vsel %vm601_vm5, %v2695_v55, %v4173_v35 }
 0x338   : > { %v569_v63 = vsel %vm535_vm4, %v2687_v51, %v4171_v20  ;;  %v538_v51 = vsel %vm535_vm4, %v2774_v32, %v4172_v22  ;;  %v567_v19 = vsel %vm535_vm4, %v2685_v50, %v2776_v34  ;;  %v604_v55 = vsel %vm601_vm5, %v2784_v27, %v4174_v28  ;;  %v4175_v32 = vld [vmem:[#allocation39_spill] sm:$0xff]  ;;  %v4184_v22 = vld [vmem:[#allocation33_spill] sm:$0xff] }
 0x339   : > { %v286_v6 = vadd.f32 %v279_v10, %v243_v58  ;;  %v420_v31 = vadd.f32 %v2671_v44, %v354_v12  ;;  %v449_v44 = vadd.f32 %v442_v14, %v383_v4  ;;  %v577_v10 = vadd.f32 %v569_v63, %v507_v60  ;;  %v4181_v20 = vld [vmem:[#allocation19_spill] sm:$0xff]  ;;  %v4182_v63 = vld [vmem:[#allocation40_spill] sm:$0xff]  ;;  %v4185_v35 = vld [vmem:[#allocation41_spill] sm:$0xff] }
 0x33a   : > { %v701_v57 = vsel %vm667_vm6, %v2703_v59, %v4175_v32  ;;  %v633_v50 = vsel %vm601_vm5, %v2693_v54, %v2788_v53  ;;  %v670_v27 = vsel %vm667_vm6, %v2802_v9, %v4176_v24  ;;  %v4177_v59 = vld [vmem:[#allocation29_spill] sm:$0xff]  ;;  %v602_v53 = vsel %vm601_vm5, %v4179_v30, %v4178_v48 }
 0x33b   : > { %v3013_v39 = vpop.permute.xlu1 %1078  ;;  %v352_v18 = vadd.f32 %v345_v0, %v286_v6  ;;  %v481_v29 = vadd.f32 %v2766_v26, %v420_v31  ;;  %v505_v0 = vadd.f32 %v498_v45, %v449_v44  ;;  %v643_v21 = vadd.f32 %v635_v15, %v577_v10  ;;  %v3068_v6 = vpop.permute.xlu0 %1414  ;;  %v4180_v54 = vld [vmem:[#allocation37_spill] sm:$0xff]  ;;  %v4186_v15 = vld [vmem:[#allocation28_spill] sm:$0xff] }
 0x33c   : > { %v767_v34 = vsel %vm733_vm7, %v4177_v59, %v2871_v49  ;;  %v699_v9 = vsel %vm667_vm6, %v4181_v20, %v4180_v54  ;;  %v736_v49 = vsel %vm733_vm7, %v4148_v13, %v4182_v63  ;;  %v4183_v45 = vld [vmem:[#allocation17_spill] sm:$0xff]  ;;  %v765_v44 = vsel %vm733_vm7, %v4186_v15, %v4185_v35 }
 0x33d   : > { %v418_v26 = vadd.f32 %v411_v41, %v352_v18  ;;  %v546_v36 = vadd.f32 %v538_v51, %v481_v29  ;;  %v575_v12 = vadd.f32 %v567_v19, %v505_v0  ;;  %v709_v16 = vadd.f32 %v701_v57, %v643_v21 }
 0x33e   : > { %v668_v51 = vsel %vm667_vm6, %v4184_v22, %v4183_v45  ;;  %v734_v19 = vsel %vm733_vm7, %v2816_v33, %v2821_v23  ;;  %v4090_v63 = vmov 5  }
 0x33f   : > { %v479_v25 = vadd.f32 %v472_v47, %v418_v26  ;;  %v612_v37 = vadd.f32 %v604_v55, %v546_v36  ;;  %v641_v31 = vadd.f32 %v633_v50, %v575_v12  ;;  %v775_v41 = vadd.f32 %v767_v34, %v709_v16  ;;  %v3095_v28 = vpop.permute.xlu0 %1126 }
 0x340   : > { %v1228_v55 = vmul.f32 0.0, %v3023_v7 }
 0x341   : > { %v544_v4 = vadd.f32 %v536_v46, %v479_v25  ;;  %v678_v60 = vadd.f32 %v670_v27, %v612_v37  ;;  %v707_v10 = vadd.f32 %v699_v9, %v641_v31  ;;  %v793_v13 = vadd.f32 %v2889_v62, %v775_v41  ;;  %v2208_v9 = vld [vmem:[%s4039_s1 + $0x8] sm:$0xff]  ;;  %v2209_v31 = vld [vmem:[%s4039_s1 + $0x10] sm:$0xff] }
 0x343   : > { %v610_v29 = vadd.f32 %v602_v53, %v544_v4  ;;  %v773_v57 = vadd.f32 %v765_v44, %v707_v10  ;;  %v823_v0 = vmul.f32 %v2918_v8, %v793_v13  ;;  %vm815_vm12 = vcmp.ge.f32.partialorder %v793_v13, 0.0  ;;  %v3109_v34 = vpop.permute.xlu0 %1317  ;;  %v4189_v53 = vld [vmem:[#allocation22_spill] sm:$0xff] }
 0x345   : > { %v676_v32 = vadd.f32 %v668_v51, %v610_v29  ;;  %v791_v46 = vadd.f32 %v2889_v62, %v773_v57  ;;  %v827_v59 = vsel %vm815_vm12, %v793_v13, %v823_v0  ;;  %v1323_v62 = vmul.f32 0.0, %v3109_v34  ;;  %v4190_v13 = vld [vmem:[#allocation38_spill] sm:$0xff] }
 0x347   : > { %v742_v36 = vadd.f32 %v734_v19, %v676_v32  ;;  %v821_v24 = vmul.f32 %v2918_v8, %v791_v46  ;;  %vm813_vm14 = vcmp.ge.f32.partialorder %v791_v46, 0.0  ;;  %v4187_v8 = vld [vmem:[#allocation20_spill] sm:$0xff]  ;;  %v866_v35 = vpop.permute.xlu0 %865 }
 0x349   : > { %v783_v23 = vadd.f32 %v4149_v56, %v742_v36 }
 0x34b   : > { %v805_v25 = vmul.f32 %v4151_v1, %v783_v23  ;;  %vm795_vm15 = vcmp.ge.f32.partialorder %v783_v23, 0.0  ;;  %v870_v44 = vpop.permute.xlu0 %869 }
 0x34c   : > { %v3039_v58 = vpop.permute.xlu1 %1158 }
 0x34d   : > { %v1164_v43 = vmul.f32 0.0, %v3039_v58  ;;  %v809_v16 = vsel %vm795_vm15, %v783_v23, %v805_v25 }
 0x34f   : > { %1175 = vrot.lane.b32.xlu1 %v1164_v43, %s2377_s14  ;;  %v744_v43 = vadd.f32 %v736_v49, %v678_v60  ;;  %v4089_v49 = vmov 4  }
 0x351   : > { %v3070_v14 = vpop.permute.xlu1 %1189  ;;  %v785_v26 = vadd.f32 %v4149_v56, %v744_v43  ;;  %v825_v56 = vsel %vm813_vm14, %v791_v46, %v821_v24 }
 0x352   : > { %v1195_v18 = vmul.f32 0.0, %v3070_v14  ;;  %v829_v48 = vadd.f32 %v825_v56, %v809_v16 }
 0x353   : > { %v807_v21 = vmul.f32 %v4151_v1, %v785_v26  ;;  %vm797_vm13 = vcmp.ge.f32.partialorder %v785_v26, 0.0  ;;  %v3121_v1 = vsel %vm471_vm3, %v4153_v17, %v2935_v3 }
 0x354   : > { %1206 = vrot.lane.b32.xlu1 %v1195_v18, %s2377_s14  ;;  %4188 = vst [vmem:[#allocation10_spill] sm:$0xff] %v3121_v1  ;;  %v858_v54 = vmul.f32 %v3121_v1, %v829_v48 }
 0x355   : > { %v3090_v47 = vpop.permute.xlu1 %1253  ;;  %v811_v12 = vsel %vm797_vm13, %v785_v26, %v807_v21 }
 0x356   : > { %v1259_v33 = vmul.f32 0.0, %v3090_v47  ;;  %v831_v37 = vadd.f32 %v827_v59, %v811_v12 }
 0x358   : > { %1239 = vrot.lane.b32.xlu1 %v1228_v55, %s2378_s15  ;;  %v860_v30 = vmul.f32 %v4154_v52, %v831_v37 }
 0x35a   : > { %v3103_v50 = vpop.permute.xlu1 %1286 }
 0x35b   : > { %v1292_v27 = vmul.f32 0.0, %v3103_v50 }
 0x35c   : > { %1270 = vrot.lane.b32.xlu1 %v1259_v33, %s2378_s15 }
 0x35d   : > { %1303 = vrot.lane.b32.xlu0 %v1292_v27, %s2379_s16 }
 0x35e   : > { %v3128_v20 = vpop.permute.xlu1 %1350 }
 0x35f   : > { %v1356_v3 = vmul.f32 0.0, %v3128_v20 }
 0x360   : > { %1422 = vperm.xlu1 %2293, %v4187_v8  }
 0x361   : > { %1334 = vrot.lane.b32.xlu0 %v1323_v62, %s2379_s16 }
 0x363   : > { %v3140_v18 = vpop.permute.xlu1 %1381 }
 0x364   : > { %871 = vrot.lane.b32.xlu1 %v860_v30, %s2383_s23  ;;  %v1387_v4 = vmul.f32 0.0, %v3140_v18 }
 0x365   : > { %1452 = vperm.xlu0 %2294, %v4189_v53   ;;  %2295 = vset.pattern.permute.xlu1 %v4141_v61  ;;  %v1496_v61 = vld [vmem:[%s4039_s1] sm:$0xff] }
 0x368   : > { %867 = vrot.lane.b32.xlu1 %v858_v54, %s2383_s23 }
 0x369   : > { %2298 = vset.pattern.permute.xlu0 %v4090_v63 }
 0x36a   : > { %1548 = vperm.xlu0 %2298, %v2208_v9  }
 0x36c   : > { %1436 = vperm.xlu1 %2295, %v4189_v53  }
 0x36e   : > { %2299 = vset.pattern.permute.xlu0 %v4089_v49 }
 0x36f   : > { %1499 = vperm.xlu0 %2299, %v1496_v61  }
 0x370   : > { %1367 = vrot.lane.b32.xlu1 %v1356_v3, %s2380_s25 }
 0x371   : > { %2296 = vset.pattern.permute.xlu1 %v4090_v63 }
 0x374   : > { %1398 = vrot.lane.b32.xlu1 %v1387_v4, %s2380_s25 }
 0x378   : > { %1507 = vperm.xlu1 %2296, %v1496_v61  }
 0x37c   : > { %2297 = vset.pattern.permute.xlu1 %v4089_v49 }
 0x37d   : > { %1517 = vperm.xlu1 %2297, %v2208_v9  }
 0x381   : > { %1581 = vperm.xlu1 %2297, %v2209_v31  }
 0x385   : > { %2300 = vset.pattern.permute.xlu1 %v4090_v63 }
 0x386   : > { %1612 = vperm.xlu1 %2300, %v2209_v31  }
 0x3c1   : > { %v3151_v60 = vpop.permute.xlu1 %1175 }
 0x3c6   : > { %v3153_v41 = vpop.permute.xlu1 %1206 }
 0x3ca   : > { %v3155_v45 = vpop.permute.xlu1 %1239 }
 0x3ce   : > { %v3157_v22 = vpop.permute.xlu1 %1270 }
 0x3df   : > { %v3159_v51 = vpop.permute.xlu1 %1422 }
 0x3e3   : > { %v872_v15 = vpop.permute.xlu1 %871 }
 0x3e4   : > { %v3172_v32 = vsel %vm873_vm8, %v870_v44, %v872_v15 }
 0x3e5   : > { %v914_v26 = vmul.f32 %v4190_v13, %v3172_v32  ;;  %v945_v46 = vmul.f32 %v2949_v38, %v3172_v32  ;;  %v1105_v27 = vmul.f32 %v2990_v11, %v3172_v32  ;;  %v1163_v37 = vmul.f32 %v3039_v58, %v3172_v32 }
 0x3e6   : > { %v1194_v16 = vmul.f32 %v3070_v14, %v3172_v32  ;;  %v1227_v53 = vmul.f32 %v3023_v7, %v3172_v32  ;;  %v1258_v3 = vmul.f32 %v3090_v47, %v3172_v32  ;;  %v1355_v15 = vmul.f32 %v3128_v20, %v3172_v32 }
 0x3e7   : > { %v868_v29 = vpop.permute.xlu1 %867 }
 0x3e8   : > { %v3162_v10 = vsel %vm873_vm8, %v866_v35, %v868_v29  ;;  %v3165_v43 = vsel %vm873_vm8, %v868_v29, %v870_v44 }
 0x3e9   : > { %v913_v19 = vmul.f32 %v4190_v13, %v3165_v43  ;;  %v912_v55 = vmul.f32 %v4190_v13, %v3162_v10  ;;  %v944_v57 = vmul.f32 %v2949_v38, %v3165_v43  ;;  %v977_v0 = vmul.f32 %v2955_v42, %v3165_v43  ;;  %v3292_v13 = vpop.permute.xlu0 %1303 }
 0x3ea   : > { %v943_v36 = vmul.f32 %v2949_v38, %v3162_v10  ;;  %v1008_v21 = vmul.f32 %v2959_v5, %v3165_v43  ;;  %v1041_v33 = vmul.f32 %v2963_v40, %v3165_v43  ;;  %v976_v23 = vmul.f32 %v2955_v42, %v3162_v10 }
 0x3eb   : > { %923 = vrot.lane.b32.xlu0 %v913_v19, %s2373_s10  ;;  %921 = vrot.lane.b32.xlu1 %v912_v55, %s2373_s10  ;;  %v1072_v24 = vmul.f32 %v2967_v2, %v3165_v43  ;;  %v978_v38 = vmul.f32 %v2955_v42, %v3172_v32  ;;  %v1007_v59 = vmul.f32 %v2959_v5, %v3162_v10  ;;  %v3276_v35 = vpop.permute.xlu1 %1436 }
 0x3ec   : > { %v1130_v25 = vmul.f32 %v3095_v28, %v3165_v43  ;;  %v1009_v42 = vmul.f32 %v2959_v5, %v3172_v32  ;;  %v1161_v62 = vmul.f32 %v3039_v58, %v3162_v10  ;;  %v1040_v12 = vmul.f32 %v2963_v40, %v3162_v10 }
 0x3ed   : > { %v1042_v5 = vmul.f32 %v2963_v40, %v3172_v32  ;;  %v1192_v56 = vmul.f32 %v3070_v14, %v3162_v10  ;;  %v1071_v8 = vmul.f32 %v2967_v2, %v3162_v10  ;;  %v1073_v40 = vmul.f32 %v2967_v2, %v3172_v32 }
 0x3ee   : > { %v1225_v48 = vmul.f32 %v3023_v7, %v3162_v10  ;;  %v1103_v30 = vmul.f32 %v2990_v11, %v3162_v10  ;;  %v1104_v2 = vmul.f32 %v2990_v11, %v3165_v43  ;;  %v1256_v54 = vmul.f32 %v3090_v47, %v3162_v10 }
 0x3ef   : > { %954 = vrot.lane.b32.xlu0 %v944_v57, %s2373_s10  ;;  %925 = vrot.lane.b32.xlu1 %v914_v26, %s2373_s10  ;;  %v1129_v9 = vmul.f32 %v3095_v28, %v3162_v10  ;;  %v1131_v11 = vmul.f32 %v3095_v28, %v3172_v32  ;;  %v1290_v61 = vmul.f32 %v3103_v50, %v3165_v43  ;;  %v3286_v44 = vpop.permute.xlu1 %1367  ;;  %v3304_v57 = vpop.permute.xlu0 %1334 }
 0x3f0   : > { %v1162_v4 = vmul.f32 %v3039_v58, %v3165_v43  ;;  %v1321_v31 = vmul.f32 %v3109_v34, %v3165_v43  ;;  %v1193_v28 = vmul.f32 %v3070_v14, %v3165_v43  ;;  %v1226_v58 = vmul.f32 %v3023_v7, %v3165_v43 }
 0x3f1   : > { %v1384_v14 = vmul.f32 %v3140_v18, %v3162_v10  ;;  %v1257_v29 = vmul.f32 %v3090_v47, %v3165_v43  ;;  %v1386_v7 = vmul.f32 %v3140_v18, %v3172_v32  ;;  %v1289_v55 = vmul.f32 %v3103_v50, %v3162_v10  ;;  %v2210_v47 = vld [vmem:[%s4039_s1 + $0x18] sm:$0xff] }
 0x3f3   : > { %987 = vrot.lane.b32.xlu0 %v977_v0, %s2374_s11  ;;  %952 = vrot.lane.b32.xlu1 %v943_v36, %s2373_s10  ;;  %v3296_v19 = vpop.permute.xlu1 %1398  ;;  %v1291_v0 = vmul.f32 %v3103_v50, %v3172_v32  ;;  %v2213_v36 = vld [vmem:[%s4039_s1 + $0x30] sm:$0xff]  ;;  %v1322_v50 = vmul.f32 %v3109_v34, %v3172_v32 }
 0x3f7   : > { %1018 = vrot.lane.b32.xlu0 %v1008_v21, %s2374_s11  ;;  %956 = vrot.lane.b32.xlu1 %v945_v46, %s2373_s10  ;;  %v3309_v26 = vpop.permute.xlu1 %1507  ;;  %v1320_v21 = vmul.f32 %v3109_v34, %v3162_v10  ;;  %v3319_v46 = vpop.permute.xlu0 %1452  ;;  %v1354_v34 = vmul.f32 %v3128_v20, %v3165_v43 }
 0x3f8   : > { %4191 = vst [vmem:[#allocation12_spill] sm:$0xff] %v3309_v26 }
 0x3fb   : > { %1051 = vrot.lane.b32.xlu0 %v1041_v33, %s2375_s12  ;;  %985 = vrot.lane.b32.xlu1 %v976_v23, %s2374_s11 }
 0x3fc   : > { %v3321_v33 = vpop.permute.xlu1 %1517 }
 0x3fd   : > { %4192 = vst [vmem:[#allocation21_spill] sm:$0xff] %v3321_v33  ;;  %v1520_v23 = vmul.f32 0.0, %v3321_v33 }
 0x3ff   : > { %1082 = vrot.lane.b32.xlu0 %v1072_v24, %s2375_s12  ;;  %989 = vrot.lane.b32.xlu1 %v978_v38, %s2374_s11  ;;  %v3327_v24 = vpop.permute.xlu0 %1548 }
 0x400   : > { %4193 = vst [vmem:[#allocation9_spill] sm:$0xff] %v3327_v24  ;;  %v1551_v38 = vmul.f32 0.0, %v3327_v24 }
 0x403   : > { %1113 = vrot.lane.b32.xlu0 %v1105_v27, %s2376_s13  ;;  %1016 = vrot.lane.b32.xlu1 %v1007_v59, %s2374_s11  ;;  %v3332_v27 = vpop.permute.xlu1 %1581  ;;  %v1353_v59 = vmul.f32 %v3128_v20, %v3162_v10  ;;  %v3355_v20 = vld [vmem:[%s4039_s1 + $0x20] sm:$0xff] }
 0x404   : > { %4194 = vst [vmem:[#allocation13_spill] sm:$0xff] %v3332_v27 }
 0x407   : > { %1137 = vrot.lane.b32.xlu0 %v1130_v25, %s2376_s13  ;;  %1020 = vrot.lane.b32.xlu1 %v1009_v42, %s2374_s11  ;;  %v1584_v25 = vmul.f32 0.0, %v3332_v27  ;;  %v3341_v42 = vpop.permute.xlu1 %1612 }
 0x408   : > { %4195 = vst [vmem:[#allocation23_spill] sm:$0xff] %v3341_v42 }
 0x40b   : > { %1169 = vrot.lane.b32.xlu0 %v1161_v62, %s2377_s14  ;;  %1049 = vrot.lane.b32.xlu1 %v1040_v12, %s2375_s12  ;;  %v1615_v62 = vmul.f32 0.0, %v3341_v42  ;;  %v1385_v12 = vmul.f32 %v3140_v18, %v3165_v43  ;;  %v2212_v18 = vld [vmem:[%s4039_s1 + $0x28] sm:$0xff] }
 0x40f   : > { %1173 = vrot.lane.b32.xlu0 %v1163_v37, %s2377_s14  ;;  %1053 = vrot.lane.b32.xlu1 %v1042_v5, %s2375_s12  ;;  %v3350_v37 = vpop.permute.xlu0 %1499 }
 0x410   : > { %4196 = vst [vmem:[#allocation24_spill] sm:$0xff] %v3350_v37 }
 0x413   : > { %1200 = vrot.lane.b32.xlu0 %v1192_v56, %s2377_s14  ;;  %1080 = vrot.lane.b32.xlu1 %v1071_v8, %s2375_s12 }
 0x417   : > { %1204 = vrot.lane.b32.xlu0 %v1194_v16, %s2377_s14  ;;  %1084 = vrot.lane.b32.xlu1 %v1073_v40, %s2375_s12 }
 0x41b   : > { %1233 = vrot.lane.b32.xlu0 %v1225_v48, %s2378_s15  ;;  %1109 = vrot.lane.b32.xlu1 %v1103_v30, %s2376_s13 }
 0x41f   : > { %1237 = vrot.lane.b32.xlu0 %v1227_v53, %s2378_s15  ;;  %1111 = vrot.lane.b32.xlu1 %v1104_v2, %s2376_s13  ;;  %v3376_v2 = vld [vmem:[%s4039_s1 + $0x38] sm:$0xff] }
 0x423   : > { %1264 = vrot.lane.b32.xlu0 %v1256_v54, %s2378_s15  ;;  %1135 = vrot.lane.b32.xlu1 %v1129_v9, %s2376_s13 }
 0x427   : > { %1268 = vrot.lane.b32.xlu0 %v1258_v3, %s2378_s15  ;;  %1139 = vrot.lane.b32.xlu1 %v1131_v11, %s2376_s13  ;;  %v2215_v3 = vld [vmem:[%s4039_s1 + $0x40] sm:$0xff] }
 0x42b   : > { %1299 = vrot.lane.b32.xlu0 %v1290_v61, %s2379_s16  ;;  %1171 = vrot.lane.b32.xlu1 %v1162_v4, %s2377_s14 }
 0x42f   : > { %1330 = vrot.lane.b32.xlu0 %v1321_v31, %s2379_s16  ;;  %1202 = vrot.lane.b32.xlu1 %v1193_v28, %s2377_s14 }
 0x433   : > { %1365 = vrot.lane.b32.xlu0 %v1355_v15, %s2380_s25  ;;  %1235 = vrot.lane.b32.xlu1 %v1226_v58, %s2378_s15 }
 0x437   : > { %1392 = vrot.lane.b32.xlu0 %v1384_v14, %s2380_s25  ;;  %1266 = vrot.lane.b32.xlu1 %v1257_v29, %s2378_s15 }
 0x43b   : > { %1396 = vrot.lane.b32.xlu0 %v1386_v7, %s2380_s25  ;;  %1297 = vrot.lane.b32.xlu1 %v1289_v55, %s2379_s16  ;;  %v4197_v55 = vld [vmem:[#allocation31_spill] sm:$0xff] }
 0x43f   : > { %1645 = vperm.xlu0 %2299, %v2210_v47   ;;  %1301 = vrot.lane.b32.xlu1 %v1291_v0, %s2379_s16 }
 0x443   : > { %1831 = vperm.xlu0 %2299, %v2213_v36   ;;  %1328 = vrot.lane.b32.xlu1 %v1320_v21, %s2379_s16 }
 0x447   : > { %1332 = vrot.lane.b32.xlu1 %v1322_v50, %s2379_s16  ;;  %1528 = vrot.lane.b32.xlu0 %v1520_v23, %s2373_s10 }
 0x44b   : > { %1361 = vrot.lane.b32.xlu1 %v1353_v59, %s2380_s25  ;;  %1559 = vrot.lane.b32.xlu0 %v1551_v38, %s2373_s10 }
 0x44f   : > { %1363 = vrot.lane.b32.xlu1 %v1354_v34, %s2380_s25  ;;  %1592 = vrot.lane.b32.xlu0 %v1584_v25, %s2374_s11 }
 0x453   : > { %1394 = vrot.lane.b32.xlu1 %v1385_v12, %s2380_s25  ;;  %1623 = vrot.lane.b32.xlu0 %v1615_v62, %s2374_s11 }
 0x457   : > { %1676 = vperm.xlu1 %2300, %v2210_v47   ;;  %v896_v47 = vmul.f32 %v4197_v55, %v3172_v32 }
 0x45b   : > { %2301 = vset.pattern.permute.xlu1 %v4089_v49 }
 0x45c   : > { %1709 = vperm.xlu1 %2301, %v3355_v20  }
 0x45d   : > { %v924_v5 = vpop.permute.xlu0 %923  ;;  %v3359_v56 = vpop.permute.xlu1 %921 }
 0x460   : > { %1767 = vperm.xlu1 %2301, %v2212_v18  }
 0x461   : > { %v3364_v8 = vpop.permute.xlu0 %954  ;;  %v926_v16 = vpop.permute.xlu1 %925 }
 0x462   : > { %v937_v0 = vadd.f32 %v926_v16, %v896_v47 }
 0x464   : > { %2302 = vset.pattern.permute.xlu1 %v4090_v63 }
 0x465   : > { %v988_v40 = vpop.permute.xlu0 %987  ;;  %1798 = vperm.xlu1 %2302, %v2212_v18   ;;  %v3367_v48 = vpop.permute.xlu1 %952 }
 0x469   : > { %v3369_v30 = vpop.permute.xlu0 %1018  ;;  %v3371_v53 = vpop.permute.xlu1 %956  ;;  %1862 = vperm.xlu1 %2302, %v2213_v36  }
 0x46d   : > { %v3378_v54 = vpop.permute.xlu0 %1051  ;;  %v3380_v9 = vpop.permute.xlu1 %985  ;;  %2303 = vset.pattern.permute.xlu1 %v4089_v49 }
 0x46e   : > { %1895 = vperm.xlu1 %2303, %v3376_v2  }
 0x471   : > { %v3387_v11 = vpop.permute.xlu0 %1082  ;;  %v990_v61 = vpop.permute.xlu1 %989 }
 0x472   : > { %1959 = vperm.xlu1 %2303, %v2215_v3   ;;  %v1001_v23 = vadd.f32 %v990_v61, %v937_v0  ;;  %v4198_v0 = vld [vmem:[#allocation36_spill] sm:$0xff] }
 0x475   : > { %v3389_v4 = vpop.permute.xlu0 %1113  ;;  %v3391_v31 = vpop.permute.xlu1 %1016 }
 0x476   : > { %2304 = vset.pattern.permute.xlu1 %v4090_v63 }
 0x477   : > { %1990 = vperm.xlu1 %2304, %v2215_v3  }
 0x479   : > { %v3394_v28 = vpop.permute.xlu0 %1137  ;;  %v1021_v15 = vpop.permute.xlu1 %1020 }
 0x47d   : > { %v3396_v58 = vpop.permute.xlu0 %1169  ;;  %v3398_v14 = vpop.permute.xlu1 %1049 }
 0x481   : > { %v3400_v29 = vpop.permute.xlu0 %1173  ;;  %v1054_v7 = vpop.permute.xlu1 %1053 }
 0x482   : > { %v1065_v50 = vadd.f32 %v1054_v7, %v1001_v23  ;;  %v1179_v12 = vsel %vm535_vm4, %v3400_v29, %v3151_v60  ;;  %v904_v23 = vmul.f32 %v4198_v0, %v3172_v32  ;;  %v929_v32 = vsel %vm277_vm0, %v924_v5, %v926_v16 }
 0x484   : > { %v1124_v25 = vadd.f32 %v3389_v4, %v1065_v50  ;;  %v968_v63 = vadd.f32 %v3371_v53, %v904_v23 }
 0x485   : > { %v3404_v36 = vpop.permute.xlu0 %1200  ;;  %v3406_v21 = vpop.permute.xlu1 %1080 }
 0x486   : > { %v1187_v3 = vadd.f32 %v1179_v12, %v1124_v25  ;;  %v1032_v60 = vadd.f32 %v1021_v15, %v968_v63  ;;  %v928_v25 = vsel %vm277_vm0, %v3359_v56, %v924_v5  ;;  %v901_v12 = vmul.f32 0.0, %v4198_v0  ;;  %v4199_v5 = vld [vmem:[#allocation32_spill] sm:$0xff] }
 0x487   : > { %v902_v63 = vmul.f32 %v4198_v0, %v3162_v10  ;;  %v958_v16 = vsel %vm277_vm0, %v4199_v5, %v3367_v48  ;;  %v960_v5 = vsel %vm277_vm0, %v3364_v8, %v3371_v53 }
 0x489   : > { %v3408_v38 = vpop.permute.xlu0 %1204  ;;  %v1085_v59 = vpop.permute.xlu1 %1084 }
 0x48a   : > { %v1096_v42 = vadd.f32 %v1085_v59, %v1032_v60  ;;  %v1210_v23 = vsel %vm535_vm4, %v3408_v38, %v3153_v41  ;;  %v993_v60 = vsel %vm343_vm1, %v988_v40, %v990_v61  ;;  %v1057_v61 = vsel %vm409_vm2, %v3378_v54, %v1054_v7 }
 0x48d   : > { %v3411_v34 = vpop.permute.xlu0 %1233  ;;  %v3413_v62 = vpop.permute.xlu1 %1109 }
 0x491   : > { %v3418_v18 = vpop.permute.xlu0 %1237  ;;  %v1112_v47 = vpop.permute.xlu1 %1111 }
 0x492   : > { %v1243_v49 = vsel %vm601_vm5, %v3418_v18, %v3155_v45  ;;  %v894_v45 = vmul.f32 %v4197_v55, %v3162_v10  ;;  %v959_v10 = vsel %vm277_vm0, %v3367_v48, %v3364_v8  ;;  %v903_v48 = vmul.f32 %v4198_v0, %v3165_v43 }
 0x493   : > { %v3425_v50 = vadd.f32 %v1243_v49, %v1187_v3  ;;  %v895_v3 = vmul.f32 %v4197_v55, %v3165_v43  ;;  %v1024_v8 = vsel %vm343_vm1, %v3369_v30, %v1021_v15  ;;  %v1115_v53 = vsel %vm471_vm3, %v3413_v62, %v1112_v47 }
 0x494   : > { %v935_v17 = vadd.f32 %v928_v25, %v894_v45  ;;  %v1023_v45 = vsel %vm343_vm1, %v3391_v31, %v3369_v30  ;;  %v967_v7 = vadd.f32 %v960_v5, %v903_v48  ;;  %v1088_v0 = vsel %vm409_vm2, %v3387_v11, %v1085_v59 }
 0x495   : > { %v3428_v26 = vpop.permute.xlu0 %1264  ;;  %v3430_v37 = vpop.permute.xlu1 %1135  ;;  %v936_v1 = vadd.f32 %v929_v32, %v895_v3  ;;  %v965_v32 = vadd.f32 %v958_v16, %v901_v12  ;;  %v4200_v16 = vld [vmem:[#allocation6_spill] sm:$0xff] }
 0x499   : > { %v1140_v27 = vpop.permute.xlu1 %1139  ;;  %v3436_v24 = vpop.permute.xlu0 %1268 }
 0x49a   : > { %v1150_v49 = vadd.f32 %v1140_v27, %v1096_v42  ;;  %v992_v42 = vsel %vm343_vm1, %v3380_v9, %v988_v40  ;;  %v1274_v41 = vsel %vm601_vm5, %v3436_v24, %v3157_v22  ;;  %v1056_v40 = vsel %vm409_vm2, %v3398_v14, %v3378_v54 }
 0x49b   : > { %v1000_v22 = vadd.f32 %v993_v60, %v936_v1  ;;  %v966_v54 = vadd.f32 %v959_v10, %v902_v63  ;;  %v1087_v1 = vsel %vm409_vm2, %v3406_v21, %v3387_v11  ;;  %v1086_v60 = vsel %vm409_vm2, %v3013_v39, %v3406_v21 }
 0x49c   : > { %v1218_v33 = vadd.f32 %v1210_v23, %v1150_v49  ;;  %v999_v49 = vadd.f32 %v992_v42, %v935_v17  ;;  %v1022_v42 = vsel %vm343_vm1, %v4200_v16, %v3391_v31  ;;  %v1141_v11 = vsel %vm471_vm3, %v3430_v37, %v3394_v28 }
 0x49d   : > { %v1172_v52 = vpop.permute.xlu1 %1171  ;;  %v1064_v3 = vadd.f32 %v1057_v61, %v1000_v22  ;;  %v1300_v43 = vpop.permute.xlu0 %1299  ;;  %v1142_v59 = vsel %vm471_vm3, %v3394_v28, %v1140_v27  ;;  %v1029_v22 = vadd.f32 %v1022_v42, %v965_v32 }
 0x49e   : > { %v3467_v25 = vadd.f32 %v1274_v41, %v1218_v33  ;;  %v1116_v33 = vsel %vm471_vm3, %v1112_v47, %v3389_v4  ;;  %v1063_v12 = vadd.f32 %v1056_v40, %v999_v49  ;;  %v1177_v30 = vsel %vm535_vm4, %v3396_v58, %v1172_v52 }
 0x49f   : > { %v1178_v15 = vsel %vm535_vm4, %v1172_v52, %v3400_v29  ;;  %v1030_v4 = vadd.f32 %v1023_v45, %v966_v54  ;;  %v1031_v47 = vadd.f32 %v1024_v8, %v967_v7  ;;  %v1123_v23 = vadd.f32 %v1116_v33, %v1064_v3  ;;  %v4201_v45 = vld [vmem:[#allocation27_spill] sm:$0xff]  ;;  %v4202_v3 = vld [vmem:[#allocation8_spill] sm:$0xff] }
 0x4a0   : > { %v1122_v63 = vadd.f32 %v1115_v53, %v1063_v12  ;;  %v927_v8 = vsel %vm277_vm0, %v4201_v45, %v3359_v56  ;;  %v1093_v7 = vadd.f32 %v1086_v60, %v1029_v22  ;;  %v991_v32 = vsel %vm343_vm1, %v4202_v3, %v3380_v9 }
 0x4a1   : > { %v1203_v17 = vpop.permute.xlu1 %1202  ;;  %v1094_v52 = vadd.f32 %v1087_v1, %v1030_v4  ;;  %v1095_v29 = vadd.f32 %v1088_v0, %v1031_v47  ;;  %v1186_v41 = vadd.f32 %v1178_v15, %v1123_v23  ;;  %v1331_v27 = vpop.permute.xlu0 %1330 }
 0x4a2   : > { %v1185_v10 = vadd.f32 %v1177_v30, %v1122_v63  ;;  %v1208_v40 = vsel %vm535_vm4, %v3404_v36, %v1203_v17  ;;  %v1209_v31 = vsel %vm535_vm4, %v1203_v17, %v3408_v38  ;;  %v893_v38 = vmul.f32 0.0, %v4197_v55  ;;  %v4203_v30 = vld [vmem:[#allocation11_spill] sm:$0xff] }
 0x4a3   : > { %v1148_v61 = vadd.f32 %v1141_v11, %v1094_v52  ;;  %v1149_v48 = vadd.f32 %v1142_v59, %v1095_v29  ;;  %v1147_v56 = vadd.f32 %v3430_v37, %v1093_v7  ;;  %v1055_v55 = vsel %vm409_vm2, %v4203_v30, %v3398_v14 }
 0x4a4   : > { %v934_v0 = vadd.f32 %v927_v8, %v893_v38 }
 0x4a5   : > { %v1236_v5 = vpop.permute.xlu1 %1235  ;;  %v1216_v53 = vadd.f32 %v1208_v40, %v1148_v61  ;;  %v1217_v33 = vadd.f32 %v1209_v31, %v1149_v48  ;;  %v1366_v15 = vpop.permute.xlu0 %1365  ;;  %v1215_v16 = vadd.f32 %v3404_v36, %v1147_v56 }
 0x4a6   : > { %v1241_v39 = vsel %vm601_vm5, %v3411_v34, %v1236_v5  ;;  %v1242_v21 = vsel %vm601_vm5, %v1236_v5, %v3418_v18  ;;  %v998_v47 = vadd.f32 %v991_v32, %v934_v0  ;;  %v1371_v52 = vsel %vm733_vm7, %v1366_v15, %v3286_v44 }
 0x4a7   : > { %v1249_v28 = vadd.f32 %v1241_v39, %v1185_v10  ;;  %v1250_v49 = vadd.f32 %v1242_v21, %v1186_v41  ;;  %v1279_v29 = vadd.f32 %v3428_v26, %v1215_v16 }
 0x4a9   : > { %v1267_v54 = vpop.permute.xlu1 %1266  ;;  %v1393_v11 = vpop.permute.xlu0 %1392 }
 0x4aa   : > { %v1272_v12 = vsel %vm601_vm5, %v3428_v26, %v1267_v54  ;;  %v1273_v18 = vsel %vm601_vm5, %v1267_v54, %v3436_v24  ;;  %v1062_v24 = vadd.f32 %v1055_v55, %v998_v47 }
 0x4ab   : > { %v1280_v17 = vadd.f32 %v1272_v12, %v1216_v53  ;;  %v1281_v1 = vadd.f32 %v1273_v18, %v1217_v33 }
 0x4ac   : > { %v1121_v9 = vadd.f32 %v3413_v62, %v1062_v24 }
 0x4ad   : > { %v1298_v4 = vpop.permute.xlu1 %1297  ;;  %v1397_v31 = vpop.permute.xlu0 %1396 }
 0x4ae   : > { %v1305_v63 = vsel %vm667_vm6, %v1298_v4, %v1300_v43  ;;  %v1184_v36 = vadd.f32 %v3396_v58, %v1121_v9  ;;  %v1402_v58 = vsel %vm733_vm7, %v1397_v31, %v3296_v19 }
 0x4af   : > { %v1313_v23 = vadd.f32 %v1305_v63, %v1249_v28 }
 0x4b0   : > { %v1248_v39 = vadd.f32 %v3411_v34, %v1184_v36 }
 0x4b1   : > { %v1302_v42 = vpop.permute.xlu1 %1301 }
 0x4b2   : > { %v1306_v60 = vsel %vm667_vm6, %v1300_v43, %v1302_v42  ;;  %v1307_v37 = vsel %vm667_vm6, %v1302_v42, %v3292_v13  ;;  %v1312_v48 = vadd.f32 %v1298_v4, %v1248_v39 }
 0x4b3   : > { %v1314_v59 = vadd.f32 %v1306_v60, %v1250_v49  ;;  %v1315_v14 = vadd.f32 %v1307_v37, %v3425_v50 }
 0x4b5   : > { %v1379_v10 = vadd.f32 %v1371_v52, %v1315_v14  ;;  %v1329_v41 = vpop.permute.xlu1 %1328 }
 0x4b6   : > { %v1336_v62 = vsel %vm667_vm6, %v1329_v41, %v1331_v27  ;;  %v1343_v5 = vadd.f32 %v1329_v41, %v1279_v29 }
 0x4b7   : > { %v1344_v43 = vadd.f32 %v1336_v62, %v1280_v17  ;;  %v1420_v26 = vadd.f32 %v3068_v6, %v1379_v10  ;;  %v4204_v62 = vmov 5  }
 0x4b8   : > { %v1407_v40 = vadd.f32 %v1393_v11, %v1343_v5 }
 0x4b9   : > { %v1333_v13 = vpop.permute.xlu1 %1332  ;;  %vm1432_vm9 = vcmp.ge.f32.partialorder %v1420_v26, 0.0 }
 0x4ba   : > { %v1337_v50 = vsel %vm667_vm6, %v1331_v27, %v1333_v13  ;;  %v1338_v44 = vsel %vm667_vm6, %v1333_v13, %v3304_v57  ;;  %v1425_v28 = vadd.f32 %v3159_v51, %v1407_v40  ;;  %v1442_v27 = vmul.f32 %v3276_v35, %v1420_v26 }
 0x4bb   : > { %v1345_v21 = vadd.f32 %v1337_v50, %v1281_v1  ;;  %v1346_v61 = vadd.f32 %v1338_v44, %v3467_v25 }
 0x4bc   : > { %v1455_v53 = vmul.f32 %v3319_v46, %v1425_v28  ;;  %vm1447_vm10 = vcmp.ge.f32.partialorder %v1425_v28, 0.0  ;;  %v1446_v3 = vsel %vm1432_vm9, %v1420_v26, %v1442_v27  ;;  %v4205_v26 = vmov 4  }
 0x4bd   : > { %v1410_v49 = vadd.f32 %v1402_v58, %v1346_v61  ;;  %v1362_v22 = vpop.permute.xlu1 %1361  ;;  %v4206_v61 = vld [vmem:[#allocation35_spill] sm:$0xff] }
 0x4be   : > { %v1376_v45 = vadd.f32 %v1362_v22, %v1312_v48  ;;  %v3544_v34 = vpop.permute.xlu0 %1645  ;;  %v1459_v17 = vsel %vm1447_vm10, %v1425_v28, %v1455_v53  ;;  %v4207_v48 = vld [vmem:[#allocation10_spill] sm:$0xff] }
 0x4bf   : > { %v1428_v57 = vadd.f32 %v3159_v51, %v1410_v49  ;;  %v1648_v8 = vmul.f32 0.0, %v3544_v34 }
 0x4c0   : > { %v1417_v25 = vadd.f32 %v3068_v6, %v1376_v45 }
 0x4c1   : > { %v1458_v19 = vmul.f32 %v3319_v46, %v1428_v57  ;;  %1656 = vrot.lane.b32.xlu0 %v1648_v8, %s2375_s12  ;;  %v1364_v33 = vpop.permute.xlu1 %1363  ;;  %vm1450_vm11 = vcmp.ge.f32.partialorder %v1428_v57, 0.0 }
 0x4c2   : > { %vm1429_vm12 = vcmp.ge.f32.partialorder %v1417_v25, 0.0  ;;  %v1439_v54 = vmul.f32 %v3276_v35, %v1417_v25  ;;  %v1369_v38 = vsel %vm733_vm7, %v1362_v22, %v1364_v33  ;;  %v1370_v7 = vsel %vm733_vm7, %v1364_v33, %v1366_v15  ;;  %v3586_v40 = vpop.permute.xlu0 %1831 }
 0x4c3   : > { %v1377_v12 = vadd.f32 %v1369_v38, %v1313_v23  ;;  %v1378_v18 = vadd.f32 %v1370_v7, %v1314_v59  ;;  %v1462_v32 = vsel %vm1450_vm11, %v1428_v57, %v1458_v19  ;;  %v1837_v13 = vmul.f32 0.0, %v3586_v40  ;;  %v4209_v7 = vld [vmem:[#allocation7_spill] sm:$0xff] }
 0x4c4   : > { %v1443_v1 = vsel %vm1429_vm12, %v1417_v25, %v1439_v54  ;;  %v1466_v0 = vadd.f32 %v1462_v32, %v1446_v3  ;;  %v4208_v54 = vld [vmem:[#allocation34_spill] sm:$0xff] }
 0x4c5   : > { %v3556_v56 = vadd.f32 %v1459_v17, %v1443_v1  ;;  %v1395_v30 = vpop.permute.xlu1 %1394  ;;  %v1418_v55 = vadd.f32 %v3068_v6, %v1377_v12  ;;  %v1419_v4 = vadd.f32 %v3068_v6, %v1378_v18 }
 0x4c6   : > { %v1400_v47 = vsel %vm733_vm7, %v1393_v11, %v1395_v30  ;;  %v1401_v63 = vsel %vm733_vm7, %v1395_v30, %v1397_v31  ;;  %v1470_v58 = vmul.f32 %v1466_v0, %v4206_v61  ;;  %v3612_v49 = vpop.permute.xlu0 %1528 }
 0x4c7   : > { %v1408_v24 = vadd.f32 %v1400_v47, %v1344_v43  ;;  %v1409_v15 = vadd.f32 %v1401_v63, %v1345_v21  ;;  %v1440_v23 = vmul.f32 %v3276_v35, %v1418_v55  ;;  %v1441_v16 = vmul.f32 %v3276_v35, %v1419_v4 }
 0x4c8   : > { %vm1430_vm13 = vcmp.ge.f32.partialorder %v1418_v55, 0.0  ;;  %vm1431_vm14 = vcmp.ge.f32.partialorder %v1419_v4, 0.0  ;;  %v1467_v38 = vmul.f32 %v3556_v56, %v4208_v54 }
 0x4c9   : > { %v1426_v42 = vadd.f32 %v3159_v51, %v1408_v24  ;;  %v1427_v9 = vadd.f32 %v3159_v51, %v1409_v15  ;;  %v1444_v37 = vsel %vm1430_vm13, %v1418_v55, %v1440_v23  ;;  %v1445_v11 = vsel %vm1431_vm14, %v1419_v4, %v1441_v16  ;;  %v2020_v51 = vld [vmem:[%s4040_s2] sm:$0xff]  ;;  %v4210_v16 = vld [vmem:[#allocation21_spill] sm:$0xff] }
 0x4ca   : > { %v3614_v22 = vpop.permute.xlu0 %1559 }
 0x4cb   : > { %vm1448_vm15 = vcmp.ge.f32.partialorder %v1426_v42, 0.0  ;;  %vm1449_vm9 = vcmp.ge.f32.partialorder %v1427_v9, 0.0  ;;  %v1456_v6 = vmul.f32 %v3319_v46, %v1426_v42  ;;  %v1457_v60 = vmul.f32 %v3319_v46, %v1427_v9 }
 0x4cd   : > { %v1460_v59 = vsel %vm1448_vm15, %v1426_v42, %v1456_v6  ;;  %v1461_v14 = vsel %vm1449_vm9, %v1427_v9, %v1457_v60 }
 0x4ce   : > { %v1464_v52 = vadd.f32 %v1460_v59, %v1444_v37  ;;  %v1465_v29 = vadd.f32 %v1461_v14, %v1445_v11  ;;  %v3616_v45 = vpop.permute.xlu0 %1592  ;;  %v4211_v59 = vld [vmem:[#allocation9_spill] sm:$0xff] }
 0x4d0   : > { %v1468_v28 = vmul.f32 %v1464_v52, %v4207_v48  ;;  %v1469_v12 = vmul.f32 %v1465_v29, %v4209_v7  ;;  %v4212_v29 = vld [vmem:[#allocation13_spill] sm:$0xff] }
 0x4d2   : > { %v3618_v27 = vpop.permute.xlu0 %1623 }
 0x4d6   : > { %v3568_v10 = vpop.permute.xlu1 %1676 }
 0x4d7   : > { %v1679_v35 = vmul.f32 0.0, %v3568_v10 }
 0x4d9   : > { %1687 = vrot.lane.b32.xlu0 %v1679_v35, %s2375_s12 }
 0x4db   : > { %v3575_v41 = vpop.permute.xlu1 %1709 }
 0x4dd   : > { %2023 = vperm.xlu0 %2299, %v2020_v51  }
 0x4df   : > { %v3577_v46 = vpop.permute.xlu1 %1767 }
 0x4e0   : > { %v1773_v36 = vmul.f32 0.0, %v3577_v46 }
 0x4e1   : > { %2305 = vset.pattern.permute.xlu0 %v4204_v62 }
 0x4e2   : > { %1735 = vperm.xlu0 %2305, %v3355_v20   ;;  %1784 = vrot.lane.b32.xlu1 %v1773_v36, %s2377_s14  ;;  %v4213_v36 = vld [vmem:[#allocation23_spill] sm:$0xff] }
 0x4e4   : > { %v3583_v5 = vpop.permute.xlu1 %1798 }
 0x4e5   : > { %v1804_v43 = vmul.f32 0.0, %v3583_v5 }
 0x4e6   : > { %1926 = vperm.xlu0 %2305, %v3376_v2   ;;  %v2042_v2 = vld [vmem:[%s4041_s3] sm:$0xff] }
 0x4e7   : > { %1815 = vrot.lane.b32.xlu1 %v1804_v43, %s2377_s14 }
 0x4e8   : > { %v3590_v31 = vpop.permute.xlu1 %1862 }
 0x4e9   : > { %v1868_v20 = vmul.f32 0.0, %v3590_v31 }
 0x4eb   : > { %1848 = vrot.lane.b32.xlu1 %v1837_v13, %s2378_s15 }
 0x4ed   : > { %v3595_v39 = vpop.permute.xlu1 %1895 }
 0x4ee   : > { %v1901_v50 = vmul.f32 0.0, %v3595_v39 }
 0x4ef   : > { %1879 = vrot.lane.b32.xlu1 %v1868_v20, %s2378_s15 }
 0x4f0   : > { %1912 = vrot.lane.b32.xlu0 %v1901_v50, %s2379_s16 }
 0x4f1   : > { %v3603_v44 = vpop.permute.xlu1 %1959 }
 0x4f2   : > { %v1965_v21 = vmul.f32 0.0, %v3603_v44 }
 0x4f3   : > { %2031 = vperm.xlu1 %2304, %v2020_v51  }
 0x4f6   : > { %v3637_v18 = vpop.permute.xlu1 %1990 }
 0x4f7   : > { %2306 = vset.pattern.permute.xlu1 %v4205_v26 }
 0x4f8   : > { %2045 = vperm.xlu1 %2306, %v2042_v2  }
 0x4fc   : > { %1976 = vrot.lane.b32.xlu1 %v1965_v21, %s2380_s25 }
 0x500   : > { %1481 = vrot.lane.b32.xlu1 %v1470_v58, %s2383_s23 }
 0x504   : > { %1477 = vrot.lane.b32.xlu1 %v1468_v28, %s2383_s23 }
 0x533   : > { %v3620_v57 = vpop.permute.xlu0 %1656 }
 0x54b   : > { %v3622_v8 = vpop.permute.xlu0 %1687 }
 0x554   : > { %v3639_v3 = vpop.permute.xlu1 %1784 }
 0x559   : > { %v3641_v32 = vpop.permute.xlu1 %1815 }
 0x55c   : > { %v3624_v53 = vpop.permute.xlu0 %2023 }
 0x55d   : > { %v3643_v17 = vpop.permute.xlu1 %1848 }
 0x561   : > { %v3626_v25 = vpop.permute.xlu0 %1735  ;;  %v3645_v1 = vpop.permute.xlu1 %1879 }
 0x565   : > { %v3628_v19 = vpop.permute.xlu0 %1926 }
 0x566   : > { %v1932_v33 = vmul.f32 0.0, %v3628_v19 }
 0x568   : > { %1943 = vrot.lane.b32.xlu0 %v1932_v33, %s2379_s16 }
 0x569   : > { %v3651_v56 = vpop.permute.xlu0 %1912 }
 0x56c   : > { %2061 = vperm.xlu0 %2305, %v2042_v2  }
 0x570   : > { %1475 = vrot.lane.b32.xlu0 %v1467_v38, %s2383_s23 }
 0x572   : > { %v3647_v0 = vpop.permute.xlu1 %2031 }
 0x574   : > { %1479 = vrot.lane.b32.xlu0 %v1469_v12, %s2383_s23 }
 0x577   : > { %v3649_v30 = vpop.permute.xlu1 %2045 }
 0x57b   : > { %v3653_v55 = vpop.permute.xlu1 %1976 }
 0x57f   : > { %v1482_v47 = vpop.permute.xlu1 %1481 }
 0x583   : > { %v1478_v24 = vpop.permute.xlu1 %1477 }
 0x5da   : > { %v3655_v4 = vpop.permute.xlu0 %1943 }
 0x5eb   : > { %v3657_v63 = vpop.permute.xlu0 %2061 }
 0x5ef   : > { %v1476_v15 = vpop.permute.xlu0 %1475 }
 0x5f0   : > { %v3660_v23 = vsel %vm873_vm8, %v1476_v15, %v1478_v24 }
 0x5f1   : > { %v1521_v42 = vmul.f32 %v4210_v16, %v3660_v23  ;;  %v1552_v52 = vmul.f32 %v4211_v59, %v3660_v23  ;;  %v1585_v43 = vmul.f32 %v4212_v29, %v3660_v23  ;;  %v1616_v2 = vmul.f32 %v4213_v36, %v3660_v23 }
 0x5f2   : > { %v1712_v26 = vmul.f32 %v3575_v41, %v3660_v23  ;;  %v1649_v28 = vmul.f32 %v3544_v34, %v3660_v23  ;;  %v1770_v12 = vmul.f32 %v3577_v46, %v3660_v23  ;;  %v1801_v15 = vmul.f32 %v3583_v5, %v3660_v23 }
 0x5f3   : > { %v1480_v9 = vpop.permute.xlu0 %1479  ;;  %1530 = vrot.lane.b32.xlu1 %v1521_v42, %s2373_s10 }
 0x5f4   : > { %v3666_v6 = vsel %vm873_vm8, %v1478_v24, %v1480_v9  ;;  %v3669_v60 = vsel %vm873_vm8, %v1480_v9, %v1482_v47  ;;  %v1680_v47 = vmul.f32 %v3568_v10, %v3660_v23  ;;  %v1834_v9 = vmul.f32 %v3586_v40, %v3660_v23 }
 0x5f5   : > { %v1522_v37 = vmul.f32 %v4210_v16, %v3666_v6  ;;  %v1523_v11 = vmul.f32 %v4210_v16, %v3669_v60  ;;  %v1553_v14 = vmul.f32 %v4211_v59, %v3666_v6  ;;  %v1586_v35 = vmul.f32 %v4212_v29, %v3666_v6 }
 0x5f6   : > { %v1554_v51 = vmul.f32 %v4211_v59, %v3669_v60  ;;  %v1617_v62 = vmul.f32 %v4213_v36, %v3666_v6  ;;  %v1650_v13 = vmul.f32 %v3544_v34, %v3666_v6  ;;  %v1587_v20 = vmul.f32 %v4212_v29, %v3669_v60 }
 0x5f7   : > { %1532 = vrot.lane.b32.xlu0 %v1522_v37, %s2373_s10  ;;  %1534 = vrot.lane.b32.xlu1 %v1523_v11, %s2373_s10  ;;  %v1681_v50 = vmul.f32 %v3568_v10, %v3666_v6  ;;  %v1618_v21 = vmul.f32 %v4213_v36, %v3669_v60  ;;  %v1714_v58 = vmul.f32 %v3575_v41, %v3669_v60 }
 0x5f8   : > { %v1739_v33 = vmul.f32 %v3626_v25, %v3666_v6  ;;  %v1651_v38 = vmul.f32 %v3544_v34, %v3669_v60  ;;  %v1772_v24 = vmul.f32 %v3577_v46, %v3669_v60  ;;  %v1682_v34 = vmul.f32 %v3568_v10, %v3669_v60 }
 0x5f9   : > { %v1713_v16 = vmul.f32 %v3575_v41, %v3666_v6  ;;  %v1803_v42 = vmul.f32 %v3583_v5, %v3669_v60  ;;  %v1738_v10 = vmul.f32 %v3626_v25, %v3660_v23  ;;  %v1740_v41 = vmul.f32 %v3626_v25, %v3669_v60 }
 0x5fa   : > { %v1836_v37 = vmul.f32 %v3586_v40, %v3669_v60  ;;  %v1771_v11 = vmul.f32 %v3577_v46, %v3666_v6  ;;  %v1865_v59 = vmul.f32 %v3590_v31, %v3660_v23  ;;  %v1802_v25 = vmul.f32 %v3583_v5, %v3666_v6 }
 0x5fb   : > { %1563 = vrot.lane.b32.xlu0 %v1553_v14, %s2373_s10  ;;  %1561 = vrot.lane.b32.xlu1 %v1552_v52, %s2373_s10  ;;  %v1867_v14 = vmul.f32 %v3590_v31, %v3669_v60  ;;  %v1835_v46 = vmul.f32 %v3586_v40, %v3666_v6  ;;  %v1899_v52 = vmul.f32 %v3595_v39, %v3666_v6 }
 0x5fc   : > { %v1866_v5 = vmul.f32 %v3590_v31, %v3666_v6  ;;  %v1930_v29 = vmul.f32 %v3628_v19, %v3666_v6  ;;  %v1898_v40 = vmul.f32 %v3595_v39, %v3660_v23  ;;  %v1900_v31 = vmul.f32 %v3595_v39, %v3669_v60 }
 0x5fd   : > { %v1929_v36 = vmul.f32 %v3628_v19, %v3660_v23  ;;  %v1931_v39 = vmul.f32 %v3628_v19, %v3669_v60  ;;  %v1996_v19 = vmul.f32 0.0, %v3637_v18 }
 0x5ff   : > { %1596 = vrot.lane.b32.xlu0 %v1586_v35, %s2374_s11  ;;  %1565 = vrot.lane.b32.xlu1 %v1554_v51, %s2373_s10  ;;  %v1964_v35 = vmul.f32 %v3603_v44, %v3669_v60  ;;  %v1993_v51 = vmul.f32 %v3637_v18, %v3660_v23  ;;  %s215_s10 = sand.u32 1, %s2361_s19  }
 0x603   : > { %1627 = vrot.lane.b32.xlu0 %v1617_v62, %s2374_s11  ;;  %1594 = vrot.lane.b32.xlu1 %v1585_v43, %s2374_s11  ;;  %v1995_v62 = vmul.f32 %v3637_v18, %v3669_v60  ;;  %v1962_v43 = vmul.f32 %v3603_v44, %v3660_v23 }
 0x607   : > { %1660 = vrot.lane.b32.xlu0 %v1650_v13, %s2375_s12  ;;  %1598 = vrot.lane.b32.xlu1 %v1587_v20, %s2374_s11  ;;  %v1963_v13 = vmul.f32 %v3603_v44, %v3666_v6  ;;  %v1994_v20 = vmul.f32 %v3637_v18, %v3666_v6 }
 0x60b   : > { %1691 = vrot.lane.b32.xlu0 %v1681_v50, %s2375_s12  ;;  %1625 = vrot.lane.b32.xlu1 %v1616_v2, %s2374_s11  ;;  %v4214_v2 = vld [vmem:[#allocation24_spill] sm:$0xff] }
 0x60c   : > { %v1503_v44 = vmul.f32 %v4214_v2, %v3660_v23 }
 0x60f   : > { %1718 = vrot.lane.b32.xlu0 %v1712_v26, %s2376_s13  ;;  %1629 = vrot.lane.b32.xlu1 %v1618_v21, %s2374_s11  ;;  %v1505_v26 = vmul.f32 %v4214_v2, %v3669_v60  ;;  %s2219_s11 = smul.u32 24, %s215_s10 }
 0x613   : > { %1722 = vrot.lane.b32.xlu0 %v1714_v58, %s2376_s13  ;;  %1658 = vrot.lane.b32.xlu1 %v1649_v28, %s2375_s12  ;;  %v1504_v58 = vmul.f32 %v4214_v2, %v3666_v6 }
 0x617   : > { %1746 = vrot.lane.b32.xlu0 %v1739_v33, %s2376_s13  ;;  %1662 = vrot.lane.b32.xlu1 %v1651_v38, %s2375_s12 }
 0x61b   : > { %1778 = vrot.lane.b32.xlu0 %v1770_v12, %s2377_s14  ;;  %1689 = vrot.lane.b32.xlu1 %v1680_v47, %s2375_s12 }
 0x61f   : > { %1782 = vrot.lane.b32.xlu0 %v1772_v24, %s2377_s14  ;;  %1693 = vrot.lane.b32.xlu1 %v1682_v34, %s2375_s12  ;;  %s2221_s12 = smul.u32 384, %s2438_s22  ;;  %s2114_s22 = scalar_lea.sflag [#allocation4], %s215_s10 }
 0x623   : > { %1809 = vrot.lane.b32.xlu0 %v1801_v15, %s2377_s14  ;;  %1720 = vrot.lane.b32.xlu1 %v1713_v16, %s2376_s13  ;;  %v4215_v15 = vld [vmem:[#allocation12_spill] sm:$0xff] }
 0x624   : > { %v1511_v16 = vmul.f32 %v4215_v15, %v3660_v23 }
 0x627   : > { %1813 = vrot.lane.b32.xlu0 %v1803_v42, %s2377_s14  ;;  %1744 = vrot.lane.b32.xlu1 %v1738_v10, %s2376_s13 }
 0x62b   : > { %1842 = vrot.lane.b32.xlu0 %v1834_v9, %s2378_s15  ;;  %1748 = vrot.lane.b32.xlu1 %v1740_v41, %s2376_s13  ;;  %v1513_v9 = vmul.f32 %v4215_v15, %v3669_v60  ;;  %s217_s13 = scalar_lea.vmem [#allocation3], %s2219_s11 }
 0x62f   : > { %1846 = vrot.lane.b32.xlu0 %v1836_v37, %s2378_s15  ;;  %1780 = vrot.lane.b32.xlu1 %v1771_v11, %s2377_s14  ;;  %v1512_v37 = vmul.f32 %v4215_v15, %v3666_v6 }
 0x633   : > { %1873 = vrot.lane.b32.xlu0 %v1865_v59, %s2378_s15  ;;  %1811 = vrot.lane.b32.xlu1 %v1802_v25, %s2377_s14  ;;  %s2128_s14 = sshll.u32 %s217_s13, 4  ;;  %s3998_s14 = int_to_ptr.vmem [resolvable:$true] %s2128_s14 }
 0x637   : > { %1877 = vrot.lane.b32.xlu0 %v1867_v14, %s2378_s15  ;;  %1844 = vrot.lane.b32.xlu1 %v1835_v46, %s2378_s15 }
 0x63b   : > { %1908 = vrot.lane.b32.xlu0 %v1899_v52, %s2379_s16  ;;  %1875 = vrot.lane.b32.xlu1 %v1866_v5, %s2378_s15 }
 0x63f   : > { %1939 = vrot.lane.b32.xlu0 %v1930_v29, %s2379_s16  ;;  %1906 = vrot.lane.b32.xlu1 %v1898_v40, %s2379_s16 }
 0x643   : > { %1974 = vrot.lane.b32.xlu0 %v1964_v35, %s2380_s25  ;;  %1910 = vrot.lane.b32.xlu1 %v1900_v31, %s2379_s16 }
 0x647   : > { %2001 = vrot.lane.b32.xlu0 %v1993_v51, %s2380_s25  ;;  %1937 = vrot.lane.b32.xlu1 %v1929_v36, %s2379_s16 }
 0x64b   : > { %2005 = vrot.lane.b32.xlu0 %v1995_v62, %s2380_s25  ;;  %1941 = vrot.lane.b32.xlu1 %v1931_v39, %s2379_s16 }
 0x64f   : > { %1970 = vrot.lane.b32.xlu1 %v1962_v43, %s2380_s25 }
 0x653   : > { %1972 = vrot.lane.b32.xlu1 %v1963_v13, %s2380_s25 }
 0x657   : > { %2003 = vrot.lane.b32.xlu1 %v1994_v20, %s2380_s25 }
 0x65b   : > { %2007 = vrot.lane.b32.xlu1 %v1996_v19, %s2380_s25  ;;  %s3996_s25 = scalar_lea.hbm %s4043_s5, %s2221_s12 }
 0x665   : > { %v3814_v50 = vpop.permute.xlu1 %1530 }
 0x669   : > { %v1533_v21 = vpop.permute.xlu0 %1532  ;;  %v1535_v28 = vpop.permute.xlu1 %1534 }
 0x66a   : > { %v1537_v33 = vsel %vm277_vm0, %v3814_v50, %v1533_v21  ;;  %v1538_v18 = vsel %vm277_vm0, %v1533_v21, %v1535_v28  ;;  %v1546_v38 = vadd.f32 %v1535_v28, %v1505_v26 }
 0x66b   : > { %v1544_v12 = vadd.f32 %v1537_v33, %v1503_v44  ;;  %v1545_v47 = vadd.f32 %v1538_v18, %v1504_v58 }
 0x66d   : > { %v1564_v24 = vpop.permute.xlu0 %1563  ;;  %v1562_v34 = vpop.permute.xlu1 %1561 }
 0x66e   : > { %v1568_v42 = vsel %vm277_vm0, %v1562_v34, %v1564_v24 }
 0x66f   : > { %v1575_v10 = vadd.f32 %v1568_v42, %v1511_v16 }
 0x671   : > { %v1597_v41 = vpop.permute.xlu0 %1596  ;;  %v1566_v11 = vpop.permute.xlu1 %1565 }
 0x672   : > { %v1569_v59 = vsel %vm277_vm0, %v1564_v24, %v1566_v11  ;;  %v1577_v25 = vadd.f32 %v1566_v11, %v1513_v9 }
 0x673   : > { %v1576_v14 = vadd.f32 %v1569_v59, %v1512_v37  ;;  %v1567_v59 = vsel %vm277_vm0, %v3614_v22, %v1562_v34 }
 0x675   : > { %v1628_v46 = vpop.permute.xlu0 %1627  ;;  %v1595_v52 = vpop.permute.xlu1 %1594 }
 0x676   : > { %v1601_v5 = vsel %vm343_vm1, %v1595_v52, %v1597_v41 }
 0x677   : > { %v1608_v23 = vadd.f32 %v1601_v5, %v1544_v12 }
 0x679   : > { %v1661_v29 = vpop.permute.xlu0 %1660  ;;  %v1599_v40 = vpop.permute.xlu1 %1598 }
 0x67a   : > { %v1602_v35 = vsel %vm343_vm1, %v1597_v41, %v1599_v40  ;;  %v1610_v31 = vadd.f32 %v1599_v40, %v1546_v38  ;;  %v1536_v40 = vsel %vm277_vm0, %v3612_v49, %v3814_v50 }
 0x67b   : > { %v1609_v60 = vadd.f32 %v1602_v35, %v1545_v47 }
 0x67d   : > { %v3835_v51 = vpop.permute.xlu0 %1691  ;;  %v1626_v36 = vpop.permute.xlu1 %1625 }
 0x67e   : > { %v1632_v6 = vsel %vm343_vm1, %v1626_v36, %v1628_v46  ;;  %v1631_v5 = vsel %vm343_vm1, %v3618_v27, %v1626_v36 }
 0x67f   : > { %v3838_v62 = vadd.f32 %v1632_v6, %v1575_v10  ;;  %v1502_v6 = vmul.f32 0.0, %v4214_v2 }
 0x681   : > { %v1719_v39 = vpop.permute.xlu0 %1718  ;;  %v1630_v43 = vpop.permute.xlu1 %1629  ;;  %v1543_v61 = vadd.f32 %v1536_v40, %v1502_v6 }
 0x682   : > { %v1633_v13 = vsel %vm343_vm1, %v1628_v46, %v1630_v43  ;;  %v1641_v20 = vadd.f32 %v1630_v43, %v1577_v25  ;;  %v1510_v46 = vmul.f32 0.0, %v4215_v15  ;;  %v1600_v15 = vsel %vm343_vm1, %v3616_v45, %v1595_v52 }
 0x683   : > { %v3841_v19 = vadd.f32 %v1633_v13, %v1576_v14  ;;  %v1607_v49 = vadd.f32 %v1600_v15, %v1543_v61 }
 0x684   : > { %v1574_v35 = vadd.f32 %v1567_v59, %v1510_v46 }
 0x685   : > { %v1723_v26 = vpop.permute.xlu0 %1722  ;;  %v1659_v21 = vpop.permute.xlu1 %1658 }
 0x686   : > { %v1638_v13 = vadd.f32 %v1631_v5, %v1574_v35  ;;  %v1664_v27 = vsel %vm409_vm2, %v3620_v57, %v1659_v21 }
 0x687   : > { %v1671_v46 = vadd.f32 %v1664_v27, %v1607_v49 }
 0x689   : > { %v1747_v44 = vpop.permute.xlu0 %1746  ;;  %v1663_v58 = vpop.permute.xlu1 %1662  ;;  %v1730_v40 = vadd.f32 %v1719_v39, %v1671_v46 }
 0x68a   : > { %v1666_v48 = vsel %vm409_vm2, %v1661_v29, %v1663_v58  ;;  %v1674_v7 = vadd.f32 %v1663_v58, %v1610_v31 }
 0x68b   : > { %v1673_v57 = vadd.f32 %v1666_v48, %v1609_v60 }
 0x68c   : > { %v1733_v6 = vadd.f32 %v1723_v26, %v1674_v7 }
 0x68d   : > { %v3843_v28 = vpop.permute.xlu0 %1778  ;;  %v1690_v33 = vpop.permute.xlu1 %1689 }
 0x68e   : > { %v1695_v43 = vsel %vm409_vm2, %v3622_v8, %v1690_v33  ;;  %v1665_v8 = vsel %vm409_vm2, %v1659_v21, %v1661_v29  ;;  %v1696_v61 = vsel %vm409_vm2, %v1690_v33, %v3835_v51  ;;  %v1793_v29 = vadd.f32 %v3843_v28, %v1730_v40 }
 0x68f   : > { %v1702_v36 = vadd.f32 %v1695_v43, %v1638_v13  ;;  %v1672_v5 = vadd.f32 %v1665_v8, %v1608_v23  ;;  %v1703_v15 = vadd.f32 %v1696_v61, %v3838_v62 }
 0x691   : > { %v3845_v18 = vpop.permute.xlu0 %1782  ;;  %v1694_v38 = vpop.permute.xlu1 %1693 }
 0x692   : > { %v1788_v35 = vsel %vm535_vm4, %v3845_v18, %v3639_v3  ;;  %v1697_v31 = vsel %vm409_vm2, %v3835_v51, %v1694_v38  ;;  %v1705_v58 = vadd.f32 %v1694_v38, %v1641_v20 }
 0x693   : > { %v1796_v3 = vadd.f32 %v1788_v35, %v1733_v6 }
 0x695   : > { %v3847_v12 = vpop.permute.xlu0 %1809  ;;  %v1721_v47 = vpop.permute.xlu1 %1720 }
 0x696   : > { %v1724_v23 = vsel %vm471_vm3, %v1719_v39, %v1721_v47  ;;  %v1725_v48 = vsel %vm471_vm3, %v1721_v47, %v1723_v26 }
 0x697   : > { %v1731_v26 = vadd.f32 %v1724_v23, %v1672_v5  ;;  %v1732_v38 = vadd.f32 %v1725_v48, %v1673_v57 }
 0x699   : > { %v3849_v24 = vpop.permute.xlu0 %1813  ;;  %v1745_v16 = vpop.permute.xlu1 %1744 }
 0x69a   : > { %v1756_v59 = vadd.f32 %v1745_v16, %v1702_v36  ;;  %v1750_v60 = vsel %vm471_vm3, %v1745_v16, %v1747_v44  ;;  %v1704_v36 = vadd.f32 %v1697_v31, %v3841_v19  ;;  %v1819_v62 = vsel %vm535_vm4, %v3849_v24, %v3641_v32 }
 0x69c   : > { %v1824_v52 = vadd.f32 %v3847_v12, %v1756_v59 }
 0x69d   : > { %v3851_v42 = vpop.permute.xlu0 %1842  ;;  %v1749_v10 = vpop.permute.xlu1 %1748 }
 0x69e   : > { %v1751_v13 = vsel %vm471_vm3, %v1747_v44, %v1749_v10  ;;  %v1759_v7 = vadd.f32 %v1749_v10, %v1705_v58  ;;  %v1757_v44 = vadd.f32 %v1750_v60, %v1703_v15  ;;  %v1857_v16 = vadd.f32 %v3851_v42, %v1793_v29 }
 0x69f   : > { %v1758_v19 = vadd.f32 %v1751_v13, %v1704_v36 }
 0x6a1   : > { %v3853_v9 = vpop.permute.xlu0 %1846  ;;  %v1781_v41 = vpop.permute.xlu1 %1780 }
 0x6a2   : > { %v1852_v51 = vsel %vm601_vm5, %v3853_v9, %v3643_v17  ;;  %v1786_v39 = vsel %vm535_vm4, %v3843_v28, %v1781_v41  ;;  %v1787_v10 = vsel %vm535_vm4, %v1781_v41, %v3845_v18  ;;  %v1827_v28 = vadd.f32 %v1819_v62, %v1759_v7 }
 0x6a3   : > { %v1860_v49 = vadd.f32 %v1852_v51, %v1796_v3  ;;  %v1794_v59 = vadd.f32 %v1786_v39, %v1731_v26 }
 0x6a5   : > { %v3855_v37 = vpop.permute.xlu0 %1873  ;;  %v3857_v11 = vpop.permute.xlu1 %1811 }
 0x6a6   : > { %v1888_v21 = vadd.f32 %v3855_v37, %v1824_v52  ;;  %v1817_v17 = vsel %vm535_vm4, %v3847_v12, %v3857_v11  ;;  %v1818_v46 = vsel %vm535_vm4, %v3857_v11, %v3849_v24  ;;  %v1795_v52 = vadd.f32 %v1787_v10, %v1732_v38 }
 0x6a7   : > { %v1825_v12 = vadd.f32 %v1817_v17, %v1757_v44  ;;  %v1826_v40 = vadd.f32 %v1818_v46, %v1758_v19 }
 0x6a9   : > { %v3861_v25 = vpop.permute.xlu0 %1877  ;;  %v3863_v14 = vpop.permute.xlu1 %1844 }
 0x6aa   : > { %v1850_v32 = vsel %vm601_vm5, %v3851_v42, %v3863_v14  ;;  %v1851_v8 = vsel %vm601_vm5, %v3863_v14, %v3853_v9  ;;  %v1883_v57 = vsel %vm601_vm5, %v3861_v25, %v3645_v1 }
 0x6ab   : > { %v1858_v61 = vadd.f32 %v1850_v32, %v1794_v59  ;;  %v1859_v35 = vadd.f32 %v1851_v8, %v1795_v52  ;;  %v1891_v38 = vadd.f32 %v1883_v57, %v1827_v28  ;;  %v4218_v57 = vld [vmem:[#allocation10_spill] sm:$0xff] }
 0x6ad   : > { %v3874_v22 = vpop.permute.xlu0 %1908  ;;  %v3876_v34 = vpop.permute.xlu1 %1875 }
 0x6ae   : > { %v1881_v5 = vsel %vm601_vm5, %v3855_v37, %v3876_v34  ;;  %v1882_v37 = vsel %vm601_vm5, %v3876_v34, %v3861_v25 }
 0x6b1   : > { %v3882_v50 = vpop.permute.xlu0 %1939  ;;  %v1907_v2 = vpop.permute.xlu1 %1906 }
 0x6b2   : > { %v1921_v18 = vadd.f32 %v1907_v2, %v1857_v16  ;;  %v1914_v42 = vsel %vm667_vm6, %v1907_v2, %v3874_v22  ;;  %v4216_v16 = vld [vmem:[#allocation34_spill] sm:$0xff] }
 0x6b3   : > { %v1922_v29 = vadd.f32 %v1914_v42, %v1858_v61 }
 0x6b5   : > { %v3886_v54 = vpop.permute.xlu0 %1974  ;;  %v1911_v45 = vpop.permute.xlu1 %1910 }
 0x6b6   : > { %v1916_v24 = vsel %vm667_vm6, %v1911_v45, %v3651_v56  ;;  %v1915_v9 = vsel %vm667_vm6, %v3874_v22, %v1911_v45  ;;  %v1889_v56 = vadd.f32 %v1881_v5, %v1825_v12  ;;  %v1980_v34 = vsel %vm733_vm7, %v3886_v54, %v3653_v55 }
 0x6b7   : > { %v1923_v31 = vadd.f32 %v1915_v9, %v1859_v35  ;;  %v4217_v9 = vld [vmem:[#allocation7_spill] sm:$0xff] }
 0x6b9   : > { %v1938_v43 = vpop.permute.xlu1 %1937  ;;  %v3903_v27 = vpop.permute.xlu0 %2001 }
 0x6ba   : > { %v1952_v33 = vadd.f32 %v1938_v43, %v1888_v21  ;;  %v1924_v21 = vadd.f32 %v1916_v24, %v1860_v49  ;;  %v1945_v22 = vsel %vm667_vm6, %v1938_v43, %v3882_v50  ;;  %v1890_v43 = vadd.f32 %v1882_v37, %v1826_v40 }
 0x6bb   : > { %v1953_v13 = vadd.f32 %v1945_v22, %v1889_v56  ;;  %v2104_v56 = vld [vmem:[%s2531_s9] sm:$0xff] }
 0x6bc   : > { %v2016_v20 = vadd.f32 %v3903_v27, %v1952_v33  ;;  %v1988_v33 = vadd.f32 %v1980_v34, %v1924_v21  ;;  %v2105_v21 = vld [vmem:[%s2531_s9 + $0x8] sm:$0xff] }
 0x6bd   : > { %v1942_v47 = vpop.permute.xlu1 %1941  ;;  %v2006_v7 = vpop.permute.xlu0 %2005 }
 0x6be   : > { %v2034_v41 = vadd.f32 %v3647_v0, %v2016_v20  ;;  %v1946_v23 = vsel %vm667_vm6, %v3882_v50, %v1942_v47  ;;  %v1947_v36 = vsel %vm667_vm6, %v1942_v47, %v3655_v4  ;;  %v2029_v10 = vadd.f32 %v3624_v53, %v1988_v33 }
 0x6bf   : > { %v1954_v26 = vadd.f32 %v1946_v23, %v1890_v43  ;;  %v1955_v4 = vadd.f32 %v1947_v36, %v1891_v38 }
 0x6c0   : > { %v2064_v6 = vmul.f32 %v3657_v63, %v2034_v41  ;;  %vm2056_vm0 = vcmp.ge.f32.partialorder %v2034_v41, 0.0  ;;  %vm2041_vm6 = vcmp.ge.f32.partialorder %v2029_v10, 0.0  ;;  %v2051_v8 = vmul.f32 %v3649_v30, %v2029_v10 }
 0x6c1   : > { %v1971_v11 = vpop.permute.xlu1 %1970 }
 0x6c2   : > { %v1985_v14 = vadd.f32 %v1971_v11, %v1921_v18  ;;  %v2068_v15 = vsel %vm2056_vm0, %v2034_v41, %v2064_v6 }
 0x6c4   : > { %v2026_v2 = vadd.f32 %v3624_v53, %v1985_v14 }
 0x6c5   : > { %v1973_v45 = vpop.permute.xlu1 %1972 }
 0x6c6   : > { %vm2038_vm1 = vcmp.ge.f32.partialorder %v2026_v2, 0.0  ;;  %v2048_v1 = vmul.f32 %v3649_v30, %v2026_v2  ;;  %v1978_v58 = vsel %vm733_vm7, %v1971_v11, %v1973_v45  ;;  %v1979_v25 = vsel %vm733_vm7, %v1973_v45, %v3886_v54 }
 0x6c7   : > { %v1986_v48 = vadd.f32 %v1978_v58, %v1922_v29  ;;  %v1987_v60 = vadd.f32 %v1979_v25, %v1923_v31 }
 0x6c8   : > { %v2052_v3 = vsel %vm2038_vm1, %v2026_v2, %v2048_v1  ;;  %v2106_v1 = vld [vmem:[%s2531_s9 + $0x10] sm:$0xff]  ;;  %s2307_s9 = scalar_lea.vmem %s3998_s14, 384 }
 0x6c9   : > { %v2072_v51 = vadd.f32 %v2068_v15, %v2052_v3  ;;  %v2027_v39 = vadd.f32 %v3624_v53, %v1986_v48  ;;  %v2004_v20 = vpop.permute.xlu1 %2003  ;;  %v2028_v54 = vadd.f32 %v3624_v53, %v1987_v60  ;;  %p2308_p11 = scmp.ne.s32.totalorder %s3998_s14, %s2307_s9 }
 0x6ca   : > { %v2009_v55 = vsel %vm733_vm7, %v3903_v27, %v2004_v20  ;;  %v2010_v50 = vsel %vm733_vm7, %v2004_v20, %v2006_v7 }
 0x6cb   : > { %v2017_v62 = vadd.f32 %v2009_v55, %v1953_v13  ;;  %v2018_v44 = vadd.f32 %v2010_v50, %v1954_v26  ;;  %v2076_v19 = vmul.f32 %v2072_v51, %v4216_v16  ;;  %v2049_v47 = vmul.f32 %v3649_v30, %v2027_v39  ;;  %p2309_p12 = pnand %p2308_p11, %p2455_p5 }
 0x6cc   : > { %v2050_v49 = vmul.f32 %v3649_v30, %v2028_v54  ;;  %vm2039_vm2 = vcmp.ge.f32.partialorder %v2027_v39, 0.0  ;;  %vm2040_vm3 = vcmp.ge.f32.partialorder %v2028_v54, 0.0  ;;  %v2055_v30 = vsel %vm2041_vm6, %v2029_v10, %v2051_v8 }
 0x6cd   : > { %v2008_v17 = vpop.permute.xlu1 %2007  ;;  %v2035_v59 = vadd.f32 %v3647_v0, %v2017_v62  ;;  %v2036_v46 = vadd.f32 %v3647_v0, %v2018_v44  ;;  %2084 = vrot.lane.b32.xlu0 %v2076_v19, %s2383_s23  ;;  %v2053_v41 = vsel %vm2039_vm2, %v2027_v39, %v2049_v47  ;;  %p2310_p13 = pneg %p2309_p12 }
 0x6ce   : > { %v2011_v27 = vsel %vm733_vm7, %v2006_v7, %v2008_v17  ;;  %v2054_v52 = vsel %vm2040_vm3, %v2028_v54, %v2050_v49 }
 0x6cf   : > { %v2019_v28 = vadd.f32 %v2011_v27, %v1955_v4  ;;  %vm2057_vm4 = vcmp.ge.f32.partialorder %v2035_v59, 0.0  ;;  %vm2058_vm5 = vcmp.ge.f32.partialorder %v2036_v46, 0.0  ;;  %v2065_v53 = vmul.f32 %v3657_v63, %v2035_v59 }
 0x6d0   : > { %v2066_v32 = vmul.f32 %v3657_v63, %v2036_v46 }
 0x6d1   : > { %v2037_v18 = vadd.f32 %v3647_v0, %v2019_v28  ;;  %v2069_v12 = vsel %vm2057_vm4, %v2035_v59, %v2065_v53  ;;  %v4219_v0 = vld [vmem:[#allocation35_spill] sm:$0xff] }
 0x6d2   : > { %v2070_v5 = vsel %vm2058_vm5, %v2036_v46, %v2066_v32  ;;  %v2073_v40 = vadd.f32 %v2069_v12, %v2053_v41 }
 0x6d3   : > { %vm2059_vm7 = vcmp.ge.f32.partialorder %v2037_v18, 0.0  ;;  %v2067_v24 = vmul.f32 %v3657_v63, %v2037_v18  ;;  %v2074_v11 = vadd.f32 %v2070_v5, %v2054_v52 }
 0x6d4   : > { %v2077_v61 = vmul.f32 %v2073_v40, %v4218_v57 }
 0x6d5   : > { %v2071_v42 = vsel %vm2059_vm7, %v2037_v18, %v2067_v24  ;;  %v2078_v14 = vmul.f32 %v2074_v11, %v4217_v9 }
 0x6d6   : > { %v2075_v35 = vadd.f32 %v2071_v42, %v2055_v30  ;;  %2086 = vrot.lane.b32.xlu1 %v2077_v61, %s2383_s23 }
 0x6d7   : > { %2088 = vrot.lane.b32.xlu0 %v2078_v14, %s2383_s23 }
 0x6d8   : > { %v2079_v37 = vmul.f32 %v2075_v35, %v4219_v0 }
 0x6da   : > { %2090 = vrot.lane.b32.xlu1 %v2079_v37, %s2383_s23  ;;  %s2386_s23 = smov [#allocation3]  }
 0x6db   : > { %s2311_s8 = sshll.u32 %s2386_s23, 4  ;;  %s2312_s8 = int_to_ptr.vmem [resolvable:$false] %s2311_s8 }
 0x6dc   : > { %s2313_s17 = scalar_lea.vmem %s2312_s8, 768  ;;  %p2314_p0 = scmp.lt.s32.totalorder %s3998_s14, %s2312_s8 }
 0x6dd   : > { %p2315_p1 = scmp.lt.s32.totalorder %s2313_s17, %s2307_s9 }
 0x6df   : > { %p2316_p2 = por %p2315_p1, %p2314_p0 }
 0x6e1   : > { %p2317_p3 = pnand %p2316_p2, %p2310_p13 }
 0x73f   : > { %v2085_v63 = vpop.permute.xlu0 %2084 }
 0x748   : > { %v2087_v2 = vpop.permute.xlu1 %2086 }
 0x749   : > { %v2089_v6 = vpop.permute.xlu0 %2088  ;;  %v2092_v29 = vsel %vm873_vm8, %v2085_v63, %v2087_v2 }
 0x74a   : > { %v2093_v31 = vsel %vm873_vm8, %v2087_v2, %v2089_v6  ;;  %v2107_v22 = vadd.f32 %v2104_v56, %v2092_v29 }
 0x74b   : > { %v2108_v45 = vadd.f32 %v2105_v21, %v2093_v31 }
 0x74c   : > { %2110 = vst [vmem:[%s217_s13] sm:$0xff] %v2107_v22  ;;  %v2091_v58 = vpop.permute.xlu1 %2090 }
 0x74d   : > { %2111 = vst [vmem:[%s217_s13 + $0x8] sm:$0xff] %v2108_v45  ;;  %v2094_v25 = vsel %vm873_vm8, %v2089_v6, %v2091_v58 }
 0x74e   : > { %v2109_v34 = vadd.f32 %v2106_v1, %v2094_v25 }
 0x750   : > { %2112 = vst [vmem:[%s217_s13 + $0x10] sm:$0xff] %v2109_v34 }
 0x751   : > { %2320 = shalt.err (!%p2317_p3)
}
 0x752   : > { %s2321_s26 = scalar_lea.hbm %s3996_s25, 384  ;;  %s2325_s7 = scalar_lea.hbm %s4043_s5, 768 }
 0x753   : > { %p2322_p4 = scmp.ne.s32.totalorder %s3996_s25, %s2321_s26  ;;  %p2326_p9 = scmp.lt.u32.totalorder %s3996_s25, %s4043_s5 }
 0x754   : > { %p2327_p10 = scmp.lt.u32.totalorder %s2325_s7, %s2321_s26  ;;  %p2329_p12 = scmp.lt.u32.totalorder %s2321_s26, %s3996_s25 }
 0x755   : > { %p2323_p7 = pnand %p2322_p4, %p2455_p5 }
 0x756   : > { %p2328_p11 = por %p2327_p10, %p2326_p9 }
 0x757   : > { %p2324_p8 = pneg %p2323_p7 }
 0x758   : > { %p2330_p13 = por %p2329_p12, %p2328_p11 }
 0x75a   : > { %p2331_p0 = pnand %p2330_p13, %p2324_p8 }
 0x75c   : > { %2334 = shalt.err (!%p2331_p0)
}
 0x75d   : > { %2222 = dma.vmem_to_hbm [thread:$0]  (%p2455_p5), %s3998_s14, 384, %s3996_s25, %s2114_s22  }
 0x75e PF: > { %p2228_p1 = scmp.ge.s32.totalorder %s2369_s21, 2  ;;  %s2140_s12 = sand.u32 1, %s2357_s18  }
 0x75f   : > { %s2141_s13 = scalar_lea.sflag [#allocation4], %s2140_s12 }
 0x760   : > { %p2225_p2 = pnand %p2228_p1, %p2459_p6 }
 0x762   : > { %2352 = dma.done.wait (!%p2225_p2), %s2141_s13, 384  }
 0x763   : > { %2354 = vsyncadd (!%p2225_p2), %s2141_s13, 4294966912  ;;  %p15_p3 = scmp.ge.s32.totalorder %s2442_s24, 4   ;;  %s4220_s18 = smov %s2361_s19 }
 0x764   : > { %s4221_s19 = smov %s2365_s20  ;;  %s4222_s20 = smov %s2453_s27 }
 0x765   : > { %s4223_s21 = smov %s2442_s24  ;;  %17 = sbr.rel (!%p15_p3) target bundleno = 3 (0x3), region = 83 }
 0x76c   :  { %2146 = vsyncpa [#allocation4], 1 }
 0x76d   :  { %2148 = vsyncpa [#allocation4 + $0x1], 1 }

</bundles_post_ra>
